<compile_context>
chip_gen: v7x
topology: tpu7x:2x2x1
jax: 0.10.0
libtpu: 0.0.40
codegen_flags: <defaults>
</compile_context>

<pallas_src>
import functools
import math

import jax
import jax.numpy as jnp
import numpy as np
from jax import lax
from jax.experimental import pallas as pl
from jax.experimental.pallas import tpu as pltpu


def bottleneck_kernel(x_ref, mask_ref, wa_ref, w2_ref, w3_ref, bias_ref,
                      out_ref, stk_ref, *, img_w, dilation, has_downsample):
    cm = w2_ref.shape[0]          # bottleneck width ("channels")
    hw = x_ref.shape[2]           # flattened spatial plane (lane axis)

    btab = bias_ref[...]          # (Cout, 4) f32 packed biases
    b1 = btab[:cm, 0:1]
    b2 = btab[:cm, 1:2]
    b3 = btab[:, 2:3]

    # ---- conv1 (1x1) [+ fused 1x1-conv shortcut]; BN scales already folded --
    if has_downsample:
        x = x_ref[0]                                          # bf16 (Cin, HW)
        ycat = jnp.dot(wa_ref[...], x, preferred_element_type=jnp.float32)
        y1 = jnp.maximum(ycat[:cm] + b1, 0.0)                 # bn1 bias + relu
        ds = ycat[cm:] + btab[:, 3:4]                         # bn_ds bias
    else:
        x = x_ref[0]                                          # full-precision
        y1 = jnp.dot(wa_ref[...], x.astype(jnp.bfloat16),
                     preferred_element_type=jnp.float32)
        y1 = jnp.maximum(y1 + b1, 0.0)
        ds = x                                                # identity shortcut

    # ---- conv2 (3x3, dilation=d, padding=d, stride=1) -> bn2 bias -> relu ---
    # 9 taps: roll the activation plane along the flattened-spatial lane axis
    # (XLU), zero the wrapped border with a precomputed mask (VPU), stack all
    # taps into one (9*Cm, HW) bf16 buffer and do a single stacked-K matmul.
    masks = mask_ref[...]                  # bf16 on v6e/v7x, f32 on older chips
    y1c = y1.astype(masks.dtype)           # cast once before the tap loop
    for k in range(9):
        off = (k // 3 - 1) * dilation * img_w + (k % 3 - 1) * dilation
        shifted = y1c if off == 0 else pltpu.roll(y1c, (-off) % hw, axis=1)
        stk_ref[k * cm:(k + 1) * cm, :] = (
            shifted * masks[k:k + 1, :]).astype(jnp.bfloat16)
    y2 = jnp.dot(w2_ref[...], stk_ref[...], preferred_element_type=jnp.float32)
    y2 = jnp.maximum(y2 + b2, 0.0)

    # ---- conv3 (1x1) -> bn3 bias -> residual add -> relu ----
    y3 = jnp.dot(w3_ref[...], y2.astype(jnp.bfloat16),
                 preferred_element_type=jnp.float32)
    out_ref[0] = jnp.maximum(y3 + b3 + ds, 0.0).astype(out_ref.dtype)


def _fold_bn(gamma, beta, mean, var, eps):
    inv = (gamma / jnp.sqrt(var + eps)).astype(jnp.float32)
    return inv, (beta - mean * inv).astype(jnp.float32)


def _elementwise_dtype():
    # bf16 rolls/masks only where the VPU natively supports bf16 (v6e / v7x);
    # keep f32 elementwise math elsewhere (e.g. v5e) to avoid convert pairs.
    try:
        kind = jax.devices()[0].device_kind.lower()
    except Exception:
        kind = ""
    return jnp.bfloat16 if ("v6" in kind or "v7" in kind) else jnp.float32


def bottleneck_dilate_pallas(x, w1, bn1, w2, bn2, w3, bn3, downsample=None,
                             stride=1, dilation=1, eps=1e-5, out_dtype=None):
    """x: (N, Cin, H, W) NCHW.  bn* = (gamma, beta, running_mean, running_var)
    (eval-mode BN).  downsample = (w, gamma, beta, mean, var) for the conv+BN
    shortcut, or None for the identity shortcut."""
    # TODO(synk): stride > 1 (strided conv2 / strided shortcut) not implemented.
    assert stride == 1, "only stride=1 is implemented in the Pallas kernel"
    N, Cin, H, W = x.shape
    Cm = w1.shape[0]
    Cout = w3.shape[0]
    HW = H * W
    has_ds = downsample is not None
    if not has_ds:
        assert Cin == Cout, ("identity shortcut requires in_channels == "
                             "out_channels (the module would use a conv shortcut)")
    if out_dtype is None:
        out_dtype = x.dtype

    # --- fold BN scales into the conv weights; only biases remain ---
    s1, b1 = _fold_bn(*bn1, eps)
    s2, b2 = _fold_bn(*bn2, eps)
    s3, b3 = _fold_bn(*bn3, eps)
    w1f = (w1[:, :, 0, 0] * s1[:, None]).astype(jnp.bfloat16)             # (Cm, Cin)
    # stacked-K layout: (Cm, 9*Cm); block k holds w2[:, :, ky, kx], k = 3*ky + kx
    w2f = (jnp.transpose(w2, (0, 2, 3, 1)).reshape(Cm, 9 * Cm)
           * s2[:, None]).astype(jnp.bfloat16)
    w3f = (w3[:, :, 0, 0] * s3[:, None]).astype(jnp.bfloat16)             # (Cout, Cm)

    if has_ds:
        wds, gds, beds, mds, vds = downsample
        sds, bds = _fold_bn(gds, beds, mds, vds, eps)
        wdsf = (wds[:, :, 0, 0] * sds[:, None]).astype(jnp.bfloat16)      # (Cout, Cin)
        # conv1 and the 1x1 shortcut share the same K=Cin RHS -> one matmul.
        wa = jnp.concatenate([w1f, wdsf], axis=0)                         # (Cm+Cout, Cin)
        x_in = x.reshape(N, Cin, HW).astype(jnp.bfloat16)   # x only feeds matmuls
    else:
        bds = jnp.zeros((Cout,), jnp.float32)
        wa = w1f
        x_in = x.reshape(N, Cin, HW)                        # full-precision residual

    # Packed per-channel biases -> one lane-dense (Cout, 4) table.
    def _pad(v):
        return jnp.pad(v, (0, Cout - v.shape[0]))
    bias_tab = jnp.stack([_pad(b1), _pad(b2), b3, bds], axis=1).astype(jnp.float32)

    # Per-tap border masks for the zero-padded dilated conv (flattened spatial).
    hh, ww = np.divmod(np.arange(HW), W)
    masks_np = np.empty((9, HW), np.float32)
    for k in range(9):
        oh = (k // 3 - 1) * dilation
        ow = (k % 3 - 1) * dilation
        valid = ((hh + oh >= 0) & (hh + oh < H) &
                 (ww + ow >= 0) & (ww + ow < W))
        masks_np[k] = valid.astype(np.float32)
    masks = jnp.asarray(masks_np, dtype=_elementwise_dtype())

    wa_rows = wa.shape[0]
    in_specs = [
        pl.BlockSpec((1, Cin, HW), lambda n: (n, 0, 0)),
        pl.BlockSpec((9, HW), lambda n: (0, 0)),
        pl.BlockSpec((wa_rows, Cin), lambda n: (0, 0)),
        pl.BlockSpec((Cm, 9 * Cm), lambda n: (0, 0)),
        pl.BlockSpec((Cout, Cm), lambda n: (0, 0)),
        pl.BlockSpec((Cout, 4), lambda n: (0, 0)),
    ]

    kernel = functools.partial(bottleneck_kernel, img_w=W, dilation=dilation,
                               has_downsample=has_ds)

    # TODO(synk): for v7x-sized layers (large Cout*HW) add a second grid axis
    # tiling Cout for conv3/residual/writeback, with y2 cached in VMEM scratch.
    out_flat = pl.pallas_call(
        kernel,
        out_shape=jax.ShapeDtypeStruct((N, Cout, HW), out_dtype),
        grid_spec=pltpu.PrefetchScalarGridSpec(
            num_scalar_prefetch=0,
            grid=(N,),
            in_specs=in_specs,
            out_specs=pl.BlockSpec((1, Cout, HW), lambda n: (n, 0, 0)),
            # stacked-taps buffer feeding the single big conv2 matmul
            scratch_shapes=[pltpu.VMEM((9 * Cm, HW), jnp.bfloat16)],
        ),
        compiler_params=pltpu.CompilerParams(
            # batch elements are independent -> usable by both v7x TensorCores
            dimension_semantics=("parallel",),
            # honest footprint ~6 MiB at these shapes; 16 MiB leaves headroom
            vmem_limit_bytes=16 * 1024 * 1024,
        ),
    )(x_in, masks, wa, w2f, w3f, bias_tab)

    return out_flat.reshape(N, Cout, H, W)


def bottleneck_dilate_ref(x, w1, bn1, w2, bn2, w3, bn3, downsample=None,
                          stride=1, dilation=1, eps=1e-5):
    """Pure-JAX reference (NCHW, eval-mode BN), mirrors the PyTorch forward."""
    dn = ('NCHW', 'OIHW', 'NCHW')
    hp = lax.Precision.HIGHEST

    def bn(y, p):
        g, b, m, v = p
        inv = g / jnp.sqrt(v + eps)
        return y * inv[None, :, None, None] + (b - m * inv)[None, :, None, None]

    y = jnp.maximum(bn(lax.conv_general_dilated(
        x, w1, (1, 1), 'VALID', dimension_numbers=dn, precision=hp), bn1), 0.0)
    y = jnp.maximum(bn(lax.conv_general_dilated(
        y, w2, (stride, stride), ((dilation, dilation), (dilation, dilation)),
        rhs_dilation=(dilation, dilation), dimension_numbers=dn,
        precision=hp), bn2), 0.0)
    y = bn(lax.conv_general_dilated(
        y, w3, (1, 1), 'VALID', dimension_numbers=dn, precision=hp), bn3)
    if downsample is None:
        sc = x
    else:
        wds, gds, beds, mds, vds = downsample
        sc = bn(lax.conv_general_dilated(
            x, wds, (stride, stride), 'VALID', dimension_numbers=dn,
            precision=hp), (gds, beds, mds, vds))
    return jnp.maximum(y + sc, 0.0)


if __name__ == "__main__":
    # TODO(synk): PyTorch BatchNorm2d in train() mode uses batch statistics;
    # this implements the eval-mode (running-stats) forward only.

    def make_bn(k, c):
        k1, k2, k3, k4 = jax.random.split(k, 4)
        gamma = 1.0 + 0.1 * jax.random.normal(k1, (c,), jnp.float32)
        beta = 0.1 * jax.random.normal(k2, (c,), jnp.float32)
        mean = 0.05 * jax.random.normal(k3, (c,), jnp.float32)
        var = 1.0 + 0.1 * jnp.abs(jax.random.normal(k4, (c,), jnp.float32))
        return gamma, beta, mean, var

    def run_case(key, N, Cin, channels, H, W, dilation, with_downsample):
        Cout = 4 * channels
        keys = jax.random.split(key, 9)
        x = jax.random.normal(keys[0], (N, Cin, H, W), jnp.float32)
        w1 = jax.random.normal(keys[1], (channels, Cin, 1, 1), jnp.float32) / math.sqrt(Cin)
        w2 = jax.random.normal(keys[2], (channels, channels, 3, 3), jnp.float32) / math.sqrt(9 * channels)
        w3 = jax.random.normal(keys[3], (Cout, channels, 1, 1), jnp.float32) / math.sqrt(channels)
        bn1 = make_bn(keys[4], channels)
        bn2 = make_bn(keys[5], channels)
        bn3 = make_bn(keys[6], Cout)
        if with_downsample:
            wds = jax.random.normal(keys[7], (Cout, Cin, 1, 1), jnp.float32) / math.sqrt(Cin)
            downsample = (wds,) + make_bn(keys[8], Cout)
        else:
            downsample = None
        out = jax.block_until_ready(bottleneck_dilate_pallas(
            x, w1, bn1, w2, bn2, w3, bn3, downsample, stride=1, dilation=dilation))
        ref = jax.block_until_ready(bottleneck_dilate_ref(
            x, w1, bn1, w2, bn2, w3, bn3, downsample, stride=1, dilation=dilation))
        assert out.shape == (N, Cout, H, W), out.shape
        if not np.allclose(np.asarray(out), np.asarray(ref), atol=5e-2, rtol=5e-2):
            raise AssertionError(
                f"mismatch (downsample={with_downsample}): max abs err "
                f"{np.max(np.abs(np.asarray(out) - np.asarray(ref)))}")

    root = jax.random.PRNGKey(0)
    ka, kb = jax.random.split(root)
    # conv+BN shortcut (in_channels != out_channels), dilation=2
    run_case(ka, N=2, Cin=64, channels=128, H=16, W=16, dilation=2, with_downsample=True)
    # identity shortcut (in_channels == out_channels), dilation=2
    run_case(kb, N=1, Cin=128, channels=32, H=16, W=16, dilation=2, with_downsample=False)
    print("KERNEL_OK")
</pallas_src>

<mosaic_0001>
module attributes {stable_mosaic.version = 11 : i64} {
  func.func @bottleneck_kernel(%arg0: i32, %arg1: memref<1x64x256xbf16, #tpu.memory_space<vmem>>, %arg2: memref<9x256xf32, #tpu.memory_space<vmem>>, %arg3: memref<640x64xbf16, #tpu.memory_space<vmem>>, %arg4: memref<128x1152xbf16, #tpu.memory_space<vmem>>, %arg5: memref<512x128xbf16, #tpu.memory_space<vmem>>, %arg6: memref<512x4xf32, #tpu.memory_space<vmem>>, %arg7: memref<1x512x256xf32, #tpu.memory_space<vmem>>, %arg8: memref<1152x256xbf16, #tpu.memory_space<vmem>>) attributes {dimension_semantics = [#tpu.dimension_semantics<parallel>], iteration_bounds = array<i64: 2>, scalar_prefetch = 0 : i64, scratch_operands = 1 : i64, tpu.core_type = #tpu.core_type<tc>, window_params = [{transform_indices = @transform_0, window_bounds = array<i64: 1, 64, 256>}, {pipeline_mode = #tpu.pipeline_mode<synchronous>, transform_indices = @transform_1, window_bounds = array<i64: 9, 256>}, {pipeline_mode = #tpu.pipeline_mode<synchronous>, transform_indices = @transform_2, window_bounds = array<i64: 640, 64>}, {pipeline_mode = #tpu.pipeline_mode<synchronous>, transform_indices = @transform_3, window_bounds = array<i64: 128, 1152>}, {pipeline_mode = #tpu.pipeline_mode<synchronous>, transform_indices = @transform_4, window_bounds = array<i64: 512, 128>}, {pipeline_mode = #tpu.pipeline_mode<synchronous>, transform_indices = @transform_5, window_bounds = array<i64: 512, 4>}, {transform_indices = @transform_6, window_bounds = array<i64: 1, 512, 256>}]} {
    %c0 = arith.constant 0 : index
    %c0_0 = arith.constant 0 : index
    %0 = vector.load %arg6[%c0, %c0_0] : memref<512x4xf32, #tpu.memory_space<vmem>>, vector<512x4xf32>
    %1 = vector.extract_strided_slice %0 {offsets = [0, 0], sizes = [128, 1], strides = [1, 1]} : vector<512x4xf32> to vector<128x1xf32>
    %2 = vector.extract_strided_slice %0 {offsets = [0, 1], sizes = [128, 1], strides = [1, 1]} : vector<512x4xf32> to vector<128x1xf32>
    %3 = vector.extract_strided_slice %0 {offsets = [0, 2], sizes = [512, 1], strides = [1, 1]} : vector<512x4xf32> to vector<512x1xf32>
    %c0_1 = arith.constant 0 : index
    %c0_2 = arith.constant 0 : index
    %c0_3 = arith.constant 0 : index
    %4 = vector.load %arg1[%c0_1, %c0_2, %c0_3] : memref<1x64x256xbf16, #tpu.memory_space<vmem>>, vector<1x64x256xbf16>
    %5 = vector.shape_cast %4 : vector<1x64x256xbf16> to vector<64x256xbf16>
    %c0_4 = arith.constant 0 : index
    %c0_5 = arith.constant 0 : index
    %6 = vector.load %arg3[%c0_4, %c0_5] : memref<640x64xbf16, #tpu.memory_space<vmem>>, vector<640x64xbf16>
    %cst = arith.constant dense<0.000000e+00> : vector<640x256xf32>
    %7 = tpu.matmul %6, %5, %cst {dimension_numbers = #tpu.dot_dimension_numbers<[1], [0], [0], [1], [0, 0, 1, 1], [], []>} : vector<640x64xbf16>, vector<64x256xbf16>, vector<640x256xf32> -> vector<640x256xf32>
    %8 = vector.extract_strided_slice %7 {offsets = [0, 0], sizes = [128, 256], strides = [1, 1]} : vector<640x256xf32> to vector<128x256xf32>
    %9 = vector.broadcast %1 : vector<128x1xf32> to vector<128x256xf32>
    %10 = arith.addf %8, %9 : vector<128x256xf32>
    %cst_6 = arith.constant 0.000000e+00 : f32
    %11 = vector.broadcast %cst_6 : f32 to vector<128x256xf32>
    %12 = arith.maximumf %10, %11 : vector<128x256xf32>
    %13 = vector.extract_strided_slice %7 {offsets = [128, 0], sizes = [512, 256], strides = [1, 1]} : vector<640x256xf32> to vector<512x256xf32>
    %14 = vector.extract_strided_slice %0 {offsets = [0, 3], sizes = [512, 1], strides = [1, 1]} : vector<512x4xf32> to vector<512x1xf32>
    %15 = vector.broadcast %14 : vector<512x1xf32> to vector<512x256xf32>
    %16 = arith.addf %13, %15 : vector<512x256xf32>
    %c0_7 = arith.constant 0 : index
    %c0_8 = arith.constant 0 : index
    %17 = vector.load %arg2[%c0_7, %c0_8] : memref<9x256xf32, #tpu.memory_space<vmem>>, vector<9x256xf32>
    %c34_i32 = arith.constant 34 : i32
    %18 = tpu.dynamic_rotate %12 by %c34_i32 dim 1 : vector<128x256xf32>, i32 -> vector<128x256xf32>
    %19 = vector.extract_strided_slice %17 {offsets = [0, 0], sizes = [1, 256], strides = [1, 1]} : vector<9x256xf32> to vector<1x256xf32>
    %20 = vector.broadcast %19 : vector<1x256xf32> to vector<128x256xf32>
    %21 = arith.mulf %18, %20 : vector<128x256xf32>
    %22 = arith.truncf %21 : vector<128x256xf32> to vector<128x256xbf16>
    %c0_9 = arith.constant 0 : index
    %c0_10 = arith.constant 0 : index
    %23 = vector.load %arg8[%c0_9, %c0_10] : memref<1152x256xbf16, #tpu.memory_space<vmem>>, vector<128x256xbf16>
    tpu.vector_store %arg8[%c0_9, %c0_10], %22 {strides = array<i32>} : memref<1152x256xbf16, #tpu.memory_space<vmem>>, vector<128x256xbf16>,
    %c32_i32 = arith.constant 32 : i32
    %24 = tpu.dynamic_rotate %12 by %c32_i32 dim 1 : vector<128x256xf32>, i32 -> vector<128x256xf32>
    %25 = vector.extract_strided_slice %17 {offsets = [1, 0], sizes = [1, 256], strides = [1, 1]} : vector<9x256xf32> to vector<1x256xf32>
    %26 = vector.broadcast %25 : vector<1x256xf32> to vector<128x256xf32>
    %27 = arith.mulf %24, %26 : vector<128x256xf32>
    %28 = arith.truncf %27 : vector<128x256xf32> to vector<128x256xbf16>
    %c128 = arith.constant 128 : index
    %c0_11 = arith.constant 0 : index
    %29 = vector.load %arg8[%c128, %c0_11] : memref<1152x256xbf16, #tpu.memory_space<vmem>>, vector<128x256xbf16>
    tpu.vector_store %arg8[%c128, %c0_11], %28 {strides = array<i32>} : memref<1152x256xbf16, #tpu.memory_space<vmem>>, vector<128x256xbf16>,
    %c30_i32 = arith.constant 30 : i32
    %30 = tpu.dynamic_rotate %12 by %c30_i32 dim 1 : vector<128x256xf32>, i32 -> vector<128x256xf32>
    %31 = vector.extract_strided_slice %17 {offsets = [2, 0], sizes = [1, 256], strides = [1, 1]} : vector<9x256xf32> to vector<1x256xf32>
    %32 = vector.broadcast %31 : vector<1x256xf32> to vector<128x256xf32>
    %33 = arith.mulf %30, %32 : vector<128x256xf32>
    %34 = arith.truncf %33 : vector<128x256xf32> to vector<128x256xbf16>
    %c256 = arith.constant 256 : index
    %c0_12 = arith.constant 0 : index
    %35 = vector.load %arg8[%c256, %c0_12] : memref<1152x256xbf16, #tpu.memory_space<vmem>>, vector<128x256xbf16>
    tpu.vector_store %arg8[%c256, %c0_12], %34 {strides = array<i32>} : memref<1152x256xbf16, #tpu.memory_space<vmem>>, vector<128x256xbf16>,
    %c2_i32 = arith.constant 2 : i32
    %36 = tpu.dynamic_rotate %12 by %c2_i32 dim 1 : vector<128x256xf32>, i32 -> vector<128x256xf32>
    %37 = vector.extract_strided_slice %17 {offsets = [3, 0], sizes = [1, 256], strides = [1, 1]} : vector<9x256xf32> to vector<1x256xf32>
    %38 = vector.broadcast %37 : vector<1x256xf32> to vector<128x256xf32>
    %39 = arith.mulf %36, %38 : vector<128x256xf32>
    %40 = arith.truncf %39 : vector<128x256xf32> to vector<128x256xbf16>
    %c384 = arith.constant 384 : index
    %c0_13 = arith.constant 0 : index
    %41 = vector.load %arg8[%c384, %c0_13] : memref<1152x256xbf16, #tpu.memory_space<vmem>>, vector<128x256xbf16>
    tpu.vector_store %arg8[%c384, %c0_13], %40 {strides = array<i32>} : memref<1152x256xbf16, #tpu.memory_space<vmem>>, vector<128x256xbf16>,
    %42 = vector.extract_strided_slice %17 {offsets = [4, 0], sizes = [1, 256], strides = [1, 1]} : vector<9x256xf32> to vector<1x256xf32>
    %43 = vector.broadcast %42 : vector<1x256xf32> to vector<128x256xf32>
    %44 = arith.mulf %12, %43 : vector<128x256xf32>
    %45 = arith.truncf %44 : vector<128x256xf32> to vector<128x256xbf16>
    %c512 = arith.constant 512 : index
    %c0_14 = arith.constant 0 : index
    %46 = vector.load %arg8[%c512, %c0_14] : memref<1152x256xbf16, #tpu.memory_space<vmem>>, vector<128x256xbf16>
    tpu.vector_store %arg8[%c512, %c0_14], %45 {strides = array<i32>} : memref<1152x256xbf16, #tpu.memory_space<vmem>>, vector<128x256xbf16>,
    %c254_i32 = arith.constant 254 : i32
    %47 = tpu.dynamic_rotate %12 by %c254_i32 dim 1 : vector<128x256xf32>, i32 -> vector<128x256xf32>
    %48 = vector.extract_strided_slice %17 {offsets = [5, 0], sizes = [1, 256], strides = [1, 1]} : vector<9x256xf32> to vector<1x256xf32>
    %49 = vector.broadcast %48 : vector<1x256xf32> to vector<128x256xf32>
    %50 = arith.mulf %47, %49 : vector<128x256xf32>
    %51 = arith.truncf %50 : vector<128x256xf32> to vector<128x256xbf16>
    %c640 = arith.constant 640 : index
    %c0_15 = arith.constant 0 : index
    %52 = vector.load %arg8[%c640, %c0_15] : memref<1152x256xbf16, #tpu.memory_space<vmem>>, vector<128x256xbf16>
    tpu.vector_store %arg8[%c640, %c0_15], %51 {strides = array<i32>} : memref<1152x256xbf16, #tpu.memory_space<vmem>>, vector<128x256xbf16>,
    %c226_i32 = arith.constant 226 : i32
    %53 = tpu.dynamic_rotate %12 by %c226_i32 dim 1 : vector<128x256xf32>, i32 -> vector<128x256xf32>
    %54 = vector.extract_strided_slice %17 {offsets = [6, 0], sizes = [1, 256], strides = [1, 1]} : vector<9x256xf32> to vector<1x256xf32>
    %55 = vector.broadcast %54 : vector<1x256xf32> to vector<128x256xf32>
    %56 = arith.mulf %53, %55 : vector<128x256xf32>
    %57 = arith.truncf %56 : vector<128x256xf32> to vector<128x256xbf16>
    %c768 = arith.constant 768 : index
    %c0_16 = arith.constant 0 : index
    %58 = vector.load %arg8[%c768, %c0_16] : memref<1152x256xbf16, #tpu.memory_space<vmem>>, vector<128x256xbf16>
    tpu.vector_store %arg8[%c768, %c0_16], %57 {strides = array<i32>} : memref<1152x256xbf16, #tpu.memory_space<vmem>>, vector<128x256xbf16>,
    %c224_i32 = arith.constant 224 : i32
    %59 = tpu.dynamic_rotate %12 by %c224_i32 dim 1 : vector<128x256xf32>, i32 -> vector<128x256xf32>
    %60 = vector.extract_strided_slice %17 {offsets = [7, 0], sizes = [1, 256], strides = [1, 1]} : vector<9x256xf32> to vector<1x256xf32>
    %61 = vector.broadcast %60 : vector<1x256xf32> to vector<128x256xf32>
    %62 = arith.mulf %59, %61 : vector<128x256xf32>
    %63 = arith.truncf %62 : vector<128x256xf32> to vector<128x256xbf16>
    %c896 = arith.constant 896 : index
    %c0_17 = arith.constant 0 : index
    %64 = vector.load %arg8[%c896, %c0_17] : memref<1152x256xbf16, #tpu.memory_space<vmem>>, vector<128x256xbf16>
    tpu.vector_store %arg8[%c896, %c0_17], %63 {strides = array<i32>} : memref<1152x256xbf16, #tpu.memory_space<vmem>>, vector<128x256xbf16>,
    %c222_i32 = arith.constant 222 : i32
    %65 = tpu.dynamic_rotate %12 by %c222_i32 dim 1 : vector<128x256xf32>, i32 -> vector<128x256xf32>
    %66 = vector.extract_strided_slice %17 {offsets = [8, 0], sizes = [1, 256], strides = [1, 1]} : vector<9x256xf32> to vector<1x256xf32>
    %67 = vector.broadcast %66 : vector<1x256xf32> to vector<128x256xf32>
    %68 = arith.mulf %65, %67 : vector<128x256xf32>
    %69 = arith.truncf %68 : vector<128x256xf32> to vector<128x256xbf16>
    %c1024 = arith.constant 1024 : index
    %c0_18 = arith.constant 0 : index
    %70 = vector.load %arg8[%c1024, %c0_18] : memref<1152x256xbf16, #tpu.memory_space<vmem>>, vector<128x256xbf16>
    tpu.vector_store %arg8[%c1024, %c0_18], %69 {strides = array<i32>} : memref<1152x256xbf16, #tpu.memory_space<vmem>>, vector<128x256xbf16>,
    %c0_19 = arith.constant 0 : index
    %c0_20 = arith.constant 0 : index
    %71 = vector.load %arg4[%c0_19, %c0_20] : memref<128x1152xbf16, #tpu.memory_space<vmem>>, vector<128x1152xbf16>
    %c0_21 = arith.constant 0 : index
    %c0_22 = arith.constant 0 : index
    %72 = vector.load %arg8[%c0_21, %c0_22] : memref<1152x256xbf16, #tpu.memory_space<vmem>>, vector<1152x256xbf16>
    %cst_23 = arith.constant dense<0.000000e+00> : vector<128x256xf32>
    %73 = tpu.matmul %71, %72, %cst_23 {dimension_numbers = #tpu.dot_dimension_numbers<[1], [0], [0], [1], [0, 0, 1, 1], [], []>} : vector<128x1152xbf16>, vector<1152x256xbf16>, vector<128x256xf32> -> vector<128x256xf32>
    %74 = vector.broadcast %2 : vector<128x1xf32> to vector<128x256xf32>
    %75 = arith.addf %73, %74 : vector<128x256xf32>
    %cst_24 = arith.constant 0.000000e+00 : f32
    %76 = vector.broadcast %cst_24 : f32 to vector<128x256xf32>
    %77 = arith.maximumf %75, %76 : vector<128x256xf32>
    %c0_25 = arith.constant 0 : index
    %c0_26 = arith.constant 0 : index
    %78 = vector.load %arg5[%c0_25, %c0_26] : memref<512x128xbf16, #tpu.memory_space<vmem>>, vector<512x128xbf16>
    %79 = arith.truncf %77 : vector<128x256xf32> to vector<128x256xbf16>
    %cst_27 = arith.constant dense<0.000000e+00> : vector<512x256xf32>
    %80 = tpu.matmul %78, %79, %cst_27 {dimension_numbers = #tpu.dot_dimension_numbers<[1], [0], [0], [1], [0, 0, 1, 1], [], []>} : vector<512x128xbf16>, vector<128x256xbf16>, vector<512x256xf32> -> vector<512x256xf32>
    %81 = vector.broadcast %3 : vector<512x1xf32> to vector<512x256xf32>
    %82 = arith.addf %80, %81 : vector<512x256xf32>
    %83 = arith.addf %82, %16 : vector<512x256xf32>
    %cst_28 = arith.constant 0.000000e+00 : f32
    %84 = vector.broadcast %cst_28 : f32 to vector<512x256xf32>
    %85 = arith.maximumf %83, %84 : vector<512x256xf32>
    %c0_29 = arith.constant 0 : index
    %c0_30 = arith.constant 0 : index
    %c0_31 = arith.constant 0 : index
    %86 = vector.load %arg7[%c0_29, %c0_30, %c0_31] : memref<1x512x256xf32, #tpu.memory_space<vmem>>, vector<1x512x256xf32>
    %87 = vector.shape_cast %86 : vector<1x512x256xf32> to vector<512x256xf32>
    %88 = vector.shape_cast %85 : vector<512x256xf32> to vector<1x512x256xf32>
    tpu.vector_store %arg7[%c0_29, %c0_30, %c0_31], %88 {strides = array<i32>} : memref<1x512x256xf32, #tpu.memory_space<vmem>>, vector<1x512x256xf32>,
    return
  }
  func.func @transform_0(%arg0: i32) -> (i32, i32, i32) {
    %c0_i32 = arith.constant 0 : i32
    %c0_i32_0 = arith.constant 0 : i32
    %c0_i32_1 = arith.constant 0 : i32
    return %arg0, %c0_i32, %c0_i32_0 : i32, i32, i32
  }
  func.func @transform_1(%arg0: i32) -> (i32, i32) {
    %c0_i32 = arith.constant 0 : i32
    %c0_i32_0 = arith.constant 0 : i32
    %c0_i32_1 = arith.constant 0 : i32
    return %c0_i32, %c0_i32_0 : i32, i32
  }
  func.func @transform_2(%arg0: i32) -> (i32, i32) {
    %c0_i32 = arith.constant 0 : i32
    %c0_i32_0 = arith.constant 0 : i32
    %c0_i32_1 = arith.constant 0 : i32
    return %c0_i32, %c0_i32_0 : i32, i32
  }
  func.func @transform_3(%arg0: i32) -> (i32, i32) {
    %c0_i32 = arith.constant 0 : i32
    %c0_i32_0 = arith.constant 0 : i32
    %c0_i32_1 = arith.constant 0 : i32
    return %c0_i32, %c0_i32_0 : i32, i32
  }
  func.func @transform_4(%arg0: i32) -> (i32, i32) {
    %c0_i32 = arith.constant 0 : i32
    %c0_i32_0 = arith.constant 0 : i32
    %c0_i32_1 = arith.constant 0 : i32
    return %c0_i32, %c0_i32_0 : i32, i32
  }
  func.func @transform_5(%arg0: i32) -> (i32, i32) {
    %c0_i32 = arith.constant 0 : i32
    %c0_i32_0 = arith.constant 0 : i32
    %c0_i32_1 = arith.constant 0 : i32
    return %c0_i32, %c0_i32_0 : i32, i32
  }
  func.func @transform_6(%arg0: i32) -> (i32, i32, i32) {
    %c0_i32 = arith.constant 0 : i32
    %c0_i32_0 = arith.constant 0 : i32
    %c0_i32_1 = arith.constant 0 : i32
    return %arg0, %c0_i32, %c0_i32_0 : i32, i32, i32
  }
}

</mosaic_0001>

<bundles_post_ra>
// kernel: tpu_custom_call.1
= control target key start
LH: loop header
LB: loop body
LE: loop exit
PB: predicated region body
PF: predicated region fallthrough
CT: control target
= control target key end

     0   :  { %11 = vsyncpa [#allocation4], 0  ;;  %s11138_s0 = inlined_call_operand.vmem [shape: bf16[2,64,256], index: 0, kind: input, shape index: {}]   ;;  %s11139_s1 = inlined_call_operand.vmem [shape: f32[9,256], index: 1, kind: input, shape index: {}]   ;;  %s11140_s2 = inlined_call_operand.vmem [shape: bf16[640,64], index: 2, kind: input, shape index: {}]   ;;  %s11141_s3 = inlined_call_operand.vmem [shape: bf16[128,1152], index: 3, kind: input, shape index: {}]   ;;  %s11142_s4 = inlined_call_operand.vmem [shape: bf16[512,128], index: 4, kind: input, shape index: {}]   ;;  %s11143_s5 = inlined_call_operand.vmem [shape: f32[512,4], index: 5, kind: input, shape index: {}]   ;;  %s11144_s6 = inlined_call_operand.hbm [shape: f32[2,512,256], index: 6, kind: output, shape index: {}]  }
   0x1   :  { %13 = vsyncpa [#allocation4 + $0x1], 0  ;;  %s6946_s21 = smov 0   ;;  %s6948_s22 = smov 0  }
   0x2   :  { %s6950_s23 = smov 0   ;;  %s6952_s24 = smov 0  }
   0x3 LB: > { %s6967_s25 = sadd.s32 4294967295, %s6894_s24   ;;  %s5797_s26 = sadd.s32 4294967294, %s6894_s24   ;;  %s6894_s24 = sphi %s6952_s24, %s11797_s24   ;;  %s6890_s23 = sphi %s6950_s23, %s11796_s23   ;;  %s6886_s22 = sphi %s6948_s22, %s11795_s22   ;;  %s6882_s21 = sphi %s6946_s21, %s11794_s21  }
   0x4   : > { %s6971_s27 = sadd.s32 1, %s6894_s24   ;;  %s157_s28 = sadd.s32 1, %s6890_s23 }
   0x5   : > { %s154_s29 = ssub.s32 %s6894_s24, %s6971_s27  ;;  %p167_p0 = scmp.ne.s32.totalorder %s6890_s23, %s6886_s22 }
   0x6   : > { %p155_p1 = scmp.eq.s32.totalorder %s154_s29, 0  ;;  %p168_p2 = scmp.eq.s32.totalorder %s6967_s25, 1 }
   0x7   : > { %p173_p3 = scmp.ne.s32.totalorder %s6886_s22, %s6882_s21  ;;  %p174_p4 = scmp.eq.s32.totalorder %s5797_s26, 1 }
   0x8   : > { %s6982_s30 = scalar_select %p155_p1, %s6890_s23, %s157_s28  }
   0x9   : > { %p6984_p5 = por %p168_p2, %p167_p0  ;;  %p6988_p6 = por %p174_p4, %p173_p3 }
   0xa   : > { %p5800_p7 = scmp.ge.s32.totalorder %s6894_s24, 1  ;;  %p215_p8 = scmp.lt.s32.totalorder %s6894_s24, 3 }
   0xc   : > { %p216_p9 = pnand %p5800_p7, %p215_p8 }
   0xe   : > { %219 = sbr.rel (%p216_p9) target bundleno = 1657 (0x679), region = 44 }
  0x15   : > { %p245_p10 = scmp.lt.s32.totalorder %s6967_s25, 1  ;;  %v11145_v0 = vmov 0   ;;  %v251_v6 = vld [vmem:[%s11143_s5] sm:$0xff]  ;;  %v252_v9 = vld [vmem:[%s11143_s5 + $0x8] sm:$0xff]  ;;  %v253_v10 = vld [vmem:[%s11143_s5 + $0x10] sm:$0xff]  ;;  %vm643_vm0 = vcmask 523264  }
  0x16   : > { %796 = vmatprep.mubr.bf16.mxu0 %v11145_v0  ;;  %6610 = vset.pattern.permute.xlu0 %v11145_v0  ;;  %v6631_v12 = vld [vmem:[%s11140_s2] sm:$0xff]   ;;  %v254_v14 = vld [vmem:[%s11143_s5 + $0x18] sm:$0xff]  ;;  %v257_v15 = vld [vmem:[%s11143_s5 + $0x30] sm:$0xff]  ;;  %s6897_s17 = smov 34   ;;  %s6898_s18 = smov 32  }
  0x17   : > { %s246_s9 = scalar_select %p245_p10, %s6967_s25, 1  ;;  %6611 = vset.pattern.permute.xlu1 %v11145_v0  ;;  %1036 = vmatprep.mubr.bf16.mxu1 %v11145_v0  ;;  %v255_v13 = vld [vmem:[%s11143_s5 + $0x20] sm:$0xff]  ;;  %v256_v16 = vld [vmem:[%s11143_s5 + $0x28] sm:$0xff]  ;;  %v258_v18 = vld [vmem:[%s11143_s5 + $0x38] sm:$0xff] }
  0x18   : > { %1199 = vperm.xlu0 %6610, %v251_v6   ;;  %1209 = vperm.xlu1 %6611, %v253_v10   ;;  %v259_v17 = vld [vmem:[%s11143_s5 + $0x40] sm:$0xff]  ;;  %v6632_v19 = vld [vmem:[%s11140_s2 + $0x8] sm:$0xff]   ;;  %v261_v20 = vld [vmem:[%s11143_s5 + $0x50] sm:$0xff]  ;;  %s6899_s19 = smov 30   ;;  %s6900_s28 = smov 2  }
  0x19   : > { %s6003_s10 = sshll.u32 %s246_s9, 6  ;;  %v260_v21 = vld [vmem:[%s11143_s5 + $0x48] sm:$0xff]  ;;  %v263_v22 = vld [vmem:[%s11143_s5 + $0x60] sm:$0xff]  ;;  %v262_v23 = vld [vmem:[%s11143_s5 + $0x58] sm:$0xff]  ;;  %s6901_s29 = smov 126  }
  0x1a   : > { %s249_s13 = scalar_lea.vmem %s11138_s0, %s6003_s10  ;;  %v6633_v24 = vld [vmem:[%s11140_s2 + $0x10] sm:$0xff]   ;;  %v264_v26 = vld [vmem:[%s11143_s5 + $0x68] sm:$0xff]  ;;  %v266_v27 = vld [vmem:[%s11143_s5 + $0x78] sm:$0xff]  ;;  %s6903_s9 = smov 96  }
  0x1b   : > { %v6619_v1 = vld [vmem:[%s249_s13 + $0x4] ss:$8 sps:$4 sm:$0xff]   ;;  %v6621_v2 = vld [vmem:[%s249_s13] ss:$8 sps:$4 sm:$0xff]   ;;  %v6622_v3 = vld [vmem:[%s249_s13 + $0x14] ss:$8 sps:$4 sm:$0xff]  }
  0x1c   : > { %764 = vmatprep.subr.bf16.mxu0 %v6619_v1  ;;  %6005 = vmatprep.subr.bf16.mxu1 %v6619_v1  ;;  %v6624_v4 = vld [vmem:[%s249_s13 + $0x10] ss:$8 sps:$4 sm:$0xff]   ;;  %v6625_v5 = vld [vmem:[%s249_s13 + $0x24] ss:$8 sps:$4 sm:$0xff]   ;;  %v6627_v7 = vld [vmem:[%s249_s13 + $0x20] ss:$8 sps:$4 sm:$0xff]  }
  0x1d   : > { %765 = vmatpush1.bf16.msra.mxu0 %v6621_v2  ;;  %6009 = vmatpush1.bf16.msra.mxu1 %v6621_v2  ;;  %v6628_v8 = vld [vmem:[%s249_s13 + $0x34] ss:$8 sps:$4 sm:$0xff]   ;;  %v6630_v11 = vld [vmem:[%s249_s13 + $0x30] ss:$8 sps:$4 sm:$0xff]   ;;  %v6635_v29 = vld [vmem:[%s11140_s2 + $0x20] sm:$0xff]   ;;  %s6906_s11 = smov 94  }
  0x1e   : > { %766 = vmatprep.subr.bf16.mxu0 %v6622_v3  ;;  %6006 = vmatprep.subr.bf16.mxu1 %v6622_v3  ;;  %v265_v25 = vld [vmem:[%s11143_s5 + $0x70] sm:$0xff]  ;;  %v6634_v28 = vld [vmem:[%s11140_s2 + $0x18] sm:$0xff]   ;;  %v6636_v30 = vld [vmem:[%s11140_s2 + $0x28] sm:$0xff]   ;;  %s242_s16 = sand.u32 1, %s6886_s22   ;;  %s6004_s15 = sshll.u32 %s6967_s25, 14 }
  0x1f   : > { %1204 = vperm.xlu0 %6610, %v252_v9   ;;  %1214 = vperm.xlu1 %6611, %v254_v14   ;;  %v6637_v31 = vld [vmem:[%s11140_s2 + $0x30] sm:$0xff]   ;;  %v6638_v32 = vld [vmem:[%s11140_s2 + $0x38] sm:$0xff]   ;;  %v6639_v47 = vld [vmem:[%s11140_s2 + $0xc0] sm:$0xff]   ;;  %s5801_s20 = sshll.u32 %s242_s16, 10  ;;  %s11088_s26 = scalar_lea.hbm %s11144_s6, %s6004_s15 }
  0x20   : > { %s11097_s25 = scalar_lea.sflag [#allocation4], %s242_s16 }
  0x21   : > { %767 = vmatpush1.bf16.msra.mxu0 %v6624_v4  ;;  %6010 = vmatpush1.bf16.msra.mxu1 %v6624_v4 }
  0x22   : > { %768 = vmatprep.subr.bf16.mxu0 %v6625_v5  ;;  %6007 = vmatprep.subr.bf16.mxu1 %v6625_v5 }
  0x23   : > { %1219 = vperm.xlu0 %6610, %v255_v13   ;;  %1224 = vperm.xlu1 %6611, %v256_v16  }
  0x25   : > { %769 = vmatpush1.bf16.msra.mxu0 %v6627_v7  ;;  %6011 = vmatpush1.bf16.msra.mxu1 %v6627_v7 }
  0x26   : > { %770 = vmatprep.subr.bf16.mxu0 %v6628_v8  ;;  %6008 = vmatprep.subr.bf16.mxu1 %v6628_v8 }
  0x27   : > { %1229 = vperm.xlu0 %6610, %v257_v15   ;;  %1234 = vperm.xlu1 %6611, %v258_v18  }
  0x29   : > { %771 = vmatpush1.bf16.msra.mxu0 %v6630_v11  ;;  %6012 = vmatpush1.bf16.msra.mxu1 %v6630_v11 }
  0x2b   : > { %1239 = vperm.xlu0 %6610, %v259_v17   ;;  %1244 = vperm.xlu1 %6611, %v260_v21  }
  0x2c   : > { %5852 = vmatmul.mubr.msk.bf16.vlgmr.msra.gmra.mrb[0].mxu0 %vm643_vm0, %v6631_v12  ;;  %5876 = vmatmul.mubr.msk.bf16.vlgmr.msra.gmra.mrb[0].mxu1 %vm643_vm0, %v6639_v47 }
  0x2d   : > { %806 = vmatprep.mubr.bf16.mxu0 %v11145_v0  ;;  %1046 = vmatprep.mubr.bf16.mxu1 %v11145_v0 }
  0x2f   : > { %1249 = vperm.xlu0 %6610, %v261_v20   ;;  %1254 = vperm.xlu1 %6611, %v262_v23  }
  0x33   : > { %1259 = vperm.xlu0 %6610, %v263_v22   ;;  %1264 = vperm.xlu1 %6611, %v264_v26  }
  0x34   : > { %5853 = vmatmul.mubr.msk.bf16.gmra.mrb[4].mxu0 %vm643_vm0, %v6632_v19 }
  0x35   : > { %816 = vmatprep.mubr.bf16.mxu0 %v11145_v0 }
  0x37   : > { %1269 = vperm.xlu0 %6610, %v265_v25   ;;  %1274 = vperm.xlu1 %6611, %v266_v27  }
  0x3c   : > { %5854 = vmatmul.mubr.msk.bf16.gmra.mrb[8].mxu0 %vm643_vm0, %v6633_v24 }
  0x3d   : > { %826 = vmatprep.mubr.bf16.mxu0 %v11145_v0 }
  0x44   : > { %5855 = vmatmul.mubr.msk.bf16.gmra.mrb[12].mxu0 %vm643_vm0, %v6634_v28 }
  0x45   : > { %836 = vmatprep.mubr.bf16.mxu0 %v11145_v0 }
  0x4c   : > { %5856 = vmatmul.mubr.msk.bf16.gmra.mrb[16].mxu0 %vm643_vm0, %v6635_v29 }
  0x4d   : > { %846 = vmatprep.mubr.bf16.mxu0 %v11145_v0 }
  0x54   : > { %5857 = vmatmul.mubr.msk.bf16.gmra.mrb[20].mxu0 %vm643_vm0, %v6636_v30 }
  0x55   : > { %856 = vmatprep.mubr.bf16.mxu0 %v11145_v0 }
  0x5c   : > { %5858 = vmatmul.mubr.msk.bf16.gmra.mrb[24].mxu0 %vm643_vm0, %v6637_v31 }
  0x5d   : > { %866 = vmatprep.mubr.bf16.mxu0 %v11145_v0 }
  0x64   : > { %5859 = vmatmul.mubr.msk.bf16.gmra.mrb[28].mxu0 %vm643_vm0, %v6638_v32 }
  0x65   : > { %876 = vmatprep.mubr.bf16.mxu0 %v11145_v0 }
  0x97   : > { %v1200_v33 = vpop.permute.xlu0 %1199  ;;  %v1210_v58 = vpop.permute.xlu1 %1209 }
  0x9e   : > { %v1205_v37 = vpop.permute.xlu0 %1204  ;;  %v1215_v62 = vpop.permute.xlu1 %1214 }
  0xa2   : > { %v1220_v23 = vpop.permute.xlu0 %1219  ;;  %v1225_v25 = vpop.permute.xlu1 %1224 }
  0xff   : > { %v798_v34 = vpop.f32.mrb[0].mxu0 }
 0x100   : > { %v1277_v35 = vadd.f32 %v1200_v33, %v798_v34  ;;  %v800_v36 = vpop.f32.mrb[1].mxu0  ;;  %v1235_v34 = vpop.permute.xlu1 %1234 }
 0x101   : > { %v802_v38 = vpop.f32.mrb[2].mxu0  ;;  %v1278_v48 = vadd.f32 %v1200_v33, %v800_v36  ;;  %v1230_v33 = vpop.permute.xlu0 %1229 }
 0x102   : > { %v7091_v39 = vmax.f32 %v1277_v35, 0.0  ;;  %v1279_v40 = vadd.f32 %v1205_v37, %v802_v38  ;;  %v804_v41 = vpop.f32.mrb[3].mxu0 }
 0x103   : > { %v1280_v50 = vadd.f32 %v1205_v37, %v804_v41  ;;  %v7118_v53 = vmax.f32 %v1278_v48, 0.0 }
 0x104   : > { %11296 = vst [vmem:[#allocation6_spill] sm:$0xff] %v7091_v39  ;;  %v7093_v42 = vmax.f32 %v1279_v40, 0.0  ;;  %1777 = vrot.lane.b32.xlu0 %v7091_v39, %s6897_s17  ;;  %v7267_v38 = vpop.permute.xlu1 %1244 }
 0x105   : > { %11297 = vst [vmem:[#allocation7_spill] sm:$0xff] %v7118_v53  ;;  %v7124_v55 = vmax.f32 %v1280_v50, 0.0  ;;  %v7262_v36 = vpop.permute.xlu0 %1239 }
 0x106   : > { %1779 = vrot.lane.b32.xlu1 %v7093_v42, %s6897_s17 }
 0x107   : > { %v808_v43 = vpop.f32.mrb[4].mxu0  ;;  %11298 = vst [vmem:[#allocation8_spill] sm:$0xff] %v7124_v55 }
 0x108   : > { %1948 = vrot.lane.b32.xlu0 %v7091_v39, %s6898_s18  ;;  %v810_v44 = vpop.f32.mrb[5].mxu0  ;;  %v1281_v61 = vadd.f32 %v1210_v58, %v808_v43 }
 0x109   : > { %v812_v45 = vpop.f32.mrb[6].mxu0  ;;  %v1282_v11 = vadd.f32 %v1210_v58, %v810_v44  ;;  %v7277_v43 = vpop.permute.xlu0 %1249 }
 0x10a   : > { %1950 = vrot.lane.b32.xlu1 %v7093_v42, %s6898_s18  ;;  %v814_v46 = vpop.f32.mrb[7].mxu0  ;;  %v1283_v1 = vadd.f32 %v1215_v62, %v812_v45  ;;  %v7154_v4 = vmax.f32 %v1281_v61, 0.0  ;;  %v7281_v44 = vpop.permute.xlu1 %1254 }
 0x10b   : > { %v1284_v13 = vadd.f32 %v1215_v62, %v814_v46  ;;  %v7190_v16 = vmax.f32 %v1282_v11, 0.0 }
 0x10c   : > { %2117 = vrot.lane.b32.xlu0 %v7091_v39, %s6899_s19  ;;  %11299 = vst [vmem:[#allocation9_spill] sm:$0xff] %v7154_v4  ;;  %v7160_v6 = vmax.f32 %v1283_v1, 0.0 }
 0x10d   : > { %11301 = vst [vmem:[#allocation11_spill] sm:$0xff] %v7190_v16  ;;  %v7196_v18 = vmax.f32 %v1284_v13, 0.0  ;;  %v7287_v45 = vpop.permute.xlu0 %1259 }
 0x10e   : > { %2119 = vrot.lane.b32.xlu1 %v7093_v42, %s6899_s19  ;;  %11300 = vst [vmem:[#allocation10_spill] sm:$0xff] %v7160_v6  ;;  %v7292_v47 = vpop.permute.xlu1 %1264 }
 0x10f   : > { %v7110_v49 = vpop.f32.mrb[8].mxu0  ;;  %11302 = vst [vmem:[#allocation12_spill] sm:$0xff] %v7196_v18 }
 0x110   : > { %2286 = vrot.lane.b32.xlu0 %v7091_v39, %s6900_s28  ;;  %v7115_v51 = vpop.f32.mrb[9].mxu0  ;;  %v1285_v24 = vadd.f32 %v1220_v23, %v7110_v49 }
 0x111   : > { %v822_v52 = vpop.f32.mrb[10].mxu0  ;;  %v1286_v29 = vadd.f32 %v1220_v23, %v7115_v51  ;;  %v7299_v49 = vpop.permute.xlu0 %1269 }
 0x112   : > { %2288 = vrot.lane.b32.xlu1 %v7093_v42, %s6900_s28  ;;  %v7122_v54 = vpop.f32.mrb[11].mxu0  ;;  %v1287_v26 = vadd.f32 %v1225_v25, %v822_v52  ;;  %v7221_v27 = vmax.f32 %v1285_v24, 0.0  ;;  %v7307_v52 = vpop.permute.xlu1 %1274 }
 0x113   : > { %v1288_v30 = vadd.f32 %v1225_v25, %v7122_v54  ;;  %v7243_v31 = vmax.f32 %v1286_v29, 0.0  ;;  %v7361_v29 = vld [vmem:[%s11139_s1] sm:$0xff] }
 0x114   : > { %1809 = vrot.lane.b32.xlu0 %v7118_v53, %s6897_s17  ;;  %11303 = vst [vmem:[#allocation13_spill] sm:$0xff] %v7221_v27  ;;  %v7225_v28 = vmax.f32 %v1287_v26, 0.0 }
 0x115   : > { %v7247_v32 = vmax.f32 %v1288_v30, 0.0  ;;  %v7366_v30 = vld [vmem:[%s11139_s1 + $0x8] sm:$0xff] }
 0x116   : > { %1811 = vrot.lane.b32.xlu1 %v7124_v55, %s6897_s17 }
 0x117   : > { %v7130_v56 = vpop.f32.mrb[12].mxu0 }
 0x118   : > { %1980 = vrot.lane.b32.xlu0 %v7118_v53, %s6898_s18  ;;  %v7134_v57 = vpop.f32.mrb[13].mxu0  ;;  %v1289_v35 = vadd.f32 %v1230_v33, %v7130_v56 }
 0x119   : > { %v7136_v59 = vpop.f32.mrb[14].mxu0  ;;  %v1290_v46 = vadd.f32 %v1230_v33, %v7134_v57 }
 0x11a   : > { %1982 = vrot.lane.b32.xlu1 %v7124_v55, %s6898_s18  ;;  %v7140_v60 = vpop.f32.mrb[15].mxu0  ;;  %v1291_v37 = vadd.f32 %v1235_v34, %v7136_v59  ;;  %v7269_v40 = vmax.f32 %v1289_v35, 0.0  ;;  %v1841_v59 = vlaneseq }
 0x11b   : > { %v1292_v48 = vadd.f32 %v1235_v34, %v7140_v60  ;;  %v7301_v50 = vmax.f32 %v1290_v46, 0.0 }
 0x11c   : > { %2149 = vrot.lane.b32.xlu0 %v7118_v53, %s6899_s19  ;;  %v7273_v41 = vmax.f32 %v1291_v37, 0.0  ;;  %v7335_v11 = vand.u32 127, %v1841_v59  ;;  %v7337_v13 = vshrl.u32 %v1841_v59, 7 }
 0x11d   : > { %v7305_v51 = vmax.f32 %v1292_v48, 0.0 }
 0x11e   : > { %2151 = vrot.lane.b32.xlu1 %v7124_v55, %s6899_s19  ;;  %vm1843_vm1 = vcmp.lt.s32.totalorder %v7335_v11, 34  ;;  %vm2012_vm2 = vcmp.lt.s32.totalorder %v7335_v11, 32  ;;  %vm2181_vm3 = vcmp.lt.s32.totalorder %v7335_v11, 30  ;;  %vm2350_vm4 = vcmp.lt.s32.totalorder %v7335_v11, 2 }
 0x11f   : > { %v7146_v63 = vpop.f32.mrb[16].mxu0  ;;  %vm2591_vm5 = vcmp.lt.s32.totalorder %v7335_v11, 126  ;;  %vm2760_vm6 = vcmp.lt.s32.totalorder %v7335_v11, 98  ;;  %vm2929_vm7 = vcmp.lt.s32.totalorder %v7335_v11, 96  ;;  %vm3098_vm8 = vcmp.lt.s32.totalorder %v7335_v11, 94  ;;  %v10094_v11 = vld [vmem:[%s11143_s5 + $0x168] sm:$0xff] }
 0x120   : > { %2318 = vrot.lane.b32.xlu0 %v7118_v53, %s6900_s28  ;;  %v7150_v2 = vpop.f32.mrb[17].mxu0  ;;  %v1293_v60 = vadd.f32 %v7262_v36, %v7146_v63  ;;  %v6640_v63 = vld [vmem:[%s11140_s2 + $0xc8] sm:$0xff]  }
 0x121   : > { %v7152_v3 = vpop.f32.mrb[18].mxu0  ;;  %5877 = vmatmul.mubr.msk.bf16.gmra.mrb[4].mxu1 %vm643_vm0, %v6640_v63 }
 0x122   : > { %2320 = vrot.lane.b32.xlu1 %v7124_v55, %s6900_s28  ;;  %v7158_v5 = vpop.f32.mrb[19].mxu0  ;;  %v1295_v62 = vadd.f32 %v7267_v38, %v7152_v3  ;;  %v7342_v23 = vmax.f32 %v1293_v60, 0.0  ;;  %v1878_v3 = vsub.s32 0, %v7337_v13  ;;  %1056 = vmatprep.mubr.bf16.mxu1 %v11145_v0 }
 0x124   : > { %1781 = vrot.lane.b32.xlu0 %v7154_v4, %s6897_s17  ;;  %v7350_v25 = vmax.f32 %v1295_v62, 0.0  ;;  %v7369_v33 = vrot.slane %v7361_v29, %v1878_v3  ;;  %v7372_v34 = vrot.slane %v7366_v30, %v1878_v3  ;;  %v6641_v62 = vld [vmem:[%s11140_s2 + $0xd0] sm:$0xff]  }
 0x126   : > { %1783 = vrot.lane.b32.xlu1 %v7160_v6, %s6897_s17 }
 0x127   : > { %v7166_v7 = vpop.f32.mrb[20].mxu0 }
 0x128   : > { %1952 = vrot.lane.b32.xlu0 %v7154_v4, %s6898_s18  ;;  %v7170_v8 = vpop.f32.mrb[21].mxu0 }
 0x129   : > { %v7172_v9 = vpop.f32.mrb[22].mxu0  ;;  %5878 = vmatmul.mubr.msk.bf16.gmra.mrb[8].mxu1 %vm643_vm0, %v6641_v62 }
 0x12a   : > { %1954 = vrot.lane.b32.xlu1 %v7160_v6, %s6898_s18  ;;  %v7176_v10 = vpop.f32.mrb[23].mxu0 }
 0x12c   : > { %2121 = vrot.lane.b32.xlu0 %v7154_v4, %s6899_s19 }
 0x12e   : > { %2123 = vrot.lane.b32.xlu1 %v7160_v6, %s6899_s19 }
 0x12f   : > { %v7182_v12 = vpop.f32.mrb[24].mxu0 }
 0x130   : > { %2290 = vrot.lane.b32.xlu0 %v7154_v4, %s6900_s28  ;;  %v7186_v14 = vpop.f32.mrb[25].mxu0 }
 0x131   : > { %v7188_v15 = vpop.f32.mrb[26].mxu0 }
 0x132   : > { %2292 = vrot.lane.b32.xlu1 %v7160_v6, %s6900_s28  ;;  %v7194_v17 = vpop.f32.mrb[27].mxu0 }
 0x134   : > { %1813 = vrot.lane.b32.xlu0 %v7190_v16, %s6897_s17 }
 0x136   : > { %1815 = vrot.lane.b32.xlu1 %v7196_v18, %s6897_s17 }
 0x137   : > { %v7202_v19 = vpop.f32.mrb[28].mxu0 }
 0x138   : > { %1984 = vrot.lane.b32.xlu0 %v7190_v16, %s6898_s18  ;;  %v7206_v20 = vpop.f32.mrb[29].mxu0 }
 0x139   : > { %v7208_v21 = vpop.f32.mrb[30].mxu0 }
 0x13a   : > { %1986 = vrot.lane.b32.xlu1 %v7196_v18, %s6898_s18  ;;  %v7212_v22 = vpop.f32.mrb[31].mxu0 }
 0x13c   : > { %2153 = vrot.lane.b32.xlu0 %v7190_v16, %s6899_s19 }
 0x13e   : > { %2155 = vrot.lane.b32.xlu1 %v7196_v18, %s6899_s19 }
 0x140   : > { %2322 = vrot.lane.b32.xlu0 %v7190_v16, %s6900_s28 }
 0x142   : > { %2324 = vrot.lane.b32.xlu1 %v7196_v18, %s6900_s28 }
 0x144   : > { %1785 = vrot.lane.b32.xlu0 %v7221_v27, %s6897_s17 }
 0x146   : > { %1787 = vrot.lane.b32.xlu1 %v7225_v28, %s6897_s17 }
 0x148   : > { %1956 = vrot.lane.b32.xlu0 %v7221_v27, %s6898_s18 }
 0x14a   : > { %1958 = vrot.lane.b32.xlu1 %v7225_v28, %s6898_s18 }
 0x14c   : > { %2125 = vrot.lane.b32.xlu0 %v7221_v27, %s6899_s19 }
 0x14e   : > { %2127 = vrot.lane.b32.xlu1 %v7225_v28, %s6899_s19 }
 0x150   : > { %2294 = vrot.lane.b32.xlu0 %v7221_v27, %s6900_s28 }
 0x152   : > { %2296 = vrot.lane.b32.xlu1 %v7225_v28, %s6900_s28 }
 0x154   : > { %1817 = vrot.lane.b32.xlu0 %v7243_v31, %s6897_s17 }
 0x156   : > { %1819 = vrot.lane.b32.xlu1 %v7247_v32, %s6897_s17 }
 0x158   : > { %1988 = vrot.lane.b32.xlu0 %v7243_v31, %s6898_s18 }
 0x15a   : > { %1990 = vrot.lane.b32.xlu1 %v7247_v32, %s6898_s18 }
 0x15c   : > { %2157 = vrot.lane.b32.xlu0 %v7243_v31, %s6899_s19 }
 0x15e   : > { %2159 = vrot.lane.b32.xlu1 %v7247_v32, %s6899_s19 }
 0x160   : > { %2326 = vrot.lane.b32.xlu0 %v7243_v31, %s6900_s28 }
 0x162   : > { %2328 = vrot.lane.b32.xlu1 %v7247_v32, %s6900_s28 }
 0x164   : > { %1789 = vrot.lane.b32.xlu0 %v7269_v40, %s6897_s17 }
 0x166   : > { %1791 = vrot.lane.b32.xlu1 %v7273_v41, %s6897_s17 }
 0x168   : > { %1960 = vrot.lane.b32.xlu0 %v7269_v40, %s6898_s18 }
 0x16a   : > { %1962 = vrot.lane.b32.xlu1 %v7273_v41, %s6898_s18 }
 0x16c   : > { %2129 = vrot.lane.b32.xlu0 %v7269_v40, %s6899_s19 }
 0x16e   : > { %2131 = vrot.lane.b32.xlu1 %v7273_v41, %s6899_s19 }
 0x170   : > { %2298 = vrot.lane.b32.xlu0 %v7269_v40, %s6900_s28 }
 0x172   : > { %2300 = vrot.lane.b32.xlu1 %v7273_v41, %s6900_s28 }
 0x174   : > { %1821 = vrot.lane.b32.xlu0 %v7301_v50, %s6897_s17 }
 0x176   : > { %v1778_v54 = vpop.permute.xlu0 %1777  ;;  %1823 = vrot.lane.b32.xlu1 %v7305_v51, %s6897_s17 }
 0x178   : > { %v1780_v56 = vpop.permute.xlu1 %1779  ;;  %1992 = vrot.lane.b32.xlu0 %v7301_v50, %s6898_s18 }
 0x17a   : > { %v7315_v57 = vpop.permute.xlu0 %1948  ;;  %1994 = vrot.lane.b32.xlu1 %v7305_v51, %s6898_s18 }
 0x17c   : > { %v7319_v58 = vpop.permute.xlu1 %1950  ;;  %2161 = vrot.lane.b32.xlu0 %v7301_v50, %s6899_s19 }
 0x17e   : > { %v7325_v61 = vpop.permute.xlu0 %2117  ;;  %2163 = vrot.lane.b32.xlu1 %v7305_v51, %s6899_s19 }
 0x17f   : > { %11304 = vst [vmem:[#allocation14_spill] sm:$0xff] %v7325_v61  ;;  %v6645_v61 = vld [vmem:[%s11140_s2 + $0xf0] sm:$0xff]  }
 0x180   : > { %v7331_v1 = vpop.permute.xlu1 %2119  ;;  %2330 = vrot.lane.b32.xlu0 %v7301_v50, %s6900_s28 }
 0x181   : > { %11305 = vst [vmem:[#allocation15_spill] sm:$0xff] %v7331_v1 }
 0x182   : > { %v7344_v24 = vpop.permute.xlu0 %2286  ;;  %2332 = vrot.lane.b32.xlu1 %v7305_v51, %s6900_s28 }
 0x183   : > { %11306 = vst [vmem:[#allocation16_spill] sm:$0xff] %v7344_v24  ;;  %v11308_v24 = vmov 0  }
 0x184   : > { %v7352_v26 = vpop.permute.xlu1 %2288  ;;  %1793 = vrot.lane.b32.xlu0 %v7342_v23, %s6897_s17  ;;  %1066 = vmatprep.mubr.bf16.mxu1 %v11308_v24 }
 0x185   : > { %11307 = vst [vmem:[#allocation17_spill] sm:$0xff] %v7352_v26 }
 0x186   : > { %v1810_v35 = vpop.permute.xlu0 %1809  ;;  %1795 = vrot.lane.b32.xlu1 %v7350_v25, %s6897_s17 }
 0x187   : > { %v1844_v37 = vsel %vm1843_vm1, %v1778_v54, %v1810_v35  ;;  %v1860_v46 = vsel %vm1843_vm1, %v1810_v35, %v1778_v54 }
 0x188   : > { %v1812_v48 = vpop.permute.xlu1 %1811  ;;  %1964 = vrot.lane.b32.xlu0 %v7342_v23, %s6898_s18  ;;  %v1884_v63 = vmul.f32 %v7369_v33, %v1860_v46  ;;  %v1885_v3 = vmul.f32 %v7372_v34, %v1844_v37  ;;  %v1294_v37 = vadd.f32 %v7262_v36, %v7150_v2 }
 0x189   : > { %v1845_v59 = vsel %vm1843_vm1, %v1780_v56, %v1812_v48  ;;  %v1861_v60 = vsel %vm1843_vm1, %v1812_v48, %v1780_v56 }
 0x18a   : > { %v1886_v54 = vmul.f32 %v7369_v33, %v1861_v60  ;;  %v1887_v35 = vmul.f32 %v7372_v34, %v1845_v59  ;;  %v7393_v0 = vpop.permute.xlu0 %1980  ;;  %1966 = vrot.lane.b32.xlu1 %v7350_v25, %s6898_s18  ;;  %v1296_v60 = vadd.f32 %v7267_v38, %v7158_v5  ;;  %v7418_v2 = vmax.f32 %v1294_v37, 0.0 }
 0x18b   : > { %v1297_v37 = vadd.f32 %v7277_v43, %v7166_v7 }
 0x18c   : > { %v1916_v56 = vpack.c.bf16 %v1886_v54, %v1884_v63  ;;  %v7398_v48 = vpop.permute.xlu1 %1982  ;;  %2133 = vrot.lane.b32.xlu0 %v7342_v23, %s6899_s19  ;;  %v1917_v46 = vpack.c.bf16 %v1887_v35, %v1885_v3  ;;  %v6642_v63 = vld [vmem:[%s11140_s2 + $0xd8] sm:$0xff]   ;;  %v7425_v3 = vmax.f32 %v1296_v60, 0.0  ;;  %v6643_v35 = vld [vmem:[%s11140_s2 + $0xe0] sm:$0xff]  }
 0x18d   : > { %5879 = vmatmul.mubr.msk.bf16.gmra.mrb[12].mxu1 %vm643_vm0, %v6642_v63  ;;  %v1299_v63 = vadd.f32 %v7281_v44, %v7172_v9  ;;  %v7464_v26 = vmax.f32 %v1297_v37, 0.0 }
 0x18e   : > { %v7405_v59 = vpop.permute.xlu0 %2149  ;;  %3859 = vmatprep.subr.bf16.mxu1 %v1917_v46  ;;  %2135 = vrot.lane.b32.xlu1 %v7350_v25, %s6899_s19 }
 0x18f   : > { %11309 = vst [vmem:[#allocation18_spill] sm:$0xff] %v7405_v59  ;;  %3860 = vmatpush1.bf16.msra.mxu1 %v1916_v56  ;;  %1076 = vmatprep.mubr.bf16.mxu1 %v11308_v24 }
 0x190   : > { %v7411_v62 = vpop.permute.xlu1 %2151  ;;  %2302 = vrot.lane.b32.xlu0 %v7342_v23, %s6900_s28 }
 0x191   : > { %11310 = vst [vmem:[#allocation19_spill] sm:$0xff] %v7411_v62 }
 0x192   : > { %v7420_v36 = vpop.permute.xlu0 %2318  ;;  %2304 = vrot.lane.b32.xlu1 %v7350_v25, %s6900_s28 }
 0x193   : > { %11311 = vst [vmem:[#allocation20_spill] sm:$0xff] %v7420_v36 }
 0x194   : > { %v7427_v5 = vpop.permute.xlu1 %2320  ;;  %1825 = vrot.lane.b32.xlu0 %v7418_v2, %s6897_s17 }
 0x195   : > { %11312 = vst [vmem:[#allocation21_spill] sm:$0xff] %v7427_v5  ;;  %5880 = vmatmul.mubr.msk.bf16.gmra.mrb[16].mxu1 %vm643_vm0, %v6643_v35  ;;  %v6644_v35 = vld [vmem:[%s11140_s2 + $0xe8] sm:$0xff]   ;;  %v7471_v5 = vmax.f32 %v1299_v63, 0.0  ;;  %v1298_v63 = vadd.f32 %v7277_v43, %v7170_v8  ;;  %v1300_v8 = vadd.f32 %v7281_v44, %v7176_v10  ;;  %v6646_v44 = vld [vmem:[%s11140_s2 + $0xf8] sm:$0xff]  }
 0x196   : > { %v1782_v38 = vpop.permute.xlu0 %1781  ;;  %1827 = vrot.lane.b32.xlu1 %v7425_v3, %s6897_s17  ;;  %1086 = vmatprep.mubr.bf16.mxu1 %v11308_v24 }
 0x198   : > { %v1784_v54 = vpop.permute.xlu1 %1783  ;;  %1996 = vrot.lane.b32.xlu0 %v7418_v2, %s6898_s18 }
 0x19a   : > { %v7439_v56 = vpop.permute.xlu0 %1952  ;;  %1998 = vrot.lane.b32.xlu1 %v7425_v3, %s6898_s18 }
 0x19c   : > { %v7444_v46 = vpop.permute.xlu1 %1954  ;;  %2165 = vrot.lane.b32.xlu0 %v7418_v2, %s6899_s19 }
 0x19d   : > { %5881 = vmatmul.mubr.msk.bf16.gmra.mrb[20].mxu1 %vm643_vm0, %v6644_v35 }
 0x19e   : > { %v7451_v60 = vpop.permute.xlu0 %2121  ;;  %2167 = vrot.lane.b32.xlu1 %v7425_v3, %s6899_s19  ;;  %1096 = vmatprep.mubr.bf16.mxu1 %v11308_v24 }
 0x19f   : > { %11313 = vst [vmem:[#allocation22_spill] sm:$0xff] %v7451_v60 }
 0x1a0   : > { %v7457_v36 = vpop.permute.xlu1 %2123  ;;  %2334 = vrot.lane.b32.xlu0 %v7418_v2, %s6900_s28 }
 0x1a1   : > { %11314 = vst [vmem:[#allocation23_spill] sm:$0xff] %v7457_v36 }
 0x1a2   : > { %v7466_v7 = vpop.permute.xlu0 %2290  ;;  %2336 = vrot.lane.b32.xlu1 %v7425_v3, %s6900_s28 }
 0x1a3   : > { %11315 = vst [vmem:[#allocation24_spill] sm:$0xff] %v7466_v7 }
 0x1a4   : > { %v7473_v9 = vpop.permute.xlu1 %2292  ;;  %1797 = vrot.lane.b32.xlu0 %v7464_v26, %s6897_s17 }
 0x1a5   : > { %11316 = vst [vmem:[#allocation25_spill] sm:$0xff] %v7473_v9  ;;  %5882 = vmatmul.mubr.msk.bf16.gmra.mrb[24].mxu1 %vm643_vm0, %v6645_v61  ;;  %v7517_v61 = vmax.f32 %v1300_v8, 0.0 }
 0x1a6   : > { %v1814_v60 = vpop.permute.xlu0 %1813  ;;  %1799 = vrot.lane.b32.xlu1 %v7471_v5, %s6897_s17  ;;  %1106 = vmatprep.mubr.bf16.mxu1 %v11308_v24 }
 0x1a7   : > { %v1846_v37 = vsel %vm1843_vm1, %v1782_v38, %v1814_v60  ;;  %v1862_v7 = vsel %vm1843_vm1, %v1814_v60, %v1782_v38 }
 0x1a8   : > { %v1816_v35 = vpop.permute.xlu1 %1815  ;;  %1968 = vrot.lane.b32.xlu0 %v7464_v26, %s6898_s18  ;;  %v1888_v59 = vmul.f32 %v7369_v33, %v1862_v7  ;;  %v1889_v38 = vmul.f32 %v7372_v34, %v1846_v37  ;;  %v1301_v37 = vadd.f32 %v7287_v45, %v7182_v12 }
 0x1a9   : > { %v1847_v9 = vsel %vm1843_vm1, %v1784_v54, %v1816_v35  ;;  %v1863_v36 = vsel %vm1843_vm1, %v1816_v35, %v1784_v54 }
 0x1aa   : > { %v1890_v60 = vmul.f32 %v7369_v33, %v1863_v36  ;;  %v1891_v1 = vmul.f32 %v7372_v34, %v1847_v9  ;;  %v7499_v62 = vpop.permute.xlu0 %1984  ;;  %1970 = vrot.lane.b32.xlu1 %v7471_v5, %s6898_s18  ;;  %v7511_v36 = vmax.f32 %v1298_v63, 0.0  ;;  %v1303_v63 = vadd.f32 %v7292_v47, %v7188_v15 }
 0x1ab   : > { %v7547_v8 = vmax.f32 %v1301_v37, 0.0  ;;  %v6648_v37 = vld [vmem:[%s11140_s2 + $0x108] sm:$0xff]  }
 0x1ac   : > { %v1918_v43 = vpack.c.bf16 %v1890_v60, %v1888_v59  ;;  %v7506_v54 = vpop.permute.xlu1 %1986  ;;  %2137 = vrot.lane.b32.xlu0 %v7464_v26, %s6899_s19  ;;  %v1919_v7 = vpack.c.bf16 %v1891_v1, %v1889_v38  ;;  %v6647_v60 = vld [vmem:[%s11140_s2 + $0x100] sm:$0xff]   ;;  %v7554_v12 = vmax.f32 %v1303_v63, 0.0  ;;  %v1302_v63 = vadd.f32 %v7287_v45, %v7186_v14 }
 0x1ad   : > { %5883 = vmatmul.mubr.msk.bf16.gmra.mrb[28].mxu1 %vm643_vm0, %v6646_v44  ;;  %11321 = vst [vmem:[#allocation30_spill] sm:$0xff] %v7547_v8 }
 0x1ae   : > { %v7513_v9 = vpop.permute.xlu0 %2153  ;;  %3861 = vmatprep.subr.bf16.mxu1 %v1919_v7  ;;  %2139 = vrot.lane.b32.xlu1 %v7471_v5, %s6899_s19  ;;  %11322 = vst [vmem:[#allocation31_spill] sm:$0xff] %v7554_v12 }
 0x1af   : > { %11317 = vst [vmem:[#allocation26_spill] sm:$0xff] %v7513_v9  ;;  %3862 = vmatpush1.bf16.msra.mxu1 %v1918_v43  ;;  %1116 = vmatprep.mubr.bf16.mxu1 %v11308_v24 }
 0x1b0   : > { %v7519_v10 = vpop.permute.xlu1 %2155  ;;  %1829 = vrot.lane.b32.xlu0 %v7511_v36, %s6897_s17 }
 0x1b1   : > { %11318 = vst [vmem:[#allocation27_spill] sm:$0xff] %v7519_v10 }
 0x1b2   : > { %v7526_v1 = vpop.permute.xlu0 %2322  ;;  %1831 = vrot.lane.b32.xlu1 %v7517_v61, %s6897_s17 }
 0x1b3   : > { %11319 = vst [vmem:[#allocation28_spill] sm:$0xff] %v7526_v1  ;;  %v1304_v1 = vadd.f32 %v7292_v47, %v7194_v17 }
 0x1b4   : > { %v7531_v59 = vpop.permute.xlu1 %2324  ;;  %2000 = vrot.lane.b32.xlu0 %v7511_v36, %s6898_s18 }
 0x1b5   : > { %11320 = vst [vmem:[#allocation29_spill] sm:$0xff] %v7531_v59  ;;  %5884 = vmatmul.mubr.msk.bf16.gmra.mrb[32].mxu1 %vm643_vm0, %v6647_v60  ;;  %v7594_v17 = vmax.f32 %v1304_v1, 0.0 }
 0x1b6   : > { %v1786_v35 = vpop.permute.xlu0 %1785  ;;  %2002 = vrot.lane.b32.xlu1 %v7517_v61, %s6898_s18  ;;  %1126 = vmatprep.mubr.bf16.mxu1 %v11308_v24 }
 0x1b7   : > { %11328 = vst [vmem:[#allocation37_spill] sm:$0xff] %v7594_v17 }
 0x1b8   : > { %v1788_v38 = vpop.permute.xlu1 %1787  ;;  %2169 = vrot.lane.b32.xlu0 %v7511_v36, %s6899_s19 }
 0x1ba   : > { %v7549_v43 = vpop.permute.xlu0 %1956  ;;  %2171 = vrot.lane.b32.xlu1 %v7517_v61, %s6899_s19 }
 0x1bc   : > { %v7556_v15 = vpop.permute.xlu1 %1958  ;;  %1801 = vrot.lane.b32.xlu0 %v7547_v8, %s6897_s17 }
 0x1bd   : > { %5885 = vmatmul.mubr.msk.bf16.gmra.mrb[36].mxu1 %vm643_vm0, %v6648_v37 }
 0x1be   : > { %v7561_v7 = vpop.permute.xlu0 %2125  ;;  %1803 = vrot.lane.b32.xlu1 %v7554_v12, %s6897_s17  ;;  %1136 = vmatprep.mubr.bf16.mxu1 %v11308_v24 }
 0x1bf   : > { %11323 = vst [vmem:[#allocation32_spill] sm:$0xff] %v7561_v7  ;;  %v7586_v7 = vmax.f32 %v1302_v63, 0.0 }
 0x1c0   : > { %v7565_v44 = vpop.permute.xlu1 %2127  ;;  %1972 = vrot.lane.b32.xlu0 %v7547_v8, %s6898_s18 }
 0x1c1   : > { %11324 = vst [vmem:[#allocation33_spill] sm:$0xff] %v7565_v44  ;;  %11327 = vst [vmem:[#allocation36_spill] sm:$0xff] %v7586_v7 }
 0x1c2   : > { %v7574_v60 = vpop.permute.xlu0 %2294  ;;  %1974 = vrot.lane.b32.xlu1 %v7554_v12, %s6898_s18 }
 0x1c3   : > { %11325 = vst [vmem:[#allocation34_spill] sm:$0xff] %v7574_v60 }
 0x1c4   : > { %v7581_v59 = vpop.permute.xlu1 %2296  ;;  %2141 = vrot.lane.b32.xlu0 %v7547_v8, %s6899_s19 }
 0x1c5   : > { %11326 = vst [vmem:[#allocation35_spill] sm:$0xff] %v7581_v59  ;;  %v6649_v59 = vld [vmem:[%s11140_s2 + $0x110] sm:$0xff]  }
 0x1c6   : > { %v1818_v14 = vpop.permute.xlu0 %1817  ;;  %2143 = vrot.lane.b32.xlu1 %v7554_v12, %s6899_s19  ;;  %5886 = vmatmul.mubr.msk.bf16.gmra.mrb[40].mxu1 %vm643_vm0, %v6649_v59  ;;  %v1307_v59 = vadd.f32 %v7307_v52, %v7208_v21 }
 0x1c7   : > { %v1848_v45 = vsel %vm1843_vm1, %v1786_v35, %v1818_v14  ;;  %v1864_v37 = vsel %vm1843_vm1, %v1818_v14, %v1786_v35  ;;  %1146 = vmatprep.mubr.bf16.mxu1 %v11308_v24 }
 0x1c8   : > { %v1820_v47 = vpop.permute.xlu1 %1819  ;;  %1833 = vrot.lane.b32.xlu0 %v7586_v7, %s6897_s17  ;;  %v1892_v44 = vmul.f32 %v7369_v33, %v1864_v37  ;;  %v1893_v35 = vmul.f32 %v7372_v34, %v1848_v45 }
 0x1c9   : > { %v1849_v63 = vsel %vm1843_vm1, %v1788_v38, %v1820_v47  ;;  %v1865_v60 = vsel %vm1843_vm1, %v1820_v47, %v1788_v38 }
 0x1ca   : > { %v1894_v1 = vmul.f32 %v7369_v33, %v1865_v60  ;;  %v1895_v14 = vmul.f32 %v7372_v34, %v1849_v63  ;;  %v7609_v9 = vpop.permute.xlu0 %1988  ;;  %1835 = vrot.lane.b32.xlu1 %v7594_v17, %s6897_s17  ;;  %v1305_v60 = vadd.f32 %v7299_v49, %v7202_v19  ;;  %v6650_v63 = vld [vmem:[%s11140_s2 + $0x118] sm:$0xff]  }
 0x1cc   : > { %v1920_v38 = vpack.c.bf16 %v1894_v1, %v1892_v44  ;;  %v7614_v47 = vpop.permute.xlu1 %1990  ;;  %2004 = vrot.lane.b32.xlu0 %v7586_v7, %s6898_s18  ;;  %v1921_v37 = vpack.c.bf16 %v1895_v14, %v1893_v35  ;;  %v7634_v19 = vmax.f32 %v1305_v60, 0.0  ;;  %v7641_v1 = vmax.f32 %v1307_v59, 0.0 }
 0x1cd   : > { %v1306_v60 = vadd.f32 %v7299_v49, %v7206_v20 }
 0x1ce   : > { %v7621_v45 = vpop.permute.xlu0 %2157  ;;  %3863 = vmatprep.subr.bf16.mxu1 %v1921_v37  ;;  %2006 = vrot.lane.b32.xlu1 %v7594_v17, %s6898_s18  ;;  %11331 = vst [vmem:[#allocation40_spill] sm:$0xff] %v7634_v19  ;;  %11333 = vst [vmem:[#allocation42_spill] sm:$0xff] %v7641_v1  ;;  %v6651_v37 = vld [vmem:[%s11140_s2 + $0x120] sm:$0xff]  }
 0x1cf   : > { %11329 = vst [vmem:[#allocation38_spill] sm:$0xff] %v7621_v45  ;;  %3864 = vmatpush1.bf16.msra.mxu1 %v1920_v38  ;;  %v6653_v45 = vld [vmem:[%s11140_s2 + $0x130] sm:$0xff]  }
 0x1d0   : > { %v7627_v44 = vpop.permute.xlu1 %2159  ;;  %2173 = vrot.lane.b32.xlu0 %v7586_v7, %s6899_s19  ;;  %5887 = vmatmul.mubr.msk.bf16.gmra.mrb[44].mxu1 %vm643_vm0, %v6650_v63  ;;  %v1308_v63 = vadd.f32 %v7307_v52, %v7212_v22  ;;  %v6652_v22 = vld [vmem:[%s11140_s2 + $0x128] sm:$0xff]  }
 0x1d1   : > { %11330 = vst [vmem:[#allocation39_spill] sm:$0xff] %v7627_v44  ;;  %1156 = vmatprep.mubr.bf16.mxu1 %v11308_v24 }
 0x1d2   : > { %v7636_v35 = vpop.permute.xlu0 %2326  ;;  %2175 = vrot.lane.b32.xlu1 %v7594_v17, %s6899_s19  ;;  %v7675_v49 = vmax.f32 %v1308_v63, 0.0 }
 0x1d3   : > { %11332 = vst [vmem:[#allocation41_spill] sm:$0xff] %v7636_v35 }
 0x1d4   : > { %v7643_v21 = vpop.permute.xlu1 %2328  ;;  %1805 = vrot.lane.b32.xlu0 %v7634_v19, %s6897_s17  ;;  %11339 = vst [vmem:[#allocation48_spill] sm:$0xff] %v7675_v49 }
 0x1d5   : > { %11334 = vst [vmem:[#allocation43_spill] sm:$0xff] %v7643_v21  ;;  %v7669_v21 = vmax.f32 %v1306_v60, 0.0 }
 0x1d6   : > { %v1790_v14 = vpop.permute.xlu0 %1789  ;;  %1807 = vrot.lane.b32.xlu1 %v7641_v1, %s6897_s17 }
 0x1d7   : > { %11337 = vst [vmem:[#allocation46_spill] sm:$0xff] %v7669_v21 }
 0x1d8   : > { %v1792_v38 = vpop.permute.xlu1 %1791  ;;  %1976 = vrot.lane.b32.xlu0 %v7634_v19, %s6898_s18  ;;  %5888 = vmatmul.mubr.msk.bf16.gmra.mrb[48].mxu1 %vm643_vm0, %v6651_v37 }
 0x1d9   : > { %1166 = vmatprep.mubr.bf16.mxu1 %v11308_v24 }
 0x1da   : > { %v7657_v59 = vpop.permute.xlu0 %1960  ;;  %1978 = vrot.lane.b32.xlu1 %v7641_v1, %s6898_s18 }
 0x1db   : > { %11335 = vst [vmem:[#allocation44_spill] sm:$0xff] %v7657_v59 }
 0x1dc   : > { %v7664_v35 = vpop.permute.xlu1 %1962  ;;  %2145 = vrot.lane.b32.xlu0 %v7634_v19, %s6899_s19 }
 0x1dd   : > { %11336 = vst [vmem:[#allocation45_spill] sm:$0xff] %v7664_v35 }
 0x1de   : > { %v7671_v20 = vpop.permute.xlu0 %2129  ;;  %2147 = vrot.lane.b32.xlu1 %v7641_v1, %s6899_s19 }
 0x1df   : > { %11338 = vst [vmem:[#allocation47_spill] sm:$0xff] %v7671_v20 }
 0x1e0   : > { %v7677_v37 = vpop.permute.xlu1 %2131  ;;  %1837 = vrot.lane.b32.xlu0 %v7669_v21, %s6897_s17  ;;  %5889 = vmatmul.mubr.msk.bf16.gmra.mrb[52].mxu1 %vm643_vm0, %v6652_v22 }
 0x1e1   : > { %11340 = vst [vmem:[#allocation49_spill] sm:$0xff] %v7677_v37  ;;  %1176 = vmatprep.mubr.bf16.mxu1 %v11308_v24 }
 0x1e2   : > { %v7684_v52 = vpop.permute.xlu0 %2298  ;;  %1839 = vrot.lane.b32.xlu1 %v7675_v49, %s6897_s17 }
 0x1e3   : > { %11341 = vst [vmem:[#allocation50_spill] sm:$0xff] %v7684_v52 }
 0x1e4   : > { %v7689_v60 = vpop.permute.xlu1 %2300  ;;  %2306 = vrot.lane.b32.xlu0 %v7464_v26, %s6900_s28 }
 0x1e5   : > { %11342 = vst [vmem:[#allocation51_spill] sm:$0xff] %v7689_v60 }
 0x1e6   : > { %v1822_v63 = vpop.permute.xlu0 %1821  ;;  %2308 = vrot.lane.b32.xlu1 %v7471_v5, %s6900_s28 }
 0x1e7   : > { %v1850_v20 = vsel %vm1843_vm1, %v1790_v14, %v1822_v63  ;;  %v1866_v52 = vsel %vm1843_vm1, %v1822_v63, %v1790_v14 }
 0x1e8   : > { %v1824_v37 = vpop.permute.xlu1 %1823  ;;  %2008 = vrot.lane.b32.xlu0 %v7669_v21, %s6898_s18  ;;  %v1896_v44 = vmul.f32 %v7369_v33, %v1866_v52  ;;  %v1897_v10 = vmul.f32 %v7372_v34, %v1850_v20  ;;  %5890 = vmatmul.mubr.msk.bf16.gmra.mrb[56].mxu1 %vm643_vm0, %v6653_v45  ;;  %v6654_v45 = vld [vmem:[%s11140_s2 + $0x138] sm:$0xff]  }
 0x1e9   : > { %v1851_v22 = vsel %vm1843_vm1, %v1792_v38, %v1824_v37  ;;  %v1867_v60 = vsel %vm1843_vm1, %v1824_v37, %v1792_v38  ;;  %1186 = vmatprep.mubr.bf16.mxu1 %v11308_v24 }
 0x1ea   : > { %v1898_v14 = vmul.f32 %v7369_v33, %v1867_v60  ;;  %v1899_v63 = vmul.f32 %v7372_v34, %v1851_v22  ;;  %v7713_v59 = vpop.permute.xlu0 %1992  ;;  %2340 = vrot.lane.b32.xlu1 %v7517_v61, %s6900_s28 }
 0x1eb   : > { %11343 = vst [vmem:[#allocation52_spill] sm:$0xff] %v7713_v59 }
 0x1ec   : > { %v1922_v38 = vpack.c.bf16 %v1898_v14, %v1896_v44  ;;  %v7718_v37 = vpop.permute.xlu1 %1994  ;;  %2177 = vrot.lane.b32.xlu0 %v7669_v21, %s6899_s19  ;;  %v1923_v52 = vpack.c.bf16 %v1899_v63, %v1897_v10 }
 0x1ee   : > { %v7723_v20 = vpop.permute.xlu0 %2161  ;;  %3865 = vmatprep.subr.bf16.mxu1 %v1923_v52  ;;  %2312 = vrot.lane.b32.xlu1 %v7554_v12, %s6900_s28  ;;  %v6657_v52 = vld [vmem:[%s11141_s3 + $0x4] ss:$36 sps:$4 sm:$0xff]  }
 0x1ef   : > { %11344 = vst [vmem:[#allocation53_spill] sm:$0xff] %v7723_v20  ;;  %3866 = vmatpush1.bf16.msra.mxu1 %v1922_v38 }
 0x1f0   : > { %v7727_v60 = vpop.permute.xlu1 %2163  ;;  %2338 = vrot.lane.b32.xlu0 %v7511_v36, %s6900_s28  ;;  %5891 = vmatmul.mubr.msk.bf16.gmra.mrb[60].mxu1 %vm643_vm0, %v6654_v45 }
 0x1f1   : > { %11345 = vst [vmem:[#allocation54_spill] sm:$0xff] %v7727_v60  ;;  %3891 = vmatprep.mubr.bf16.mxu1 %v6657_v52 }
 0x1f2   : > { %v7734_v44 = vpop.permute.xlu0 %2330  ;;  %2344 = vrot.lane.b32.xlu1 %v7594_v17, %s6900_s28 }
 0x1f3   : > { %11346 = vst [vmem:[#allocation55_spill] sm:$0xff] %v7734_v44 }
 0x1f4   : > { %v7739_v10 = vpop.permute.xlu1 %2332  ;;  %2310 = vrot.lane.b32.xlu0 %v7547_v8, %s6900_s28 }
 0x1f5   : > { %11347 = vst [vmem:[#allocation56_spill] sm:$0xff] %v7739_v10 }
 0x1f6   : > { %v1794_v22 = vpop.permute.xlu0 %1793  ;;  %2316 = vrot.lane.b32.xlu1 %v7641_v1, %s6900_s28 }
 0x1f8   : > { %v1796_v14 = vpop.permute.xlu1 %1795  ;;  %2342 = vrot.lane.b32.xlu0 %v7586_v7, %s6900_s28 }
 0x1fa   : > { %v7747_v63 = vpop.permute.xlu0 %1964  ;;  %2529 = vrot.lane.b32.xlu1 %v7093_v42, %s6901_s29 }
 0x1fb   : > { %11348 = vst [vmem:[#allocation57_spill] sm:$0xff] %v7747_v63 }
 0x1fc   : > { %v7751_v38 = vpop.permute.xlu1 %1966  ;;  %2314 = vrot.lane.b32.xlu0 %v7634_v19, %s6900_s28 }
 0x1fd   : > { %11349 = vst [vmem:[#allocation58_spill] sm:$0xff] %v7751_v38 }
 0x1fe   : > { %v7758_v45 = vpop.permute.xlu0 %2133  ;;  %2561 = vrot.lane.b32.xlu1 %v7124_v55, %s6901_s29 }
 0x1ff   : > { %11350 = vst [vmem:[#allocation59_spill] sm:$0xff] %v7758_v45 }
 0x200   : > { %v7762_v24 = vpop.permute.xlu1 %2135  ;;  %2346 = vrot.lane.b32.xlu0 %v7669_v21, %s6900_s28 }
 0x201   : > { %11351 = vst [vmem:[#allocation60_spill] sm:$0xff] %v7762_v24 }
 0x202   : > { %v7766_v44 = vpop.permute.xlu0 %2302  ;;  %2010 = vrot.lane.b32.xlu1 %v7675_v49, %s6898_s18  ;;  %s6902_s18 = smov 98  }
 0x203   : > { %11352 = vst [vmem:[#allocation61_spill] sm:$0xff] %v7766_v44 }
 0x204   : > { %v7770_v10 = vpop.permute.xlu1 %2304  ;;  %2527 = vrot.lane.b32.xlu0 %v7091_v39, %s6901_s29 }
 0x205   : > { %11353 = vst [vmem:[#allocation62_spill] sm:$0xff] %v7770_v10 }
 0x206   : > { %v1826_v45 = vpop.permute.xlu0 %1825  ;;  %2533 = vrot.lane.b32.xlu1 %v7160_v6, %s6901_s29 }
 0x207   : > { %v1852_v52 = vsel %vm1843_vm1, %v1794_v22, %v1826_v45  ;;  %v1868_v24 = vsel %vm1843_vm1, %v1826_v45, %v1794_v22 }
 0x208   : > { %v1828_v20 = vpop.permute.xlu1 %1827  ;;  %2559 = vrot.lane.b32.xlu0 %v7118_v53, %s6901_s29  ;;  %v1900_v60 = vmul.f32 %v7369_v33, %v1868_v24  ;;  %v1901_v63 = vmul.f32 %v7372_v34, %v1852_v52 }
 0x209   : > { %v1853_v44 = vsel %vm1843_vm1, %v1796_v14, %v1828_v20  ;;  %v1869_v10 = vsel %vm1843_vm1, %v1828_v20, %v1796_v14 }
 0x20a   : > { %v1902_v38 = vmul.f32 %v7369_v33, %v1869_v10  ;;  %v1903_v59 = vmul.f32 %v7372_v34, %v1853_v44  ;;  %v7790_v35 = vpop.permute.xlu0 %1996  ;;  %2565 = vrot.lane.b32.xlu1 %v7196_v18, %s6901_s29 }
 0x20b   : > { %11354 = vst [vmem:[#allocation63_spill] sm:$0xff] %v7790_v35 }
 0x20c   : > { %v1924_v22 = vpack.c.bf16 %v1902_v38, %v1900_v60  ;;  %v7794_v45 = vpop.permute.xlu1 %1998  ;;  %2531 = vrot.lane.b32.xlu0 %v7154_v4, %s6901_s29  ;;  %v1925_v20 = vpack.c.bf16 %v1903_v59, %v1901_v63 }
 0x20d   : > { %11355 = vst [vmem:[#allocation64_spill] sm:$0xff] %v7794_v45 }
 0x20e   : > { %v7798_v14 = vpop.permute.xlu0 %2165  ;;  %3867 = vmatprep.subr.bf16.mxu1 %v1925_v20  ;;  %2179 = vrot.lane.b32.xlu1 %v7675_v49, %s6899_s19 }
 0x20f   : > { %11356 = vst [vmem:[#allocation65_spill] sm:$0xff] %v7798_v14  ;;  %3868 = vmatpush1.bf16.msra.mxu1 %v1924_v22 }
 0x210   : > { %v7802_v24 = vpop.permute.xlu1 %2167  ;;  %2563 = vrot.lane.b32.xlu0 %v7190_v16, %s6901_s29 }
 0x211   : > { %11357 = vst [vmem:[#allocation66_spill] sm:$0xff] %v7802_v24 }
 0x212   : > { %v7806_v44 = vpop.permute.xlu0 %2334  ;;  %2348 = vrot.lane.b32.xlu1 %v7675_v49, %s6900_s28 }
 0x213   : > { %11358 = vst [vmem:[#allocation67_spill] sm:$0xff] %v7806_v44 }
 0x214   : > { %v7810_v60 = vpop.permute.xlu1 %2336  ;;  %2535 = vrot.lane.b32.xlu0 %v7221_v27, %s6901_s29 }
 0x215   : > { %11359 = vst [vmem:[#allocation68_spill] sm:$0xff] %v7810_v60 }
 0x216   : > { %v1798_v59 = vpop.permute.xlu0 %1797  ;;  %2537 = vrot.lane.b32.xlu1 %v7225_v28, %s6901_s29 }
 0x218   : > { %v1800_v10 = vpop.permute.xlu1 %1799  ;;  %2567 = vrot.lane.b32.xlu0 %v7243_v31, %s6901_s29 }
 0x21a   : > { %v7818_v63 = vpop.permute.xlu0 %1968  ;;  %2569 = vrot.lane.b32.xlu1 %v7247_v32, %s6901_s29 }
 0x21b   : > { %11360 = vst [vmem:[#allocation69_spill] sm:$0xff] %v7818_v63 }
 0x21c   : > { %v7822_v38 = vpop.permute.xlu1 %1970  ;;  %2539 = vrot.lane.b32.xlu0 %v7269_v40, %s6901_s29 }
 0x21d   : > { %11361 = vst [vmem:[#allocation70_spill] sm:$0xff] %v7822_v38 }
 0x21e   : > { %v7826_v52 = vpop.permute.xlu0 %2137  ;;  %2541 = vrot.lane.b32.xlu1 %v7273_v41, %s6901_s29 }
 0x21f   : > { %11362 = vst [vmem:[#allocation71_spill] sm:$0xff] %v7826_v52 }
 0x220   : > { %v7830_v22 = vpop.permute.xlu1 %2139  ;;  %2571 = vrot.lane.b32.xlu0 %v7301_v50, %s6901_s29 }
 0x221   : > { %11363 = vst [vmem:[#allocation72_spill] sm:$0xff] %v7830_v22 }
 0x222   : > { %v1830_v20 = vpop.permute.xlu0 %1829  ;;  %2573 = vrot.lane.b32.xlu1 %v7305_v51, %s6901_s29 }
 0x223   : > { %v1854_v44 = vsel %vm1843_vm1, %v1798_v59, %v1830_v20  ;;  %v1870_v60 = vsel %vm1843_vm1, %v1830_v20, %v1798_v59 }
 0x224   : > { %v1832_v14 = vpop.permute.xlu1 %1831  ;;  %2543 = vrot.lane.b32.xlu0 %v7342_v23, %s6901_s29  ;;  %v1904_v24 = vmul.f32 %v7369_v33, %v1870_v60  ;;  %v1905_v63 = vmul.f32 %v7372_v34, %v1854_v44 }
 0x225   : > { %v1855_v52 = vsel %vm1843_vm1, %v1800_v10, %v1832_v14  ;;  %v1871_v22 = vsel %vm1843_vm1, %v1832_v14, %v1800_v10 }
 0x226   : > { %v1906_v38 = vmul.f32 %v7369_v33, %v1871_v22  ;;  %v1907_v35 = vmul.f32 %v7372_v34, %v1855_v52  ;;  %v7850_v45 = vpop.permute.xlu0 %2000  ;;  %2545 = vrot.lane.b32.xlu1 %v7350_v25, %s6901_s29 }
 0x228   : > { %v1926_v59 = vpack.c.bf16 %v1906_v38, %v1904_v24  ;;  %v7854_v20 = vpop.permute.xlu1 %2002  ;;  %2575 = vrot.lane.b32.xlu0 %v7418_v2, %s6901_s29  ;;  %v1927_v14 = vpack.c.bf16 %v1907_v35, %v1905_v63 }
 0x22a   : > { %v7858_v10 = vpop.permute.xlu0 %2169  ;;  %3869 = vmatprep.subr.bf16.mxu1 %v1927_v14  ;;  %2577 = vrot.lane.b32.xlu1 %v7425_v3, %s6901_s29 }
 0x22b   : > { %11364 = vst [vmem:[#allocation73_spill] sm:$0xff] %v7858_v10  ;;  %3870 = vmatpush1.bf16.msra.mxu1 %v1926_v59 }
 0x22c   : > { %v7862_v44 = vpop.permute.xlu1 %2171  ;;  %2547 = vrot.lane.b32.xlu0 %v7464_v26, %s6901_s29 }
 0x22d   : > { %11365 = vst [vmem:[#allocation74_spill] sm:$0xff] %v7862_v44 }
 0x22e   : > { %v1802_v60 = vpop.permute.xlu0 %1801  ;;  %2549 = vrot.lane.b32.xlu1 %v7471_v5, %s6901_s29 }
 0x230   : > { %v1804_v24 = vpop.permute.xlu1 %1803  ;;  %2579 = vrot.lane.b32.xlu0 %v7511_v36, %s6901_s29 }
 0x232   : > { %v7870_v35 = vpop.permute.xlu0 %1972  ;;  %2581 = vrot.lane.b32.xlu1 %v7517_v61, %s6901_s29 }
 0x234   : > { %v7874_v63 = vpop.permute.xlu1 %1974  ;;  %2551 = vrot.lane.b32.xlu0 %v7547_v8, %s6901_s29 }
 0x236   : > { %v7878_v38 = vpop.permute.xlu0 %2141  ;;  %2553 = vrot.lane.b32.xlu1 %v7554_v12, %s6901_s29 }
 0x237   : > { %11366 = vst [vmem:[#allocation75_spill] sm:$0xff] %v7878_v38 }
 0x238   : > { %v7882_v52 = vpop.permute.xlu1 %2143  ;;  %2583 = vrot.lane.b32.xlu0 %v7586_v7, %s6901_s29 }
 0x239   : > { %11367 = vst [vmem:[#allocation76_spill] sm:$0xff] %v7882_v52 }
 0x23a   : > { %v1834_v22 = vpop.permute.xlu0 %1833  ;;  %2585 = vrot.lane.b32.xlu1 %v7594_v17, %s6901_s29 }
 0x23b   : > { %v1856_v59 = vsel %vm1843_vm1, %v1802_v60, %v1834_v22  ;;  %v1872_v14 = vsel %vm1843_vm1, %v1834_v22, %v1802_v60 }
 0x23c   : > { %v1836_v10 = vpop.permute.xlu1 %1835  ;;  %2555 = vrot.lane.b32.xlu0 %v7634_v19, %s6901_s29  ;;  %v1908_v44 = vmul.f32 %v7369_v33, %v1872_v14  ;;  %v1909_v17 = vmul.f32 %v7372_v34, %v1856_v59  ;;  %v2047_v59 = vsub.s32 1, %v7337_v13  ;;  %v7935_v14 = vpop.f32.mrb[0].mxu1 }
 0x23d   : > { %v1857_v38 = vsel %vm1843_vm1, %v1804_v24, %v1836_v10  ;;  %v1873_v52 = vsel %vm1843_vm1, %v1836_v10, %v1804_v24  ;;  %11371 = vst [vmem:[#allocation80_spill] sm:$0xff] %v7935_v14 }
 0x23e   : > { %v1910_v7 = vmul.f32 %v7369_v33, %v1873_v52  ;;  %v1911_v12 = vmul.f32 %v7372_v34, %v1857_v38  ;;  %v7902_v8 = vpop.permute.xlu0 %2004  ;;  %2557 = vrot.lane.b32.xlu1 %v7641_v1, %s6901_s29 }
 0x240   : > { %v1928_v60 = vpack.c.bf16 %v1910_v7, %v1908_v44  ;;  %v7906_v22 = vpop.permute.xlu1 %2006  ;;  %2587 = vrot.lane.b32.xlu0 %v7669_v21, %s6901_s29  ;;  %v1929_v10 = vpack.c.bf16 %v1911_v12, %v1909_v17 }
 0x242   : > { %v7910_v24 = vpop.permute.xlu0 %2173  ;;  %3871 = vmatprep.subr.bf16.mxu1 %v1929_v10  ;;  %2589 = vrot.lane.b32.xlu1 %v7675_v49, %s6901_s29  ;;  %v7941_v10 = vpop.f32.mrb[1].mxu1  ;;  %s10846_s29 = scalar_lea.vmem [#allocation3], %s5801_s20 }
 0x243   : > { %11368 = vst [vmem:[#allocation77_spill] sm:$0xff] %v7910_v24  ;;  %3872 = vmatpush1.bf16.msra.mxu1 %v1928_v60  ;;  %11373 = vst [vmem:[#allocation82_spill] sm:$0xff] %v7941_v10  ;;  %v7944_v24 = vpop.f32.mrb[2].mxu1  ;;  %s5735_s17 = sshll.u32 %s10846_s29, 4  ;;  %s11090_s17 = int_to_ptr.vmem [resolvable:$true] %s5735_s17 }
 0x244   : > { %v7914_v38 = vpop.permute.xlu1 %2175  ;;  %2696 = vrot.lane.b32.xlu0 %v7091_v39, %s6902_s18  ;;  %11374 = vst [vmem:[#allocation83_spill] sm:$0xff] %v7944_v24  ;;  %v7952_v14 = vpop.f32.mrb[3].mxu1  ;;  %s6832_s10 = scalar_lea.vmem %s11090_s17, 16384 }
 0x245   : > { %11369 = vst [vmem:[#allocation78_spill] sm:$0xff] %v7914_v38  ;;  %11375 = vst [vmem:[#allocation84_spill] sm:$0xff] %v7952_v14  ;;  %p6833_p11 = scmp.ne.s32.totalorder %s11090_s17, %s6832_s10 }
 0x246   : > { %v1806_v7 = vpop.permute.xlu0 %1805  ;;  %2698 = vrot.lane.b32.xlu1 %v7093_v42, %s6902_s18 }
 0x247   : > { %p6834_p12 = pnand %p6833_p11, %p6984_p5 }
 0x248   : > { %2728 = vrot.lane.b32.xlu0 %v7118_v53, %s6902_s18  ;;  %v1808_v12 = vpop.permute.xlu1 %1807 }
 0x249   : > { %p6835_p13 = pneg %p6834_p12 }
 0x24a   : > { %v7922_v17 = vpop.permute.xlu0 %1976  ;;  %2730 = vrot.lane.b32.xlu1 %v7124_v55, %s6902_s18 }
 0x24c   : > { %2700 = vrot.lane.b32.xlu0 %v7154_v4, %s6902_s18  ;;  %v7928_v44 = vpop.permute.xlu1 %1978 }
 0x24e   : > { %v7930_v52 = vpop.permute.xlu0 %2145  ;;  %2702 = vrot.lane.b32.xlu1 %v7160_v6, %s6902_s18 }
 0x24f   : > { %11370 = vst [vmem:[#allocation79_spill] sm:$0xff] %v7930_v52  ;;  %v2014_v52 = vsel %vm2012_vm2, %v7319_v58, %v7398_v48 }
 0x250   : > { %2732 = vrot.lane.b32.xlu0 %v7190_v16, %s6902_s18  ;;  %v7939_v60 = vpop.permute.xlu1 %2147  ;;  %v7955_v16 = vrot.slane %v7366_v30, %v2047_v59  ;;  %v2030_v30 = vsel %vm2012_vm2, %v7398_v48, %v7319_v58  ;;  %v7985_v58 = vrot.slane %v7361_v29, %v2047_v59  ;;  %v7991_v48 = vpop.f32.mrb[4].mxu1  ;;  %v2015_v59 = vsel %vm2012_vm2, %v7439_v56, %v7499_v62 }
 0x251   : > { %11372 = vst [vmem:[#allocation81_spill] sm:$0xff] %v7939_v60  ;;  %v2013_v60 = vsel %vm2012_vm2, %v7315_v57, %v7393_v0  ;;  %11376 = vst [vmem:[#allocation85_spill] sm:$0xff] %v7991_v48 }
 0x252   : > { %v1838_v6 = vpop.permute.xlu0 %1837  ;;  %2734 = vrot.lane.b32.xlu1 %v7196_v18, %s6902_s18  ;;  %v2056_v14 = vmul.f32 %v7955_v16, %v2014_v52  ;;  %v2055_v52 = vmul.f32 %v7985_v58, %v2030_v30  ;;  %v2018_v30 = vsel %vm2012_vm2, %v7556_v15, %v7614_v47 }
 0x253   : > { %v1858_v10 = vsel %vm1843_vm1, %v1806_v7, %v1838_v6  ;;  %v1874_v24 = vsel %vm1843_vm1, %v1838_v6, %v1806_v7 }
 0x254   : > { %2704 = vrot.lane.b32.xlu0 %v7221_v27, %s6902_s18  ;;  %v1840_v18 = vpop.permute.xlu1 %1839  ;;  %v1912_v7 = vmul.f32 %v7369_v33, %v1874_v24  ;;  %v1913_v38 = vmul.f32 %v7372_v34, %v1858_v10 }
 0x255   : > { %v1859_v4 = vsel %vm1843_vm1, %v1808_v12, %v1840_v18  ;;  %v1875_v6 = vsel %vm1843_vm1, %v1840_v18, %v1808_v12  ;;  %v2016_v18 = vsel %vm2012_vm2, %v7444_v46, %v7506_v54  ;;  %v8002_v12 = vpop.f32.mrb[5].mxu1 }
 0x256   : > { %v1914_v27 = vmul.f32 %v7369_v33, %v1875_v6  ;;  %v1915_v55 = vmul.f32 %v7372_v34, %v1859_v4  ;;  %v7980_v53 = vpop.permute.xlu0 %2306  ;;  %2706 = vrot.lane.b32.xlu1 %v7225_v28, %s6902_s18  ;;  %v2029_v4 = vsel %vm2012_vm2, %v7393_v0, %v7315_v57  ;;  %v2054_v33 = vmul.f32 %v7955_v16, %v2013_v60  ;;  %v8009_v10 = vpop.f32.mrb[6].mxu1 }
 0x257   : > { %11377 = vst [vmem:[#allocation86_spill] sm:$0xff] %v8002_v12  ;;  %11378 = vst [vmem:[#allocation87_spill] sm:$0xff] %v8009_v10  ;;  %v2032_v0 = vsel %vm2012_vm2, %v7506_v54, %v7444_v46  ;;  %v2053_v60 = vmul.f32 %v7985_v58, %v2029_v4  ;;  %v2031_v46 = vsel %vm2012_vm2, %v7499_v62, %v7439_v56  ;;  %v11390_v12 = vld [vmem:[#allocation57_spill] sm:$0xff] }
 0x258   : > { %v1930_v34 = vpack.c.bf16 %v1914_v27, %v1912_v7  ;;  %2736 = vrot.lane.b32.xlu0 %v7243_v31, %s6902_s18  ;;  %v8000_v29 = vpop.permute.xlu1 %2308  ;;  %v1931_v24 = vpack.c.bf16 %v1915_v55, %v1913_v38  ;;  %v2060_v27 = vmul.f32 %v7955_v16, %v2016_v18  ;;  %v2086_v55 = vpack.c.bf16 %v2056_v14, %v2054_v33  ;;  %v8020_v38 = vpop.f32.mrb[7].mxu1 }
 0x259   : > { %11379 = vst [vmem:[#allocation88_spill] sm:$0xff] %v8020_v38  ;;  %v2058_v54 = vmul.f32 %v7955_v16, %v2015_v59  ;;  %v2085_v6 = vpack.c.bf16 %v2055_v52, %v2053_v60  ;;  %v2059_v7 = vmul.f32 %v7985_v58, %v2032_v0  ;;  %v2017_v18 = vsel %vm2012_vm2, %v7549_v43, %v7609_v9  ;;  %v8055_v59 = vpop.f32.mrb[8].mxu1 }
 0x25a   : > { %v8016_v57 = vpop.permute.xlu0 %2008  ;;  %2738 = vrot.lane.b32.xlu1 %v7247_v32, %s6902_s18  ;;  %3873 = vmatprep.subr.bf16.mxu1 %v1931_v24  ;;  %v2034_v62 = vsel %vm2012_vm2, %v7614_v47, %v7556_v15  ;;  %v2064_v56 = vmul.f32 %v7955_v16, %v2018_v30  ;;  %v11380_v24 = vld [vmem:[#allocation45_spill] sm:$0xff]  ;;  %v2033_v15 = vsel %vm2012_vm2, %v7609_v9, %v7549_v43  ;;  %v11383_v30 = vld [vmem:[#allocation52_spill] sm:$0xff] }
 0x25b   : > { %3874 = vmatpush1.bf16.msra.mxu1 %v1930_v34  ;;  %v2088_v33 = vpack.c.bf16 %v2060_v27, %v2058_v54  ;;  %v2057_v34 = vmul.f32 %v7985_v58, %v2031_v46  ;;  %v2020_v52 = vsel %vm2012_vm2, %v11380_v24, %v7718_v37  ;;  %11381 = vst [vmem:[#allocation45_spill] sm:$0xff] %v8055_v59  ;;  %v8066_v27 = vpop.f32.mrb[9].mxu1  ;;  %v11384_v46 = vld [vmem:[#allocation44_spill] sm:$0xff] }
 0x25c   : > { %2708 = vrot.lane.b32.xlu0 %v7269_v40, %s6902_s18  ;;  %3875 = vmatprep.subr.bf16.mxu1 %v2086_v55  ;;  %v8034_v14 = vpop.permute.xlu1 %2340  ;;  %v2062_v47 = vmul.f32 %v7955_v16, %v2017_v18  ;;  %11382 = vst [vmem:[#allocation89_spill] sm:$0xff] %v8066_v27  ;;  %v2063_v60 = vmul.f32 %v7985_v58, %v2034_v62  ;;  %v11388_v27 = vld [vmem:[#allocation58_spill] sm:$0xff] }
 0x25d   : > { %v2087_v55 = vpack.c.bf16 %v2059_v7, %v2057_v34  ;;  %v2019_v54 = vsel %vm2012_vm2, %v11384_v46, %v11383_v30  ;;  %v2036_v9 = vsel %vm2012_vm2, %v7718_v37, %v11380_v24  ;;  %v2068_v43 = vmul.f32 %v7955_v16, %v2020_v52  ;;  %v11387_v34 = vld [vmem:[#allocation64_spill] sm:$0xff] }
 0x25e   : > { %v8046_v4 = vpop.permute.xlu0 %2177  ;;  %2710 = vrot.lane.b32.xlu1 %v7273_v41, %s6902_s18  ;;  %v2090_v7 = vpack.c.bf16 %v2064_v56, %v2062_v47  ;;  %v2022_v59 = vsel %vm2012_vm2, %v11388_v27, %v11387_v34  ;;  %v2035_v37 = vsel %vm2012_vm2, %v11383_v30, %v11384_v46  ;;  %v2066_v24 = vmul.f32 %v7955_v16, %v2019_v54  ;;  %v11389_v47 = vld [vmem:[#allocation63_spill] sm:$0xff] }
 0x25f   : > { %3876 = vmatpush1.bf16.msra.mxu1 %v2085_v6  ;;  %v8073_v6 = vpop.f32.mrb[10].mxu1  ;;  %v2038_v30 = vsel %vm2012_vm2, %v11387_v34, %v11388_v27  ;;  %v2072_v46 = vmul.f32 %v7955_v16, %v2022_v59  ;;  %v2037_v59 = vsel %vm2012_vm2, %v11389_v47, %v11390_v12 }
 0x260   : > { %2740 = vrot.lane.b32.xlu0 %v7301_v50, %s6902_s18  ;;  %3877 = vmatprep.subr.bf16.mxu1 %v2088_v33  ;;  %v8064_v0 = vpop.permute.xlu1 %2312  ;;  %11385 = vst [vmem:[#allocation52_spill] sm:$0xff] %v8073_v6  ;;  %v8084_v62 = vpop.f32.mrb[11].mxu1  ;;  %v2061_v33 = vmul.f32 %v7985_v58, %v2033_v15  ;;  %v2067_v15 = vmul.f32 %v7985_v58, %v2036_v9 }
 0x261   : > { %11386 = vst [vmem:[#allocation44_spill] sm:$0xff] %v8084_v62  ;;  %v2065_v9 = vmul.f32 %v7985_v58, %v2035_v37  ;;  %v8119_v48 = vpop.f32.mrb[12].mxu1 }
 0x262   : > { %v8080_v18 = vpop.permute.xlu0 %2338  ;;  %2742 = vrot.lane.b32.xlu1 %v7305_v51, %s6902_s18  ;;  %v2089_v52 = vpack.c.bf16 %v2063_v60, %v2061_v33  ;;  %v2092_v60 = vpack.c.bf16 %v2068_v43, %v2066_v24  ;;  %11392 = vst [vmem:[#allocation64_spill] sm:$0xff] %v8119_v48  ;;  %v8130_v34 = vpop.f32.mrb[13].mxu1  ;;  %v2071_v24 = vmul.f32 %v7985_v58, %v2038_v30 }
 0x263   : > { %3878 = vmatpush1.bf16.msra.mxu1 %v2087_v55  ;;  %v2021_v55 = vsel %vm2012_vm2, %v11390_v12, %v11389_v47  ;;  %11393 = vst [vmem:[#allocation58_spill] sm:$0xff] %v8130_v34  ;;  %v2091_v37 = vpack.c.bf16 %v2067_v15, %v2065_v9  ;;  %v8137_v62 = vpop.f32.mrb[14].mxu1  ;;  %v2026_v9 = vsel %vm2012_vm2, %v7874_v63, %v7906_v22  ;;  %v11406_v34 = vld [vmem:[#allocation14_spill] sm:$0xff] }
 0x264   : > { %2712 = vrot.lane.b32.xlu0 %v7342_v23, %s6902_s18  ;;  %3879 = vmatprep.subr.bf16.mxu1 %v2090_v7  ;;  %v8098_v56 = vpop.permute.xlu1 %2344  ;;  %v11391_v7 = vld [vmem:[#allocation70_spill] sm:$0xff]  ;;  %v2070_v27 = vmul.f32 %v7955_v16, %v2021_v55  ;;  %11395 = vst [vmem:[#allocation63_spill] sm:$0xff] %v8137_v62  ;;  %v8148_v30 = vpop.f32.mrb[15].mxu1 }
 0x265   : > { %v2024_v33 = vsel %vm2012_vm2, %v11391_v7, %v7854_v20  ;;  %v2040_v12 = vsel %vm2012_vm2, %v7854_v20, %v11391_v7  ;;  %11396 = vst [vmem:[#allocation57_spill] sm:$0xff] %v8148_v30 }
 0x266   : > { %v8110_v54 = vpop.permute.xlu0 %2310  ;;  %2714 = vrot.lane.b32.xlu1 %v7350_v25, %s6902_s18  ;;  %v2076_v47 = vmul.f32 %v7955_v16, %v2024_v33  ;;  %v2094_v15 = vpack.c.bf16 %v2072_v46, %v2070_v27  ;;  %v2025_v27 = vsel %vm2012_vm2, %v7870_v35, %v7902_v8 }
 0x267   : > { %3880 = vmatpush1.bf16.msra.mxu1 %v2089_v52  ;;  %v11394_v52 = vld [vmem:[#allocation69_spill] sm:$0xff] }
 0x268   : > { %2744 = vrot.lane.b32.xlu0 %v7418_v2, %s6902_s18  ;;  %3881 = vmatprep.subr.bf16.mxu1 %v2092_v60  ;;  %v8128_v43 = vpop.permute.xlu1 %2316  ;;  %v2023_v48 = vsel %vm2012_vm2, %v11394_v52, %v7850_v45  ;;  %v2069_v60 = vmul.f32 %v7985_v58, %v2037_v59  ;;  %v2039_v20 = vsel %vm2012_vm2, %v7850_v45, %v11394_v52  ;;  %v2216_v52 = vsub.s32 2, %v7337_v13 }
 0x269   : > { %v2074_v7 = vmul.f32 %v7955_v16, %v2023_v48  ;;  %v2075_v59 = vmul.f32 %v7985_v58, %v2040_v12  ;;  %v2042_v45 = vsel %vm2012_vm2, %v7906_v22, %v7874_v63  ;;  %v2080_v48 = vmul.f32 %v7955_v16, %v2026_v9 }
 0x26a   : > { %v8144_v55 = vpop.permute.xlu0 %2342  ;;  %2746 = vrot.lane.b32.xlu1 %v7425_v3, %s6902_s18  ;;  %v2093_v33 = vpack.c.bf16 %v2071_v24, %v2069_v60  ;;  %v2073_v12 = vmul.f32 %v7985_v58, %v2039_v20  ;;  %v2041_v63 = vsel %vm2012_vm2, %v7902_v8, %v7870_v35  ;;  %v2078_v22 = vmul.f32 %v7955_v16, %v2025_v27 }
 0x26b   : > { %3882 = vmatpush1.bf16.msra.mxu1 %v2091_v37  ;;  %v2096_v24 = vpack.c.bf16 %v2076_v47, %v2074_v7  ;;  %v2079_v20 = vmul.f32 %v7985_v58, %v2042_v45 }
 0x26c   : > { %2716 = vrot.lane.b32.xlu0 %v7464_v26, %s6902_s18  ;;  %3883 = vmatprep.subr.bf16.mxu1 %v2094_v15  ;;  %v8162_v46 = vpop.permute.xlu1 %2529  ;;  %v8180_v15 = vpop.f32.mrb[16].mxu1  ;;  %v2095_v9 = vpack.c.bf16 %v2075_v59, %v2073_v12  ;;  %v2098_v27 = vpack.c.bf16 %v2080_v48, %v2078_v22  ;;  %v8210_v59 = vld [vmem:[%s11139_s1 + $0x8] sm:$0xff]  ;;  %v2077_v12 = vmul.f32 %v7985_v58, %v2041_v63  ;;  %v11405_v22 = vld [vmem:[#allocation18_spill] sm:$0xff] }
 0x26d   : > { %11397 = vst [vmem:[#allocation70_spill] sm:$0xff] %v8162_v46  ;;  %11398 = vst [vmem:[#allocation69_spill] sm:$0xff] %v8180_v15  ;;  %v8191_v47 = vpop.f32.mrb[17].mxu1  ;;  %v11403_v15 = vld [vmem:[#allocation15_spill] sm:$0xff]  ;;  %v8213_v45 = vrot.slane %v8210_v59, %v2216_v52  ;;  %v2043_v48 = vsel %vm2012_vm2, %v8016_v57, %v7922_v17  ;;  %v11416_v46 = vld [vmem:[#allocation26_spill] sm:$0xff] }
 0x26e   : > { %v8174_v37 = vpop.permute.xlu0 %2314  ;;  %2718 = vrot.lane.b32.xlu1 %v7471_v5, %s6902_s18  ;;  %11400 = vst [vmem:[#allocation91_spill] sm:$0xff] %v8191_v47  ;;  %v8195_v7 = vpop.f32.mrb[18].mxu1  ;;  %v2027_v47 = vsel %vm2012_vm2, %v7922_v17, %v8016_v57  ;;  %v2097_v6 = vpack.c.bf16 %v2079_v20, %v2077_v12  ;;  %v11409_v20 = vld [vmem:[#allocation31_spill] sm:$0xff] }
 0x26f   : > { %3884 = vmatpush1.bf16.msra.mxu1 %v2093_v33  ;;  %11401 = vst [vmem:[#allocation92_spill] sm:$0xff] %v8195_v7  ;;  %v11402_v33 = vld [vmem:[#allocation19_spill] sm:$0xff]  ;;  %v11407_v7 = vld [vmem:[#allocation30_spill] sm:$0xff] }
 0x270   : > { %2748 = vrot.lane.b32.xlu0 %v7511_v36, %s6902_s18  ;;  %3885 = vmatprep.subr.bf16.mxu1 %v2096_v24  ;;  %v8189_v60 = vpop.permute.xlu1 %2561  ;;  %v2183_v8 = vsel %vm2181_vm3, %v11403_v15, %v11402_v33  ;;  %v8205_v24 = vpop.f32.mrb[19].mxu1  ;;  %v2199_v63 = vsel %vm2181_vm3, %v11402_v33, %v11403_v15  ;;  %v2082_v15 = vmul.f32 %v7955_v16, %v2027_v47  ;;  %v11411_v12 = vld [vmem:[#allocation23_spill] sm:$0xff] }
 0x271   : > { %11399 = vst [vmem:[#allocation90_spill] sm:$0xff] %v8189_v60  ;;  %11404 = vst [vmem:[#allocation19_spill] sm:$0xff] %v8205_v24  ;;  %v2182_v24 = vsel %vm2181_vm3, %v11406_v34, %v11405_v22  ;;  %v2225_v62 = vmul.f32 %v8213_v45, %v2183_v8  ;;  %v8252_v8 = vld [vmem:[%s11139_s1] sm:$0xff]  ;;  %v2198_v47 = vsel %vm2181_vm3, %v11405_v22, %v11406_v34 }
 0x272   : > { %v8201_v35 = vpop.permute.xlu0 %2346  ;;  %2750 = vrot.lane.b32.xlu1 %v7517_v61, %s6902_s18 }
 0x273   : > { %3886 = vmatpush1.bf16.msra.mxu1 %v2095_v9  ;;  %v2081_v9 = vmul.f32 %v7985_v58, %v2043_v48  ;;  %v2223_v48 = vmul.f32 %v8213_v45, %v2182_v24 }
 0x274   : > { %2720 = vrot.lane.b32.xlu0 %v11407_v7, %s6902_s18  ;;  %3887 = vmatprep.subr.bf16.mxu1 %v2098_v27  ;;  %v2011_v30 = vpop.permute.xlu1 %2010 }
 0x275   : > { %v2028_v17 = vsel %vm2012_vm2, %v7928_v44, %v2011_v30  ;;  %v2044_v57 = vsel %vm2012_vm2, %v2011_v30, %v7928_v44  ;;  %v8255_v44 = vrot.slane %v8252_v8, %v2216_v52  ;;  %v11410_v30 = vld [vmem:[#allocation27_spill] sm:$0xff] }
 0x276   : > { %v2083_v33 = vmul.f32 %v7985_v58, %v2044_v57  ;;  %v2084_v27 = vmul.f32 %v7955_v16, %v2028_v17  ;;  %v8245_v38 = vpop.permute.xlu0 %2527  ;;  %2722 = vrot.lane.b32.xlu1 %v11409_v20, %s6902_s18  ;;  %v2185_v58 = vsel %vm2181_vm3, %v11411_v12, %v11410_v30  ;;  %v8261_v16 = vpop.f32.mrb[20].mxu1  ;;  %v11413_v57 = vld [vmem:[#allocation36_spill] sm:$0xff]  ;;  %v2201_v34 = vsel %vm2181_vm3, %v11410_v30, %v11411_v12 }
 0x277   : > { %11408 = vst [vmem:[#allocation15_spill] sm:$0xff] %v8245_v38  ;;  %3888 = vmatpush1.bf16.msra.mxu1 %v2097_v6  ;;  %11412 = vst [vmem:[#allocation18_spill] sm:$0xff] %v8261_v16  ;;  %v8272_v60 = vpop.f32.mrb[21].mxu1  ;;  %v2224_v6 = vmul.f32 %v8255_v44, %v2199_v63  ;;  %v11417_v16 = vld [vmem:[#allocation22_spill] sm:$0xff]  ;;  %v2229_v24 = vmul.f32 %v8213_v45, %v2185_v58  ;;  %v2255_v63 = vpack.c.bf16 %v2225_v62, %v2223_v48  ;;  %v6658_v12 = vld [vmem:[%s11141_s3 + $0x4c] ss:$36 sps:$4 sm:$0xff]  }
 0x278   : > { %v2099_v17 = vpack.c.bf16 %v2083_v33, %v2081_v9  ;;  %2752 = vrot.lane.b32.xlu0 %v11413_v57, %s6902_s18  ;;  %v8270_v52 = vpop.permute.xlu1 %2533  ;;  %v2100_v10 = vpack.c.bf16 %v2084_v27, %v2082_v15  ;;  %11415 = vst [vmem:[#allocation30_spill] sm:$0xff] %v8272_v60  ;;  %v2184_v38 = vsel %vm2181_vm3, %v11417_v16, %v11416_v46  ;;  %v8279_v20 = vpop.f32.mrb[22].mxu1  ;;  %v11420_v9 = vld [vmem:[#allocation37_spill] sm:$0xff]  ;;  %v6655_v15 = vld [vmem:[%s11141_s3] ss:$36 sps:$4 sm:$0xff]   ;;  %v11422_v60 = vld [vmem:[#allocation39_spill] sm:$0xff] }
 0x279   : > { %11414 = vst [vmem:[#allocation14_spill] sm:$0xff] %v8270_v52  ;;  %11418 = vst [vmem:[#allocation27_spill] sm:$0xff] %v8279_v20  ;;  %v8293_v33 = vpop.f32.mrb[23].mxu1  ;;  %v2222_v27 = vmul.f32 %v8255_v44, %v2198_v47  ;;  %v11423_v20 = vld [vmem:[#allocation33_spill] sm:$0xff]  ;;  %v2227_v62 = vmul.f32 %v8213_v45, %v2184_v38  ;;  %v2228_v48 = vmul.f32 %v8255_v44, %v2201_v34 }
 0x27a   : > { %v8286_v22 = vpop.permute.xlu0 %2559  ;;  %2754 = vrot.lane.b32.xlu1 %v11420_v9, %s6902_s18  ;;  %3889 = vmatprep.subr.bf16.mxu1 %v2100_v10  ;;  %11421 = vst [vmem:[#allocation36_spill] sm:$0xff] %v8293_v33  ;;  %v2187_v30 = vsel %vm2181_vm3, %v11423_v20, %v11422_v60  ;;  %v2200_v10 = vsel %vm2181_vm3, %v11416_v46, %v11417_v16  ;;  %v11426_v33 = vld [vmem:[#allocation32_spill] sm:$0xff] }
 0x27b   : > { %11419 = vst [vmem:[#allocation23_spill] sm:$0xff] %v8286_v22  ;;  %3890 = vmatpush1.bf16.msra.mxu1 %v2099_v17  ;;  %v2254_v47 = vpack.c.bf16 %v2224_v6, %v2222_v27  ;;  %v11425_v17 = vld [vmem:[#allocation38_spill] sm:$0xff]  ;;  %v2203_v46 = vsel %vm2181_vm3, %v11422_v60, %v11423_v20  ;;  %v2233_v38 = vmul.f32 %v8213_v45, %v2187_v30  ;;  %v11429_v27 = vld [vmem:[#allocation49_spill] sm:$0xff]  ;;  %v8331_v22 = vpop.f32.mrb[24].mxu1 }
 0x27c   : > { %2724 = vrot.lane.b32.xlu0 %v7634_v19, %s6902_s18  ;;  %3972 = vmatprep.subr.bf16.mxu1 %v2255_v63  ;;  %v8310_v58 = vpop.permute.xlu1 %2565  ;;  %v2186_v52 = vsel %vm2181_vm3, %v11426_v33, %v11425_v17  ;;  %v2257_v6 = vpack.c.bf16 %v2229_v24, %v2227_v62  ;;  %v2226_v34 = vmul.f32 %v8255_v44, %v2200_v10  ;;  %v11428_v63 = vld [vmem:[#allocation54_spill] sm:$0xff]  ;;  %v11432_v10 = vld [vmem:[#allocation53_spill] sm:$0xff]  ;;  %v11433_v62 = vld [vmem:[#allocation47_spill] sm:$0xff] }
 0x27d   : > { %11424 = vst [vmem:[#allocation26_spill] sm:$0xff] %v8310_v58  ;;  %v2189_v58 = vsel %vm2181_vm3, %v11429_v27, %v11428_v63  ;;  %11430 = vst [vmem:[#allocation37_spill] sm:$0xff] %v8331_v22  ;;  %v2202_v60 = vsel %vm2181_vm3, %v11425_v17, %v11426_v33  ;;  %v2231_v20 = vmul.f32 %v8213_v45, %v2186_v52 }
 0x27e   : > { %v8322_v16 = vpop.permute.xlu0 %2531  ;;  %2726 = vrot.lane.b32.xlu1 %v7641_v1, %s6902_s18  ;;  %3892 = vmatmul.mubr.bf16.vlgmr.msra.gmra.mrb[64].mxu1 %v6655_v15  ;;  %v8342_v15 = vpop.f32.mrb[25].mxu1  ;;  %v2256_v30 = vpack.c.bf16 %v2228_v48, %v2226_v34  ;;  %v2205_v52 = vsel %vm2181_vm3, %v11428_v63, %v11429_v27  ;;  %v2237_v33 = vmul.f32 %v8213_v45, %v2189_v58  ;;  %v6661_v58 = vld [vmem:[%s11141_s3 + $0x94] ss:$36 sps:$4 sm:$0xff]   ;;  %v11459_v1 = vld [vmem:[#allocation75_spill] sm:$0xff] }
 0x27f   : > { %11427 = vst [vmem:[#allocation22_spill] sm:$0xff] %v8322_v16  ;;  %3973 = vmatpush1.bf16.msra.mxu1 %v2254_v47  ;;  %3901 = vmatprep.mubr.bf16.mxu1 %v6658_v12  ;;  %11431 = vst [vmem:[#allocation39_spill] sm:$0xff] %v8342_v15  ;;  %v2232_v12 = vmul.f32 %v8255_v44, %v2203_v46  ;;  %v2188_v47 = vsel %vm2181_vm3, %v11433_v62, %v11432_v10  ;;  %v8349_v22 = vpop.f32.mrb[26].mxu1  ;;  %v6660_v46 = vld [vmem:[%s11141_s3 + $0x48] ss:$36 sps:$4 sm:$0xff]   ;;  %v11437_v15 = vld [vmem:[#allocation66_spill] sm:$0xff] }
 0x280   : > { %2756 = vrot.lane.b32.xlu0 %v7669_v21, %s6902_s18  ;;  %3974 = vmatprep.subr.bf16.mxu1 %v2257_v6  ;;  %v8340_v24 = vpop.permute.xlu1 %2179  ;;  %11434 = vst [vmem:[#allocation33_spill] sm:$0xff] %v8349_v22  ;;  %v2259_v48 = vpack.c.bf16 %v2233_v38, %v2231_v20  ;;  %v8363_v6 = vpop.f32.mrb[27].mxu1  ;;  %v2230_v34 = vmul.f32 %v8255_v44, %v2202_v60  ;;  %v11438_v22 = vld [vmem:[#allocation60_spill] sm:$0xff] }
 0x281   : > { %11436 = vst [vmem:[#allocation32_spill] sm:$0xff] %v8363_v6  ;;  %v2191_v63 = vsel %vm2181_vm3, %v11438_v22, %v11437_v15  ;;  %v2204_v38 = vsel %vm2181_vm3, %v11432_v10, %v11433_v62  ;;  %v2235_v27 = vmul.f32 %v8213_v45, %v2188_v47  ;;  %v11439_v6 = vld [vmem:[#allocation65_spill] sm:$0xff]  ;;  %v2207_v10 = vsel %vm2181_vm3, %v11437_v15, %v11438_v22  ;;  %v8402_v21 = vpop.f32.mrb[28].mxu1 }
 0x282   : > { %v8356_v17 = vpop.permute.xlu0 %2563  ;;  %2758 = vrot.lane.b32.xlu1 %v7675_v49, %s6902_s18  ;;  %v2258_v20 = vpack.c.bf16 %v2232_v12, %v2230_v34  ;;  %v11239_v49 = vmov 1   ;;  %v2241_v62 = vmul.f32 %v8213_v45, %v2191_v63  ;;  %v11443_v34 = vld [vmem:[#allocation72_spill] sm:$0xff]  ;;  %11444 = vst [vmem:[#allocation49_spill] sm:$0xff] %v8402_v21  ;;  %v8413_v63 = vpop.f32.mrb[29].mxu1  ;;  %s6908_s18 = smov [#allocation3]  }
 0x283   : > { %11435 = vst [vmem:[#allocation38_spill] sm:$0xff] %v8356_v17  ;;  %3975 = vmatpush1.bf16.msra.mxu1 %v2256_v30  ;;  %v2236_v30 = vmul.f32 %v8255_v44, %v2205_v52  ;;  %v11440_v17 = vld [vmem:[#allocation59_spill] sm:$0xff]  ;;  %6614 = vset.pattern.permute.xlu0 %v11239_v49  ;;  %v2261_v12 = vpack.c.bf16 %v2237_v33, %v2235_v27  ;;  %11447 = vst [vmem:[#allocation47_spill] sm:$0xff] %v8413_v63  ;;  %v11448_v27 = vld [vmem:[#allocation73_spill] sm:$0xff]  ;;  %s6836_s19 = sshll.u32 %s6908_s18, 4  ;;  %s6837_s19 = int_to_ptr.vmem [resolvable:$false] %s6836_s19 }
 0x284   : > { %2865 = vrot.lane.b32.xlu0 %v7091_v39, %s6903_s9  ;;  %3976 = vmatprep.subr.bf16.mxu1 %v2259_v48  ;;  %v8380_v60 = vpop.permute.xlu1 %2348  ;;  %v2190_v16 = vsel %vm2181_vm3, %v11440_v17, %v11439_v6  ;;  %v2234_v52 = vmul.f32 %v8255_v44, %v2204_v38  ;;  %v11442_v48 = vld [vmem:[#allocation74_spill] sm:$0xff]  ;;  %v2206_v22 = vsel %vm2181_vm3, %v11439_v6, %v11440_v17  ;;  %v11445_v33 = vld [vmem:[#allocation7_spill] sm:$0xff]  ;;  %s6838_s28 = scalar_lea.vmem %s6837_s19, 32768  ;;  %p6839_p0 = scmp.lt.s32.totalorder %s11090_s17, %s6837_s19 }
 0x285   : > { %v2193_v49 = vsel %vm2181_vm3, %v11443_v34, %v11442_v48  ;;  %v2239_v15 = vmul.f32 %v8213_v45, %v2190_v16  ;;  %v8421_v16 = vpop.f32.mrb[30].mxu1  ;;  %v2209_v17 = vsel %vm2181_vm3, %v11442_v48, %v11443_v34  ;;  %v2238_v63 = vmul.f32 %v8255_v44, %v2206_v22  ;;  %p6840_p1 = scmp.lt.s32.totalorder %s6838_s28, %s6832_s10 }
 0x286   : > { %v8393_v47 = vpop.permute.xlu0 %2535  ;;  %2867 = vrot.lane.b32.xlu1 %v7093_v42, %s6903_s9  ;;  %3902 = vmatmul.mubr.bf16.gmra.mrb[68].mxu1 %v6660_v46  ;;  %v2260_v38 = vpack.c.bf16 %v2236_v30, %v2234_v52  ;;  %11450 = vst [vmem:[#allocation66_spill] sm:$0xff] %v8421_v16  ;;  %v2245_v6 = vmul.f32 %v8213_v45, %v2193_v49  ;;  %v6663_v52 = vld [vmem:[%s11141_s3 + $0x90] ss:$36 sps:$4 sm:$0xff]   ;;  %v11454_v16 = vld [vmem:[#allocation78_spill] sm:$0xff] }
 0x287   : > { %11441 = vst [vmem:[#allocation54_spill] sm:$0xff] %v8393_v47  ;;  %3977 = vmatpush1.bf16.msra.mxu1 %v2258_v20  ;;  %3911 = vmatprep.mubr.bf16.mxu1 %v6661_v58  ;;  %v2240_v58 = vmul.f32 %v8255_v44, %v2207_v10  ;;  %v11449_v20 = vld [vmem:[#allocation71_spill] sm:$0xff]  ;;  %v11243_v47 = vmov 3   ;;  %v11452_v10 = vld [vmem:[#allocation8_spill] sm:$0xff]  ;;  %v6664_v49 = vld [vmem:[%s11141_s3 + $0xdc] ss:$36 sps:$4 sm:$0xff]   ;;  %p6841_p2 = por %p6840_p1, %p6839_p0 }
 0x288   : > { %2897 = vrot.lane.b32.xlu0 %v11445_v33, %s6903_s9  ;;  %3978 = vmatprep.subr.bf16.mxu1 %v2261_v12  ;;  %v8411_v46 = vpop.permute.xlu1 %2537  ;;  %v2192_v21 = vsel %vm2181_vm3, %v11449_v20, %v11448_v27  ;;  %v2263_v12 = vpack.c.bf16 %v2241_v62, %v2239_v15  ;;  %v2208_v62 = vsel %vm2181_vm3, %v11448_v27, %v11449_v20  ;;  %v11456_v15 = vld [vmem:[#allocation9_spill] sm:$0xff] }
 0x289   : > { %11446 = vst [vmem:[#allocation53_spill] sm:$0xff] %v8411_v46  ;;  %6612 = vset.pattern.permute.xlu1 %v11243_v47  ;;  %v8435_v47 = vpop.f32.mrb[31].mxu1  ;;  %v11455_v46 = vld [vmem:[#allocation76_spill] sm:$0xff]  ;;  %v2243_v34 = vmul.f32 %v8213_v45, %v2192_v21  ;;  %p6842_p3 = pnand %p6841_p2, %p6835_p13 }
 0x28a   : > { %v8428_v30 = vpop.permute.xlu0 %2567  ;;  %2899 = vrot.lane.b32.xlu1 %v11452_v10, %s6903_s9  ;;  %11453 = vst [vmem:[#allocation65_spill] sm:$0xff] %v8435_v47  ;;  %v2195_v48 = vsel %vm2181_vm3, %v11455_v46, %v11454_v16  ;;  %v2262_v47 = vpack.c.bf16 %v2240_v58, %v2238_v63  ;;  %v2211_v27 = vsel %vm2181_vm3, %v11454_v16, %v11455_v46  ;;  %v2385_v46 = vsub.s32 3, %v7337_v13 }
 0x28b   : > { %11451 = vst [vmem:[#allocation60_spill] sm:$0xff] %v8428_v30  ;;  %3979 = vmatpush1.bf16.msra.mxu1 %v2260_v38  ;;  %v2244_v38 = vmul.f32 %v8255_v44, %v2209_v17  ;;  %v11458_v30 = vld [vmem:[#allocation77_spill] sm:$0xff]  ;;  %v2249_v21 = vmul.f32 %v8213_v45, %v2195_v48  ;;  %v2265_v63 = vpack.c.bf16 %v2245_v6, %v2243_v34  ;;  %v11467_v34 = vld [vmem:[#allocation79_spill] sm:$0xff] }
 0x28c   : > { %2869 = vrot.lane.b32.xlu0 %v11456_v15, %s6903_s9  ;;  %3980 = vmatprep.subr.bf16.mxu1 %v2263_v12  ;;  %v8452_v22 = vpop.permute.xlu1 %2569  ;;  %v2194_v19 = vsel %vm2181_vm3, %v11459_v1, %v11458_v30  ;;  %v11461_v12 = vld [vmem:[#allocation10_spill] sm:$0xff]  ;;  %v2242_v58 = vmul.f32 %v8255_v44, %v2208_v62  ;;  %v11462_v17 = vld [vmem:[#allocation81_spill] sm:$0xff]  ;;  %v8473_v15 = vpop.f32.mrb[32].mxu1  ;;  %v2210_v16 = vsel %vm2181_vm3, %v11458_v30, %v11459_v1 }
 0x28d   : > { %11457 = vst [vmem:[#allocation59_spill] sm:$0xff] %v8452_v22  ;;  %v2197_v22 = vsel %vm2181_vm3, %v11462_v17, %v8340_v24  ;;  %11463 = vst [vmem:[#allocation72_spill] sm:$0xff] %v8473_v15  ;;  %v2247_v6 = vmul.f32 %v8213_v45, %v2194_v19  ;;  %v8485_v62 = vpop.f32.mrb[33].mxu1  ;;  %v2196_v15 = vsel %vm2181_vm3, %v11467_v34, %v8046_v4 }
 0x28e   : > { %v8464_v20 = vpop.permute.xlu0 %2539  ;;  %2871 = vrot.lane.b32.xlu1 %v11461_v12, %s6903_s9  ;;  %3912 = vmatmul.mubr.bf16.gmra.mrb[72].mxu1 %v6663_v52  ;;  %v11464_v52 = vld [vmem:[#allocation11_spill] sm:$0xff]  ;;  %11466 = vst [vmem:[#allocation73_spill] sm:$0xff] %v8485_v62  ;;  %v2213_v19 = vsel %vm2181_vm3, %v8340_v24, %v11462_v17  ;;  %v2253_v1 = vmul.f32 %v8213_v45, %v2197_v22  ;;  %v11472_v62 = vld [vmem:[#allocation21_spill] sm:$0xff] }
 0x28f   : > { %11460 = vst [vmem:[#allocation74_spill] sm:$0xff] %v8464_v20  ;;  %3981 = vmatpush1.bf16.msra.mxu1 %v2262_v47  ;;  %3921 = vmatprep.mubr.bf16.mxu1 %v6664_v49  ;;  %v2264_v47 = vpack.c.bf16 %v2244_v38, %v2242_v58  ;;  %v2248_v49 = vmul.f32 %v8255_v44, %v2211_v27  ;;  %v8492_v20 = vpop.f32.mrb[34].mxu1  ;;  %v11470_v38 = vld [vmem:[#allocation12_spill] sm:$0xff]  ;;  %v6667_v22 = vld [vmem:[%s11141_s3 + $0x124] ss:$36 sps:$4 sm:$0xff]  }
 0x290   : > { %2901 = vrot.lane.b32.xlu0 %v11464_v52, %s6903_s9  ;;  %3982 = vmatprep.subr.bf16.mxu1 %v2265_v63  ;;  %v8483_v48 = vpop.permute.xlu1 %2541  ;;  %11468 = vst [vmem:[#allocation71_spill] sm:$0xff] %v8492_v20  ;;  %v2267_v27 = vpack.c.bf16 %v2249_v21, %v2247_v6  ;;  %v6666_v63 = vld [vmem:[%s11141_s3 + $0xd8] ss:$36 sps:$4 sm:$0xff]   ;;  %v8507_v58 = vpop.f32.mrb[35].mxu1  ;;  %v2246_v24 = vmul.f32 %v8255_v44, %v2210_v16 }
 0x291   : > { %11465 = vst [vmem:[#allocation7_spill] sm:$0xff] %v8483_v48  ;;  %11471 = vst [vmem:[#allocation78_spill] sm:$0xff] %v8507_v58  ;;  %v11473_v20 = vld [vmem:[#allocation17_spill] sm:$0xff]  ;;  %v8518_v21 = vrot.slane %v8210_v59, %v2385_v46  ;;  %v2212_v17 = vsel %vm2181_vm3, %v8046_v4, %v11467_v34  ;;  %v2251_v6 = vmul.f32 %v8213_v45, %v2196_v15 }
 0x292   : > { %v8500_v30 = vpop.permute.xlu0 %2571  ;;  %2903 = vrot.lane.b32.xlu1 %v11470_v38, %s6903_s9  ;;  %v2352_v48 = vsel %vm2350_vm4, %v11473_v20, %v11472_v62  ;;  %v11474_v58 = vld [vmem:[#allocation13_spill] sm:$0xff]  ;;  %v2266_v39 = vpack.c.bf16 %v2248_v49, %v2246_v24  ;;  %v2252_v38 = vmul.f32 %v8255_v44, %v2213_v19  ;;  %v2368_v4 = vsel %vm2350_vm4, %v11472_v62, %v11473_v20  ;;  %v8551_v20 = vpop.f32.mrb[36].mxu1 }
 0x293   : > { %11469 = vst [vmem:[#allocation8_spill] sm:$0xff] %v8500_v30  ;;  %3983 = vmatpush1.bf16.msra.mxu1 %v2264_v47  ;;  %v11476_v47 = vld [vmem:[#allocation20_spill] sm:$0xff]  ;;  %v2394_v45 = vmul.f32 %v8518_v21, %v2352_v48  ;;  %v2269_v34 = vpack.c.bf16 %v2253_v1, %v2251_v6  ;;  %v11479_v49 = vld [vmem:[#allocation29_spill] sm:$0xff]  ;;  %11481 = vst [vmem:[#allocation75_spill] sm:$0xff] %v8551_v20  ;;  %v8562_v1 = vpop.f32.mrb[37].mxu1 }
 0x294   : > { %2873 = vrot.lane.b32.xlu0 %v11474_v58, %s6903_s9  ;;  %3984 = vmatprep.subr.bf16.mxu1 %v2267_v27  ;;  %v8527_v16 = vpop.permute.xlu1 %2573  ;;  %v11477_v30 = vld [vmem:[#allocation16_spill] sm:$0xff]  ;;  %v8544_v27 = vrot.slane %v8252_v8, %v2385_v46  ;;  %v11480_v24 = vld [vmem:[#allocation25_spill] sm:$0xff]  ;;  %11482 = vst [vmem:[#allocation81_spill] sm:$0xff] %v8562_v1  ;;  %v8569_v6 = vpop.f32.mrb[38].mxu1  ;;  %v11488_v1 = vld [vmem:[#allocation43_spill] sm:$0xff] }
 0x295   : > { %11475 = vst [vmem:[#allocation76_spill] sm:$0xff] %v8527_v16  ;;  %v2351_v12 = vsel %vm2350_vm4, %v11477_v30, %v11476_v47  ;;  %v2354_v19 = vsel %vm2350_vm4, %v11480_v24, %v11479_v49  ;;  %v2250_v16 = vmul.f32 %v8255_v44, %v2212_v17  ;;  %v2367_v48 = vsel %vm2350_vm4, %v11476_v47, %v11477_v30  ;;  %v11483_v44 = vld [vmem:[#allocation28_spill] sm:$0xff]  ;;  %v11489_v20 = vld [vmem:[#allocation35_spill] sm:$0xff] }
 0x296   : > { %v8539_v15 = vpop.permute.xlu0 %2543  ;;  %2875 = vrot.lane.b32.xlu1 %v7225_v28, %s6903_s9  ;;  %3922 = vmatmul.mubr.bf16.gmra.mrb[76].mxu1 %v6666_v63  ;;  %v2392_v62 = vmul.f32 %v8518_v21, %v2351_v12  ;;  %v11484_v63 = vld [vmem:[#allocation24_spill] sm:$0xff]  ;;  %11485 = vst [vmem:[#allocation11_spill] sm:$0xff] %v8569_v6  ;;  %v2370_v12 = vsel %vm2350_vm4, %v11479_v49, %v11480_v24  ;;  %v11492_v6 = vld [vmem:[#allocation34_spill] sm:$0xff] }
 0x297   : > { %11478 = vst [vmem:[#allocation77_spill] sm:$0xff] %v8539_v15  ;;  %3985 = vmatpush1.bf16.msra.mxu1 %v2266_v39  ;;  %3931 = vmatprep.mubr.bf16.mxu1 %v6667_v22  ;;  %v2393_v39 = vmul.f32 %v8544_v27, %v2368_v4  ;;  %v2353_v22 = vsel %vm2350_vm4, %v11484_v63, %v11483_v44  ;;  %v6670_v24 = vld [vmem:[%s11141_s3 + $0x16c] ss:$36 sps:$4 sm:$0xff]  }
 0x298   : > { %2905 = vrot.lane.b32.xlu0 %v7243_v31, %s6903_s9  ;;  %3986 = vmatprep.subr.bf16.mxu1 %v2269_v34  ;;  %v8560_v46 = vpop.permute.xlu1 %2545  ;;  %v2268_v17 = vpack.c.bf16 %v2252_v38, %v2250_v16  ;;  %v2398_v30 = vmul.f32 %v8518_v21, %v2354_v19  ;;  %v2424_v4 = vpack.c.bf16 %v2394_v45, %v2392_v62  ;;  %v6669_v34 = vld [vmem:[%s11141_s3 + $0x120] ss:$36 sps:$4 sm:$0xff]   ;;  %v8583_v38 = vpop.f32.mrb[39].mxu1 }
 0x299   : > { %11487 = vst [vmem:[#allocation21_spill] sm:$0xff] %v8583_v38  ;;  %v2391_v16 = vmul.f32 %v8544_v27, %v2367_v48  ;;  %v2356_v49 = vsel %vm2350_vm4, %v11489_v20, %v11488_v1  ;;  %v2369_v45 = vsel %vm2350_vm4, %v11483_v44, %v11484_v63  ;;  %v2396_v19 = vmul.f32 %v8518_v21, %v2353_v22  ;;  %v11491_v38 = vld [vmem:[#allocation41_spill] sm:$0xff] }
 0x29a   : > { %v8576_v47 = vpop.permute.xlu0 %2575  ;;  %2907 = vrot.lane.b32.xlu1 %v7247_v32, %s6903_s9  ;;  %v2372_v44 = vsel %vm2350_vm4, %v11488_v1, %v11489_v20  ;;  %v2402_v63 = vmul.f32 %v8518_v21, %v2356_v49  ;;  %v2371_v20 = vsel %vm2350_vm4, %v11491_v38, %v11492_v6 }
 0x29b   : > { %11486 = vst [vmem:[#allocation79_spill] sm:$0xff] %v8576_v47  ;;  %3987 = vmatpush1.bf16.msra.mxu1 %v2268_v17  ;;  %v2423_v62 = vpack.c.bf16 %v2393_v39, %v2391_v16  ;;  %v2397_v17 = vmul.f32 %v8544_v27, %v2370_v12  ;;  %v2355_v47 = vsel %vm2350_vm4, %v11492_v6, %v11491_v38  ;;  %v11495_v16 = vld [vmem:[#allocation51_spill] sm:$0xff] }
 0x29c   : > { %2877 = vrot.lane.b32.xlu0 %v7269_v40, %s6903_s9  ;;  %3988 = vmatprep.subr.bf16.mxu1 %v2424_v4  ;;  %v8600_v48 = vpop.permute.xlu1 %2577  ;;  %v2426_v39 = vpack.c.bf16 %v2398_v30, %v2396_v19  ;;  %v2395_v12 = vmul.f32 %v8544_v27, %v2369_v45  ;;  %v11494_v4 = vld [vmem:[#allocation56_spill] sm:$0xff]  ;;  %v2400_v1 = vmul.f32 %v8518_v21, %v2355_v47  ;;  %v11498_v45 = vld [vmem:[#allocation55_spill] sm:$0xff]  ;;  %v11499_v19 = vld [vmem:[#allocation50_spill] sm:$0xff] }
 0x29d   : > { %11490 = vst [vmem:[#allocation17_spill] sm:$0xff] %v8600_v48  ;;  %v2358_v15 = vsel %vm2350_vm4, %v11495_v16, %v11494_v4  ;;  %v8621_v48 = vpop.f32.mrb[40].mxu1  ;;  %v2374_v6 = vsel %vm2350_vm4, %v11494_v4, %v11495_v16 }
 0x29e   : > { %v8612_v22 = vpop.permute.xlu0 %2547  ;;  %2879 = vrot.lane.b32.xlu1 %v7273_v41, %s6903_s9  ;;  %3932 = vmatmul.mubr.bf16.gmra.mrb[80].mxu1 %v6669_v34  ;;  %11496 = vst [vmem:[#allocation20_spill] sm:$0xff] %v8621_v48  ;;  %v8632_v34 = vpop.f32.mrb[41].mxu1  ;;  %v2425_v49 = vpack.c.bf16 %v2397_v17, %v2395_v12  ;;  %v2406_v47 = vmul.f32 %v8518_v21, %v2358_v15  ;;  %v6673_v15 = vld [vmem:[%s11141_s3 + $0x1b4] ss:$36 sps:$4 sm:$0xff]  }
 0x29f   : > { %11493 = vst [vmem:[#allocation13_spill] sm:$0xff] %v8612_v22  ;;  %3989 = vmatpush1.bf16.msra.mxu1 %v2423_v62  ;;  %3941 = vmatprep.mubr.bf16.mxu1 %v6670_v24  ;;  %11497 = vst [vmem:[#allocation16_spill] sm:$0xff] %v8632_v34  ;;  %v2401_v24 = vmul.f32 %v8544_v27, %v2372_v44  ;;  %v2357_v62 = vsel %vm2350_vm4, %v11499_v19, %v11498_v45  ;;  %v8639_v48 = vpop.f32.mrb[42].mxu1  ;;  %v6672_v44 = vld [vmem:[%s11141_s3 + $0x168] ss:$36 sps:$4 sm:$0xff]   ;;  %v11503_v34 = vld [vmem:[#allocation68_spill] sm:$0xff] }
 0x2a0   : > { %2909 = vrot.lane.b32.xlu0 %v7301_v50, %s6903_s9  ;;  %3990 = vmatprep.subr.bf16.mxu1 %v2426_v39  ;;  %v8630_v30 = vpop.permute.xlu1 %2549  ;;  %11500 = vst [vmem:[#allocation29_spill] sm:$0xff] %v8639_v48  ;;  %v2428_v17 = vpack.c.bf16 %v2402_v63, %v2400_v1  ;;  %v8653_v39 = vpop.f32.mrb[43].mxu1  ;;  %v2399_v12 = vmul.f32 %v8544_v27, %v2371_v20  ;;  %v11504_v48 = vld [vmem:[#allocation62_spill] sm:$0xff] }
 0x2a1   : > { %11502 = vst [vmem:[#allocation28_spill] sm:$0xff] %v8653_v39  ;;  %v2360_v4 = vsel %vm2350_vm4, %v11504_v48, %v11503_v34  ;;  %v2373_v63 = vsel %vm2350_vm4, %v11498_v45, %v11499_v19  ;;  %v2404_v16 = vmul.f32 %v8518_v21, %v2357_v62  ;;  %v11505_v39 = vld [vmem:[#allocation67_spill] sm:$0xff]  ;;  %v2376_v45 = vsel %vm2350_vm4, %v11503_v34, %v11504_v48 }
 0x2a2   : > { %v8646_v38 = vpop.permute.xlu0 %2579  ;;  %2911 = vrot.lane.b32.xlu1 %v7305_v51, %s6903_s9  ;;  %v2427_v1 = vpack.c.bf16 %v2401_v24, %v2399_v12  ;;  %v2410_v19 = vmul.f32 %v8518_v21, %v2360_v4 }
 0x2a3   : > { %11501 = vst [vmem:[#allocation25_spill] sm:$0xff] %v8646_v38  ;;  %3991 = vmatpush1.bf16.msra.mxu1 %v2425_v49  ;;  %v2405_v49 = vmul.f32 %v8544_v27, %v2374_v6  ;;  %v11506_v38 = vld [vmem:[#allocation61_spill] sm:$0xff]  ;;  %v2430_v24 = vpack.c.bf16 %v2406_v47, %v2404_v16  ;;  %v2403_v6 = vmul.f32 %v8544_v27, %v2373_v63  ;;  %v8691_v12 = vpop.f32.mrb[44].mxu1 }
 0x2a4   : > { %2881 = vrot.lane.b32.xlu0 %v7342_v23, %s6903_s9  ;;  %3992 = vmatprep.subr.bf16.mxu1 %v2428_v17  ;;  %v8670_v20 = vpop.permute.xlu1 %2581  ;;  %v2359_v22 = vsel %vm2350_vm4, %v11506_v38, %v11505_v39  ;;  %v2361_v17 = vsel %vm2350_vm4, %v7980_v53, %v8080_v18  ;;  %11507 = vst [vmem:[#allocation24_spill] sm:$0xff] %v8691_v12  ;;  %v11524_v12 = vld [vmem:[#allocation9_spill] sm:$0xff] }
 0x2a5   : > { %v2375_v48 = vsel %vm2350_vm4, %v11505_v39, %v11506_v38  ;;  %v2408_v34 = vmul.f32 %v8518_v21, %v2359_v22  ;;  %v2429_v4 = vpack.c.bf16 %v2405_v49, %v2403_v6  ;;  %v2362_v63 = vsel %vm2350_vm4, %v8000_v29, %v8034_v14  ;;  %v6675_v49 = vld [vmem:[%s11141_s3 + $0x1b0] ss:$36 sps:$4 sm:$0xff]  }
 0x2a6   : > { %v8682_v62 = vpop.permute.xlu0 %2551  ;;  %2883 = vrot.lane.b32.xlu1 %v7350_v25, %s6903_s9  ;;  %3942 = vmatmul.mubr.bf16.gmra.mrb[84].mxu1 %v6672_v44  ;;  %v8702_v44 = vpop.f32.mrb[45].mxu1  ;;  %v2377_v22 = vsel %vm2350_vm4, %v8080_v18, %v7980_v53  ;;  %v2412_v38 = vmul.f32 %v8518_v21, %v2361_v17  ;;  %v2363_v53 = vsel %vm2350_vm4, %v8110_v54, %v8144_v55  ;;  %v6676_v18 = vld [vmem:[%s11141_s3 + $0x1fc] ss:$36 sps:$4 sm:$0xff]  }
 0x2a7   : > { %3993 = vmatpush1.bf16.msra.mxu1 %v2427_v1  ;;  %3951 = vmatprep.mubr.bf16.mxu1 %v6673_v15  ;;  %11508 = vst [vmem:[#allocation43_spill] sm:$0xff] %v8702_v44  ;;  %v2409_v15 = vmul.f32 %v8544_v27, %v2376_v45  ;;  %v8709_v16 = vpop.f32.mrb[46].mxu1  ;;  %v2432_v1 = vpack.c.bf16 %v2410_v19, %v2408_v34 }
 0x2a8   : > { %2913 = vrot.lane.b32.xlu0 %v7418_v2, %s6903_s9  ;;  %3994 = vmatprep.subr.bf16.mxu1 %v2430_v24  ;;  %v8700_v47 = vpop.permute.xlu1 %2553  ;;  %11509 = vst [vmem:[#allocation35_spill] sm:$0xff] %v8709_v16  ;;  %v8723_v45 = vpop.f32.mrb[47].mxu1  ;;  %v2407_v24 = vmul.f32 %v8544_v27, %v2375_v48  ;;  %v2378_v19 = vsel %vm2350_vm4, %v8034_v14, %v8000_v29 }
 0x2a9   : > { %11510 = vst [vmem:[#allocation41_spill] sm:$0xff] %v8723_v45  ;;  %v2414_v6 = vmul.f32 %v8518_v21, %v2362_v63  ;;  %v2411_v34 = vmul.f32 %v8544_v27, %v2377_v22  ;;  %v2379_v29 = vsel %vm2350_vm4, %v8144_v55, %v8110_v54  ;;  %v2416_v14 = vmul.f32 %v8518_v21, %v2363_v53 }
 0x2aa   : > { %v8716_v39 = vpop.permute.xlu0 %2583  ;;  %2915 = vrot.lane.b32.xlu1 %v7425_v3, %s6903_s9  ;;  %v2431_v48 = vpack.c.bf16 %v2409_v15, %v2407_v24  ;;  %v2413_v22 = vmul.f32 %v8544_v27, %v2378_v19  ;;  %v2380_v54 = vsel %vm2350_vm4, %v8098_v56, %v8064_v0  ;;  %v2415_v19 = vmul.f32 %v8544_v27, %v2379_v29  ;;  %v6678_v29 = vld [vmem:[%s11141_s3 + $0x1f8] ss:$36 sps:$4 sm:$0xff]  }
 0x2ab   : > { %3995 = vmatpush1.bf16.msra.mxu1 %v2429_v4  ;;  %v2364_v4 = vsel %vm2350_vm4, %v8064_v0, %v8098_v56  ;;  %v2434_v15 = vpack.c.bf16 %v2414_v6, %v2412_v38  ;;  %v8761_v24 = vpop.f32.mrb[48].mxu1  ;;  %v2365_v0 = vsel %vm2350_vm4, %v8174_v37, %v8201_v35  ;;  %v2382_v6 = vsel %vm2350_vm4, %v8380_v60, %v8128_v43 }
 0x2ac   : > { %2885 = vrot.lane.b32.xlu0 %v7464_v26, %s6903_s9  ;;  %3996 = vmatprep.subr.bf16.mxu1 %v2432_v1  ;;  %v8740_v17 = vpop.permute.xlu1 %2585  ;;  %v2366_v1 = vsel %vm2350_vm4, %v8128_v43, %v8380_v60  ;;  %11511 = vst [vmem:[#allocation34_spill] sm:$0xff] %v8761_v24  ;;  %v2418_v55 = vmul.f32 %v8518_v21, %v2364_v4  ;;  %v8773_v53 = vpop.f32.mrb[49].mxu1  ;;  %v6681_v43 = vld [vmem:[%s11141_s3 + $0xc] ss:$36 sps:$4 sm:$0xff]  }
 0x2ad   : > { %11512 = vst [vmem:[#allocation56_spill] sm:$0xff] %v8773_v53  ;;  %v8780_v56 = vpop.f32.mrb[50].mxu1  ;;  %v2381_v60 = vsel %vm2350_vm4, %v8201_v35, %v8174_v37  ;;  %v11515_v24 = vld [vmem:[#allocation31_spill] sm:$0xff] }
 0x2ae   : > { %v8752_v63 = vpop.permute.xlu0 %2555  ;;  %2887 = vrot.lane.b32.xlu1 %v7471_v5, %s6903_s9  ;;  %3952 = vmatmul.mubr.bf16.gmra.mrb[88].mxu1 %v6675_v49  ;;  %v2457_v49 = vsub.s32 4, %v7337_v13  ;;  %11513 = vst [vmem:[#allocation51_spill] sm:$0xff] %v8780_v56  ;;  %v11527_v56 = vld [vmem:[#allocation42_spill] sm:$0xff] }
 0x2af   : > { %3997 = vmatpush1.bf16.msra.mxu1 %v2431_v48  ;;  %3961 = vmatprep.mubr.bf16.mxu1 %v6676_v18  ;;  %v2433_v18 = vpack.c.bf16 %v2413_v22, %v2411_v34  ;;  %v2422_v48 = vmul.f32 %v8518_v21, %v2366_v1  ;;  %v2436_v34 = vpack.c.bf16 %v2418_v55, %v2416_v14 }
 0x2b0   : > { %2917 = vrot.lane.b32.xlu0 %v7511_v36, %s6903_s9  ;;  %3998 = vmatprep.subr.bf16.mxu1 %v2434_v15  ;;  %v8770_v38 = vpop.permute.xlu1 %2557  ;;  %v8794_v15 = vpop.f32.mrb[51].mxu1  ;;  %v2417_v22 = vmul.f32 %v8544_v27, %v2380_v54  ;;  %v2420_v14 = vmul.f32 %v8518_v21, %v2365_v0  ;;  %v8810_v54 = vrot.slane %v8210_v59, %v2457_v49 }
 0x2b1   : > { %11514 = vst [vmem:[#allocation55_spill] sm:$0xff] %v8794_v15  ;;  %v2419_v21 = vmul.f32 %v8544_v27, %v2381_v60  ;;  %v8821_v0 = vrot.slane %v8252_v8, %v2457_v49  ;;  %v6679_v60 = vld [vmem:[%s11141_s3 + $0x8] ss:$36 sps:$4 sm:$0xff]   ;;  %v11525_v15 = vld [vmem:[#allocation10_spill] sm:$0xff] }
 0x2b2   : > { %v8787_v4 = vpop.permute.xlu0 %2587  ;;  %2919 = vrot.lane.b32.xlu1 %v7517_v61, %s6903_s9  ;;  %v2435_v55 = vpack.c.bf16 %v2417_v22, %v2415_v19  ;;  %v2438_v37 = vpack.c.bf16 %v2422_v48, %v2420_v14  ;;  %v2466_v35 = vmul.f32 %v8810_v54, %v11452_v10  ;;  %v2464_v48 = vmul.f32 %v8810_v54, %v11445_v33 }
 0x2b3   : > { %3999 = vmatpush1.bf16.msra.mxu1 %v2433_v18  ;;  %v2421_v18 = vmul.f32 %v8544_v27, %v2382_v6  ;;  %v8823_v19 = vpop.f32.mrb[52].mxu1  ;;  %v2465_v27 = vmul.f32 %v8821_v0, %v7093_v42  ;;  %v2468_v14 = vmul.f32 %v8810_v54, %v11464_v52  ;;  %v2474_v16 = vmul.f32 %v8810_v54, %v7247_v32 }
 0x2b4   : > { %2889 = vrot.lane.b32.xlu0 %v11407_v7, %s6903_s9  ;;  %4000 = vmatprep.subr.bf16.mxu1 %v2436_v34  ;;  %v8807_v1 = vpop.permute.xlu1 %2589  ;;  %11516 = vst [vmem:[#allocation50_spill] sm:$0xff] %v8823_v19  ;;  %v8831_v34 = vpop.f32.mrb[53].mxu1 }
 0x2b5   : > { %11517 = vst [vmem:[#allocation68_spill] sm:$0xff] %v8831_v34  ;;  %v8835_v22 = vpop.f32.mrb[54].mxu1 }
 0x2b6   : > { %v8813_v53 = vpop.permute.xlu0 %2696  ;;  %2891 = vrot.lane.b32.xlu1 %v11515_v24, %s6903_s9  ;;  %3962 = vmatmul.mubr.bf16.gmra.mrb[92].mxu1 %v6678_v29  ;;  %v2437_v29 = vpack.c.bf16 %v2421_v18, %v2419_v21  ;;  %11518 = vst [vmem:[#allocation62_spill] sm:$0xff] %v8835_v22  ;;  %v11522_v21 = vld [vmem:[#allocation6_spill] sm:$0xff]  ;;  %v2467_v22 = vmul.f32 %v8821_v0, %v11524_v12 }
 0x2b7   : > { %4001 = vmatpush1.bf16.msra.mxu1 %v2435_v55  ;;  %4004 = vmatprep.mubr.bf16.mxu1 %v6681_v43  ;;  %v2496_v43 = vpack.c.bf16 %v2466_v35, %v2464_v48  ;;  %v11520_v55 = vld [vmem:[#allocation12_spill] sm:$0xff]  ;;  %v2463_v34 = vmul.f32 %v8821_v0, %v11522_v21 }
 0x2b8   : > { %2921 = vrot.lane.b32.xlu0 %v11413_v57, %s6903_s9  ;;  %4002 = vmatprep.subr.bf16.mxu1 %v2438_v37  ;;  %v8827_v6 = vpop.permute.xlu1 %2698  ;;  %v2470_v18 = vmul.f32 %v8810_v54, %v11520_v55  ;;  %v8848_v37 = vpop.f32.mrb[55].mxu1  ;;  %v6682_v35 = vld [vmem:[%s11141_s3 + $0x54] ss:$36 sps:$4 sm:$0xff]  }
 0x2b9   : > { %11521 = vst [vmem:[#allocation61_spill] sm:$0xff] %v8848_v37  ;;  %v11523_v48 = vld [vmem:[#allocation40_spill] sm:$0xff]  ;;  %v2495_v44 = vpack.c.bf16 %v2465_v27, %v2463_v34  ;;  %v11529_v34 = vld [vmem:[#allocation46_spill] sm:$0xff] }
 0x2ba   : > { %v8837_v49 = vpop.permute.xlu0 %2728  ;;  %2923 = vrot.lane.b32.xlu1 %v11420_v9, %s6903_s9  ;;  %v2498_v45 = vpack.c.bf16 %v2470_v18, %v2468_v14  ;;  %v2473_v14 = vmul.f32 %v8821_v0, %v7225_v28 }
 0x2bb   : > { %11519 = vst [vmem:[#allocation67_spill] sm:$0xff] %v8837_v49  ;;  %4003 = vmatpush1.bf16.msra.mxu1 %v2437_v29  ;;  %v2469_v29 = vmul.f32 %v8821_v0, %v11525_v15 }
 0x2bc   : > { %2893 = vrot.lane.b32.xlu0 %v11523_v48, %s6903_s9  ;;  %4085 = vmatprep.subr.bf16.mxu1 %v2496_v43  ;;  %v8857_v19 = vpop.permute.xlu1 %2730  ;;  %v8869_v43 = vpop.f32.mrb[56].mxu1 }
 0x2bd   : > { %11528 = vst [vmem:[#allocation12_spill] sm:$0xff] %v8869_v43  ;;  %v8877_v49 = vpop.f32.mrb[57].mxu1 }
 0x2be   : > { %v8863_v37 = vpop.permute.xlu0 %2700  ;;  %2895 = vrot.lane.b32.xlu1 %v11527_v56, %s6903_s9  ;;  %4005 = vmatmul.mubr.bf16.vlgmr.msra.gmra.mrb[64].mxu1 %v6679_v60  ;;  %11531 = vst [vmem:[#allocation40_spill] sm:$0xff] %v8877_v49  ;;  %v2497_v60 = vpack.c.bf16 %v2469_v29, %v2467_v22  ;;  %v8881_v18 = vpop.f32.mrb[58].mxu1  ;;  %v2471_v22 = vmul.f32 %v8821_v0, %v11474_v58  ;;  %v6685_v29 = vld [vmem:[%s11141_s3 + $0x9c] ss:$36 sps:$4 sm:$0xff]  }
 0x2bf   : > { %11526 = vst [vmem:[#allocation31_spill] sm:$0xff] %v8863_v37  ;;  %4086 = vmatpush1.bf16.msra.mxu1 %v2495_v44  ;;  %4014 = vmatprep.mubr.bf16.mxu1 %v6682_v35  ;;  %v2472_v37 = vmul.f32 %v8810_v54, %v7243_v31  ;;  %11532 = vst [vmem:[#allocation9_spill] sm:$0xff] %v8881_v18  ;;  %v11534_v35 = vld [vmem:[#allocation48_spill] sm:$0xff]  ;;  %v8892_v49 = vpop.f32.mrb[59].mxu1 }
 0x2c0   : > { %2925 = vrot.lane.b32.xlu0 %v11529_v34, %s6903_s9  ;;  %4087 = vmatprep.subr.bf16.mxu1 %v2498_v45  ;;  %v8873_v27 = vpop.permute.xlu1 %2702  ;;  %v6684_v45 = vld [vmem:[%s11141_s3 + $0x50] ss:$36 sps:$4 sm:$0xff]   ;;  %11535 = vst [vmem:[#allocation42_spill] sm:$0xff] %v8892_v49  ;;  %v2499_v18 = vpack.c.bf16 %v2473_v14, %v2471_v22 }
 0x2c1   : > { %11530 = vst [vmem:[#allocation6_spill] sm:$0xff] %v8873_v27  ;;  %v2500_v43 = vpack.c.bf16 %v2474_v16, %v2472_v37  ;;  %v2478_v27 = vmul.f32 %v8810_v54, %v7305_v51  ;;  %v2476_v37 = vmul.f32 %v8810_v54, %v7301_v50 }
 0x2c2   : > { %v8883_v44 = vpop.permute.xlu0 %2732  ;;  %2927 = vrot.lane.b32.xlu1 %v11534_v35, %s6903_s9 }
 0x2c3   : > { %11533 = vst [vmem:[#allocation10_spill] sm:$0xff] %v8883_v44  ;;  %4088 = vmatpush1.bf16.msra.mxu1 %v2497_v60  ;;  %v2477_v60 = vmul.f32 %v8821_v0, %v7273_v41  ;;  %v2502_v44 = vpack.c.bf16 %v2478_v27, %v2476_v37  ;;  %v2486_v37 = vmul.f32 %v8810_v54, %v7517_v61 }
 0x2c4   : > { %3034 = vrot.lane.b32.xlu0 %v11522_v21, %s6906_s11  ;;  %4089 = vmatprep.subr.bf16.mxu1 %v2500_v43  ;;  %v8901_v16 = vpop.permute.xlu1 %2734  ;;  %v2482_v21 = vmul.f32 %v8810_v54, %v7425_v3  ;;  %v2475_v43 = vmul.f32 %v8821_v0, %v7269_v40 }
 0x2c5   : > { %11536 = vst [vmem:[#allocation93_spill] sm:$0xff] %v8901_v16  ;;  %v8915_v16 = vpop.f32.mrb[60].mxu1 }
 0x2c6   : > { %v8907_v49 = vpop.permute.xlu0 %2704  ;;  %3036 = vrot.lane.b32.xlu1 %v7093_v42, %s6906_s11  ;;  %4015 = vmatmul.mubr.bf16.gmra.mrb[68].mxu1 %v6684_v45  ;;  %11537 = vst [vmem:[#allocation94_spill] sm:$0xff] %v8915_v16  ;;  %v2480_v42 = vmul.f32 %v8810_v54, %v7418_v2  ;;  %v8923_v27 = vpop.f32.mrb[61].mxu1  ;;  %v2501_v45 = vpack.c.bf16 %v2477_v60, %v2475_v43  ;;  %v6688_v43 = vld [vmem:[%s11141_s3 + $0xe4] ss:$36 sps:$4 sm:$0xff]  }
 0x2c7   : > { %4090 = vmatpush1.bf16.msra.mxu1 %v2499_v18  ;;  %4024 = vmatprep.mubr.bf16.mxu1 %v6685_v29  ;;  %11538 = vst [vmem:[#allocation95_spill] sm:$0xff] %v8923_v27  ;;  %v2481_v18 = vmul.f32 %v8821_v0, %v7350_v25  ;;  %v8927_v22 = vpop.f32.mrb[62].mxu1  ;;  %v2479_v60 = vmul.f32 %v8821_v0, %v7342_v23 }
 0x2c8   : > { %3066 = vrot.lane.b32.xlu0 %v11445_v33, %s6906_s11  ;;  %4091 = vmatprep.subr.bf16.mxu1 %v2502_v44  ;;  %v8919_v14 = vpop.permute.xlu1 %2706  ;;  %11539 = vst [vmem:[#allocation96_spill] sm:$0xff] %v8927_v22  ;;  %v2504_v33 = vpack.c.bf16 %v2482_v21, %v2480_v42  ;;  %v6687_v44 = vld [vmem:[%s11141_s3 + $0x98] ss:$36 sps:$4 sm:$0xff]   ;;  %v8938_v27 = vpop.f32.mrb[63].mxu1  ;;  %v2484_v21 = vmul.f32 %v8810_v54, %v7511_v36 }
 0x2c9   : > { %11541 = vst [vmem:[#allocation98_spill] sm:$0xff] %v8938_v27  ;;  %v2503_v42 = vpack.c.bf16 %v2481_v18, %v2479_v60  ;;  %v2626_v18 = vsub.s32 5, %v7337_v13  ;;  %v2487_v22 = vmul.f32 %v8821_v0, %v11407_v7 }
 0x2ca   : > { %v8929_v29 = vpop.permute.xlu0 %2736  ;;  %3068 = vrot.lane.b32.xlu1 %v11452_v10, %s6906_s11  ;;  %v2506_v27 = vpack.c.bf16 %v2486_v37, %v2484_v21  ;;  %v2489_v37 = vmul.f32 %v8821_v0, %v11515_v24 }
 0x2cb   : > { %11540 = vst [vmem:[#allocation97_spill] sm:$0xff] %v8929_v29  ;;  %4092 = vmatpush1.bf16.msra.mxu1 %v2501_v45  ;;  %v2485_v45 = vmul.f32 %v8821_v0, %v7471_v5  ;;  %v2493_v29 = vmul.f32 %v8821_v0, %v11527_v56 }
 0x2cc   : > { %3038 = vrot.lane.b32.xlu0 %v11524_v12, %s6906_s11  ;;  %4093 = vmatprep.subr.bf16.mxu1 %v2504_v33  ;;  %v8947_v10 = vpop.permute.xlu1 %2738  ;;  %v2490_v12 = vmul.f32 %v8810_v54, %v11420_v9  ;;  %v2483_v33 = vmul.f32 %v8821_v0, %v7464_v26 }
 0x2ce   : > { %v8953_v16 = vpop.permute.xlu0 %2708  ;;  %3040 = vrot.lane.b32.xlu1 %v11525_v15, %s6906_s11  ;;  %4025 = vmatmul.mubr.bf16.gmra.mrb[72].mxu1 %v6687_v44  ;;  %v2488_v15 = vmul.f32 %v8810_v54, %v11413_v57  ;;  %v2505_v44 = vpack.c.bf16 %v2485_v45, %v2483_v33  ;;  %v11546_v45 = vld [vmem:[#allocation23_spill] sm:$0xff] }
 0x2cf   : > { %11542 = vst [vmem:[#allocation99_spill] sm:$0xff] %v8953_v16  ;;  %4094 = vmatpush1.bf16.msra.mxu1 %v2503_v42  ;;  %4034 = vmatprep.mubr.bf16.mxu1 %v6688_v43  ;;  %v11545_v42 = vld [vmem:[#allocation15_spill] sm:$0xff] }
 0x2d0   : > { %3070 = vrot.lane.b32.xlu0 %v11464_v52, %s6906_s11  ;;  %4095 = vmatprep.subr.bf16.mxu1 %v2506_v27  ;;  %v8964_v60 = vpop.permute.xlu1 %2710  ;;  %v2508_v43 = vpack.c.bf16 %v2490_v12, %v2488_v15  ;;  %v6690_v52 = vld [vmem:[%s11141_s3 + $0xe0] ss:$36 sps:$4 sm:$0xff]   ;;  %v2494_v27 = vmul.f32 %v8810_v54, %v11534_v35  ;;  %v2608_v33 = vsel %vm2591_vm5, %v11546_v45, %v11545_v42 }
 0x2d1   : > { %11543 = vst [vmem:[#allocation100_spill] sm:$0xff] %v8964_v60  ;;  %v8990_v12 = vrot.slane %v8210_v59, %v2626_v18  ;;  %v2492_v35 = vmul.f32 %v8810_v54, %v11529_v34  ;;  %v2507_v60 = vpack.c.bf16 %v2489_v37, %v2487_v22  ;;  %v2592_v59 = vsel %vm2591_vm5, %v11545_v42, %v11546_v45  ;;  %v11550_v22 = vld [vmem:[#allocation22_spill] sm:$0xff] }
 0x2d2   : > { %v8971_v21 = vpop.permute.xlu0 %2740  ;;  %3072 = vrot.lane.b32.xlu1 %v11520_v55, %s6906_s11  ;;  %v6691_v55 = vld [vmem:[%s11141_s3 + $0x12c] ss:$36 sps:$4 sm:$0xff]   ;;  %v9014_v34 = vrot.slane %v8252_v8, %v2626_v18  ;;  %v11551_v37 = vld [vmem:[#allocation38_spill] sm:$0xff]  ;;  %v2491_v42 = vmul.f32 %v8821_v0, %v11523_v48 }
 0x2d3   : > { %11544 = vst [vmem:[#allocation101_spill] sm:$0xff] %v8971_v21  ;;  %4096 = vmatpush1.bf16.msra.mxu1 %v2505_v44  ;;  %v11548_v44 = vld [vmem:[#allocation70_spill] sm:$0xff]  ;;  %v2510_v54 = vpack.c.bf16 %v2494_v27, %v2492_v35 }
 0x2d4   : > { %3042 = vrot.lane.b32.xlu0 %v11474_v58, %s6906_s11  ;;  %4097 = vmatprep.subr.bf16.mxu1 %v2508_v43  ;;  %v8994_v15 = vpop.permute.xlu1 %2742  ;;  %v11549_v21 = vld [vmem:[#allocation90_spill] sm:$0xff]  ;;  %v2633_v58 = vmul.f32 %v8990_v12, %v2608_v33  ;;  %v2632_v35 = vmul.f32 %v9014_v34, %v2592_v59  ;;  %v2509_v27 = vpack.c.bf16 %v2493_v29, %v2491_v42  ;;  %v6693_v33 = vld [vmem:[%s11141_s3 + $0x128] ss:$36 sps:$4 sm:$0xff]   ;;  %v11554_v29 = vld [vmem:[#allocation53_spill] sm:$0xff] }
 0x2d5   : > { %11547 = vst [vmem:[#allocation15_spill] sm:$0xff] %v8994_v15  ;;  %v2609_v16 = vsel %vm2591_vm5, %v11549_v21, %v11548_v44  ;;  %v2610_v15 = vsel %vm2591_vm5, %v11551_v37, %v11550_v22  ;;  %v11552_v18 = vld [vmem:[#allocation14_spill] sm:$0xff] }
 0x2d6   : > { %v9009_v43 = vpop.permute.xlu0 %2712  ;;  %4035 = vmatmul.mubr.bf16.gmra.mrb[76].mxu1 %v6690_v52  ;;  %3044 = vrot.lane.b32.xlu1 %v7225_v28, %s6906_s11  ;;  %v2593_v52 = vsel %vm2591_vm5, %v11548_v44, %v11549_v21  ;;  %v2635_v28 = vmul.f32 %v8990_v12, %v2609_v16  ;;  %v2594_v21 = vsel %vm2591_vm5, %v11550_v22, %v11551_v37  ;;  %v11555_v44 = vld [vmem:[#allocation59_spill] sm:$0xff]  ;;  %v11556_v42 = vld [vmem:[#allocation54_spill] sm:$0xff] }
 0x2d7   : > { %4098 = vmatpush1.bf16.msra.mxu1 %v2507_v60  ;;  %4044 = vmatprep.mubr.bf16.mxu1 %v6691_v55  ;;  %v11553_v60 = vld [vmem:[#allocation26_spill] sm:$0xff]  ;;  %v2637_v16 = vmul.f32 %v8990_v12, %v2610_v15  ;;  %v2634_v55 = vmul.f32 %v9014_v34, %v2593_v52  ;;  %v2613_v59 = vsel %vm2591_vm5, %v11555_v44, %v11554_v29  ;;  %v6694_v15 = vld [vmem:[%s11141_s3 + $0x174] ss:$36 sps:$4 sm:$0xff]  }
 0x2d8   : > { %3074 = vrot.lane.b32.xlu0 %v7243_v31, %s6906_s11  ;;  %v9029_v8 = vpop.permute.xlu1 %2714  ;;  %4099 = vmatprep.subr.bf16.mxu1 %v2510_v54  ;;  %v2611_v0 = vsel %vm2591_vm5, %v11553_v60, %v11552_v18  ;;  %v2665_v31 = vpack.c.bf16 %v2635_v28, %v2633_v58  ;;  %v2636_v37 = vmul.f32 %v9014_v34, %v2594_v21  ;;  %v11557_v52 = vld [vmem:[#allocation60_spill] sm:$0xff] }
 0x2d9   : > { %v2639_v58 = vmul.f32 %v8990_v12, %v2611_v0  ;;  %v2664_v22 = vpack.c.bf16 %v2634_v55, %v2632_v35  ;;  %v2612_v28 = vsel %vm2591_vm5, %v11557_v52, %v11556_v42  ;;  %v11559_v21 = vld [vmem:[#allocation76_spill] sm:$0xff]  ;;  %v2596_v55 = vsel %vm2591_vm5, %v11556_v42, %v11557_v52  ;;  %v11562_v52 = vld [vmem:[#allocation17_spill] sm:$0xff] }
 0x2da   : > { %v9041_v45 = vpop.permute.xlu0 %2744  ;;  %3076 = vrot.lane.b32.xlu1 %v7247_v32, %s6906_s11  ;;  %v2595_v32 = vsel %vm2591_vm5, %v11552_v18, %v11553_v60  ;;  %v2597_v18 = vsel %vm2591_vm5, %v11554_v29, %v11555_v44  ;;  %v2643_v60 = vmul.f32 %v8990_v12, %v2613_v59  ;;  %v11560_v44 = vld [vmem:[#allocation74_spill] sm:$0xff]  ;;  %v11561_v59 = vld [vmem:[#allocation8_spill] sm:$0xff]  ;;  %v2640_v42 = vmul.f32 %v9014_v34, %v2596_v55 }
 0x2db   : > { %4100 = vmatpush1.bf16.msra.mxu1 %v2509_v27  ;;  %v2638_v35 = vmul.f32 %v9014_v34, %v2595_v32  ;;  %v11558_v27 = vld [vmem:[#allocation7_spill] sm:$0xff]  ;;  %v2642_v29 = vmul.f32 %v9014_v34, %v2597_v18  ;;  %v6697_v18 = vld [vmem:[%s11141_s3 + $0x1bc] ss:$36 sps:$4 sm:$0xff]  }
 0x2dc   : > { %3046 = vrot.lane.b32.xlu0 %v7269_v40, %s6906_s11  ;;  %v9063_v54 = vpop.permute.xlu1 %2746  ;;  %4101 = vmatprep.subr.bf16.mxu1 %v2665_v31  ;;  %v2667_v40 = vpack.c.bf16 %v2639_v58, %v2637_v16  ;;  %v2615_v31 = vsel %vm2591_vm5, %v11559_v21, %v11558_v27  ;;  %v2599_v32 = vsel %vm2591_vm5, %v11558_v27, %v11559_v21  ;;  %v11563_v21 = vld [vmem:[#allocation77_spill] sm:$0xff] }
 0x2dd   : > { %v2666_v16 = vpack.c.bf16 %v2638_v35, %v2636_v37  ;;  %v2647_v58 = vmul.f32 %v8990_v12, %v2615_v31  ;;  %v6696_v37 = vld [vmem:[%s11141_s3 + $0x170] ss:$36 sps:$4 sm:$0xff]   ;;  %v2668_v35 = vpack.c.bf16 %v2642_v29, %v2640_v42  ;;  %v2646_v27 = vmul.f32 %v9014_v34, %v2599_v32  ;;  %v11564_v31 = vld [vmem:[#allocation79_spill] sm:$0xff] }
 0x2de   : > { %v9075_v0 = vpop.permute.xlu0 %2716  ;;  %4045 = vmatmul.mubr.bf16.gmra.mrb[80].mxu1 %v6693_v33  ;;  %3048 = vrot.lane.b32.xlu1 %v7273_v41, %s6906_s11  ;;  %v2641_v33 = vmul.f32 %v8990_v12, %v2612_v28  ;;  %v2617_v28 = vsel %vm2591_vm5, %v11562_v52, %v8560_v46  ;;  %v2616_v55 = vsel %vm2591_vm5, %v11564_v31, %v11563_v21 }
 0x2df   : > { %4102 = vmatpush1.bf16.msra.mxu1 %v2664_v22  ;;  %4054 = vmatprep.mubr.bf16.mxu1 %v6694_v15  ;;  %v2614_v15 = vsel %vm2591_vm5, %v11561_v59, %v11560_v44 }
 0x2e0   : > { %3078 = vrot.lane.b32.xlu0 %v7301_v50, %s6906_s11  ;;  %v9091_v41 = vpop.permute.xlu1 %2718  ;;  %4103 = vmatprep.subr.bf16.mxu1 %v2667_v40  ;;  %v2669_v50 = vpack.c.bf16 %v2643_v60, %v2641_v33  ;;  %v2645_v60 = vmul.f32 %v8990_v12, %v2614_v15  ;;  %v2601_v33 = vsel %vm2591_vm5, %v8560_v46, %v11562_v52 }
 0x2e1   : > { %v2600_v46 = vsel %vm2591_vm5, %v11563_v21, %v11564_v31  ;;  %v2649_v15 = vmul.f32 %v8990_v12, %v2616_v55  ;;  %v2603_v52 = vsel %vm2591_vm5, %v8630_v30, %v8670_v20  ;;  %v2620_v55 = vsel %vm2591_vm5, %v8716_v39, %v8682_v62 }
 0x2e2   : > { %v9103_v22 = vpop.permute.xlu0 %2748  ;;  %3080 = vrot.lane.b32.xlu1 %v7305_v51, %s6906_s11  ;;  %v2598_v51 = vsel %vm2591_vm5, %v11560_v44, %v11561_v59  ;;  %v2619_v59 = vsel %vm2591_vm5, %v8670_v20, %v8630_v30  ;;  %v6700_v30 = vld [vmem:[%s11141_s3 + $0x204] ss:$36 sps:$4 sm:$0xff]   ;;  %v2654_v31 = vmul.f32 %v9014_v34, %v2603_v52  ;;  %v2778_v52 = vsel %vm2760_vm6, %v8857_v19, %v8827_v6 }
 0x2e3   : > { %4104 = vmatpush1.bf16.msra.mxu1 %v2666_v16  ;;  %v2651_v16 = vmul.f32 %v8990_v12, %v2617_v28  ;;  %v2644_v29 = vmul.f32 %v9014_v34, %v2598_v51  ;;  %v2655_v28 = vmul.f32 %v8990_v12, %v2619_v59  ;;  %v6699_v51 = vld [vmem:[%s11141_s3 + $0x1b8] ss:$36 sps:$4 sm:$0xff]   ;;  %v2623_v59 = vsel %vm2591_vm5, %v8807_v1, %v8770_v38 }
 0x2e4   : > { %3050 = vrot.lane.b32.xlu0 %v7342_v23, %s6906_s11  ;;  %v9125_v40 = vpop.permute.xlu1 %2750  ;;  %4105 = vmatprep.subr.bf16.mxu1 %v2669_v50  ;;  %v2671_v23 = vpack.c.bf16 %v2647_v58, %v2645_v60  ;;  %v2650_v58 = vmul.f32 %v9014_v34, %v2601_v33  ;;  %v11565_v50 = vld [vmem:[#allocation13_spill] sm:$0xff]  ;;  %v2648_v60 = vmul.f32 %v9014_v34, %v2600_v46  ;;  %v2795_v46 = vsub.s32 6, %v7337_v13 }
 0x2e5   : > { %v2670_v32 = vpack.c.bf16 %v2646_v27, %v2644_v29  ;;  %v2605_v33 = vsel %vm2591_vm5, %v8700_v47, %v8740_v17 }
 0x2e6   : > { %v9137_v44 = vpop.permute.xlu0 %2720  ;;  %4055 = vmatmul.mubr.bf16.gmra.mrb[84].mxu1 %v6696_v37  ;;  %3052 = vrot.lane.b32.xlu1 %v7350_v25, %s6906_s11  ;;  %v11566_v37 = vld [vmem:[#allocation25_spill] sm:$0xff]  ;;  %v2672_v21 = vpack.c.bf16 %v2650_v58, %v2648_v60  ;;  %v2622_v58 = vsel %vm2591_vm5, %v8787_v4, %v8752_v63 }
 0x2e7   : > { %4106 = vmatpush1.bf16.msra.mxu1 %v2668_v35  ;;  %4064 = vmatprep.mubr.bf16.mxu1 %v6697_v18  ;;  %v2618_v42 = vsel %vm2591_vm5, %v11566_v37, %v11565_v50  ;;  %v2621_v35 = vsel %vm2591_vm5, %v8740_v17, %v8700_v47  ;;  %v2604_v47 = vsel %vm2591_vm5, %v8682_v62, %v8716_v39 }
 0x2e8   : > { %3082 = vrot.lane.b32.xlu0 %v7418_v2, %s6906_s11  ;;  %v9153_v25 = vpop.permute.xlu1 %2722  ;;  %4107 = vmatprep.subr.bf16.mxu1 %v2671_v23  ;;  %v2673_v2 = vpack.c.bf16 %v2651_v16, %v2649_v15  ;;  %v2653_v20 = vmul.f32 %v8990_v12, %v2618_v42  ;;  %v2659_v16 = vmul.f32 %v8990_v12, %v2621_v35 }
 0x2e9   : > { %v2657_v17 = vmul.f32 %v8990_v12, %v2620_v55  ;;  %v2607_v62 = vsel %vm2591_vm5, %v8770_v38, %v8807_v1  ;;  %v2656_v42 = vmul.f32 %v9014_v34, %v2604_v47  ;;  %v6705_v38 = vld [vmem:[%s11141_s3 + $0x14] ss:$36 sps:$4 sm:$0xff]   ;;  %v2661_v1 = vmul.f32 %v8990_v12, %v2622_v58 }
 0x2ea   : > { %v9165_v18 = vpop.permute.xlu0 %2752  ;;  %3084 = vrot.lane.b32.xlu1 %v7425_v3, %s6906_s11  ;;  %v2602_v3 = vsel %vm2591_vm5, %v11565_v50, %v11566_v37  ;;  %v6702_v37 = vld [vmem:[%s11141_s3 + $0x200] ss:$36 sps:$4 sm:$0xff]   ;;  %v2662_v35 = vmul.f32 %v9014_v34, %v2607_v62  ;;  %v2782_v58 = vsel %vm2760_vm6, %v8947_v10, %v8919_v14 }
 0x2eb   : > { %4108 = vmatpush1.bf16.msra.mxu1 %v2670_v32  ;;  %v2652_v29 = vmul.f32 %v9014_v34, %v2602_v3  ;;  %v2658_v32 = vmul.f32 %v9014_v34, %v2605_v33  ;;  %v2677_v50 = vpack.c.bf16 %v2659_v16, %v2657_v17  ;;  %v6706_v62 = vld [vmem:[%s11141_s3 + $0x5c] ss:$36 sps:$4 sm:$0xff]  }
 0x2ec   : > { %3054 = vrot.lane.b32.xlu0 %v7464_v26, %s6906_s11  ;;  %v9187_v27 = vpop.permute.xlu1 %2754  ;;  %4109 = vmatprep.subr.bf16.mxu1 %v2673_v2  ;;  %v2675_v26 = vpack.c.bf16 %v2655_v28, %v2653_v20  ;;  %v9252_v28 = vld [vmem:[%s11139_s1 + $0x8] sm:$0xff] }
 0x2ed   : > { %v2674_v15 = vpack.c.bf16 %v2654_v31, %v2652_v29  ;;  %v9255_v2 = vrot.slane %v9252_v28, %v2795_v46  ;;  %v2676_v60 = vpack.c.bf16 %v2658_v32, %v2656_v42  ;;  %v11570_v29 = vld [vmem:[#allocation31_spill] sm:$0xff] }
 0x2ee   : > { %v9199_v23 = vpop.permute.xlu0 %2724  ;;  %4065 = vmatmul.mubr.bf16.gmra.mrb[88].mxu1 %v6699_v51  ;;  %3056 = vrot.lane.b32.xlu1 %v7471_v5, %s6906_s11 }
 0x2ef   : > { %4110 = vmatpush1.bf16.msra.mxu1 %v2672_v21  ;;  %4074 = vmatprep.mubr.bf16.mxu1 %v6700_v30  ;;  %v2804_v30 = vmul.f32 %v9255_v2, %v2778_v52  ;;  %v9279_v21 = vld [vmem:[%s11139_s1] sm:$0xff]  ;;  %v11572_v52 = vld [vmem:[#allocation97_spill] sm:$0xff] }
 0x2f0   : > { %3086 = vrot.lane.b32.xlu0 %v7511_v36, %s6906_s11  ;;  %v9216_v5 = vpop.permute.xlu1 %2726  ;;  %4111 = vmatprep.subr.bf16.mxu1 %v2675_v26  ;;  %v2663_v36 = vmul.f32 %v8990_v12, %v2623_v59  ;;  %v2762_v12 = vsel %vm2760_vm6, %v8827_v6, %v8857_v19  ;;  %v9282_v31 = vrot.slane %v9279_v21, %v2795_v46  ;;  %v11568_v19 = vld [vmem:[#allocation6_spill] sm:$0xff]  ;;  %v11569_v6 = vld [vmem:[#allocation93_spill] sm:$0xff] }
 0x2f1   : > { %v2780_v55 = vsel %vm2760_vm6, %v11569_v6, %v11568_v19  ;;  %v11571_v59 = vld [vmem:[#allocation10_spill] sm:$0xff] }
 0x2f2   : > { %v9229_v39 = vpop.permute.xlu0 %2756  ;;  %3088 = vrot.lane.b32.xlu1 %v7517_v61, %s6906_s11  ;;  %v2606_v61 = vsel %vm2591_vm5, %v8752_v63, %v8787_v4  ;;  %v11567_v63 = vld [vmem:[#allocation67_spill] sm:$0xff]  ;;  %v2803_v26 = vmul.f32 %v9282_v31, %v2762_v12  ;;  %v2779_v47 = vsel %vm2760_vm6, %v11571_v59, %v11570_v29  ;;  %v2808_v17 = vmul.f32 %v9255_v2, %v2780_v55 }
 0x2f3   : > { %4112 = vmatpush1.bf16.msra.mxu1 %v2674_v15  ;;  %v2777_v4 = vsel %vm2760_vm6, %v11567_v63, %v8813_v53  ;;  %v2660_v20 = vmul.f32 %v9014_v34, %v2606_v61  ;;  %v6703_v15 = vld [vmem:[%s11141_s3 + $0x10] ss:$36 sps:$4 sm:$0xff]   ;;  %v2766_v61 = vsel %vm2760_vm6, %v8919_v14, %v8947_v10  ;;  %v2765_v14 = vsel %vm2760_vm6, %v8907_v49, %v11572_v52 }
 0x2f4   : > { %3058 = vrot.lane.b32.xlu0 %v11407_v7, %s6906_s11  ;;  %v9259_v51 = vpop.permute.xlu1 %2758  ;;  %4113 = vmatprep.subr.bf16.mxu1 %v2677_v50  ;;  %v2679_v7 = vpack.c.bf16 %v2663_v36, %v2661_v1  ;;  %v2802_v34 = vmul.f32 %v9255_v2, %v2777_v4  ;;  %v2806_v36 = vmul.f32 %v9255_v2, %v2779_v47  ;;  %v11574_v4 = vld [vmem:[#allocation15_spill] sm:$0xff] }
 0x2f5   : > { %v2678_v16 = vpack.c.bf16 %v2662_v35, %v2660_v20  ;;  %v2812_v1 = vmul.f32 %v9255_v2, %v2782_v58  ;;  %v2811_v20 = vmul.f32 %v9282_v31, %v2766_v61  ;;  %v2786_v47 = vsel %vm2760_vm6, %v9063_v54, %v9029_v8 }
 0x2f6   : > { %v9271_v3 = vpop.permute.xlu0 %2865  ;;  %4075 = vmatmul.mubr.bf16.gmra.mrb[92].mxu1 %v6702_v37  ;;  %3060 = vrot.lane.b32.xlu1 %v11515_v24, %s6906_s11  ;;  %v2761_v24 = vsel %vm2760_vm6, %v8813_v53, %v11567_v63  ;;  %v2764_v53 = vsel %vm2760_vm6, %v11568_v19, %v11569_v6  ;;  %v11573_v63 = vld [vmem:[#allocation100_spill] sm:$0xff]  ;;  %v11576_v19 = vld [vmem:[#allocation99_spill] sm:$0xff]  ;;  %v11577_v6 = vld [vmem:[#allocation101_spill] sm:$0xff]  ;;  %v2788_v61 = vsel %vm2760_vm6, %v9125_v40, %v9091_v41 }
 0x2f7   : > { %4114 = vmatpush1.bf16.msra.mxu1 %v2676_v60  ;;  %4117 = vmatprep.mubr.bf16.mxu1 %v6705_v38  ;;  %v2801_v32 = vmul.f32 %v9282_v31, %v2761_v24  ;;  %v2807_v42 = vmul.f32 %v9282_v31, %v2764_v53  ;;  %v2781_v38 = vsel %vm2760_vm6, %v11572_v52, %v8907_v49  ;;  %v6709_v53 = vld [vmem:[%s11141_s3 + $0xa4] ss:$36 sps:$4 sm:$0xff]  }
 0x2f8   : > { %3090 = vrot.lane.b32.xlu0 %v11413_v57, %s6906_s11  ;;  %v9295_v33 = vpop.permute.xlu1 %2867  ;;  %4115 = vmatprep.subr.bf16.mxu1 %v2679_v7  ;;  %v2834_v57 = vpack.c.bf16 %v2804_v30, %v2802_v34  ;;  %v2784_v12 = vsel %vm2760_vm6, %v11574_v4, %v11573_v63  ;;  %v2810_v10 = vmul.f32 %v9255_v2, %v2781_v38 }
 0x2f9   : > { %v2833_v37 = vpack.c.bf16 %v2803_v26, %v2801_v32  ;;  %v2783_v55 = vsel %vm2760_vm6, %v11577_v6, %v11576_v19  ;;  %v2768_v49 = vsel %vm2760_vm6, %v11573_v63, %v11574_v4  ;;  %v2816_v24 = vmul.f32 %v9255_v2, %v2784_v12 }
 0x2fa   : > { %v9307_v46 = vpop.permute.xlu0 %2897  ;;  %3092 = vrot.lane.b32.xlu1 %v11420_v9, %s6906_s11  ;;  %v2763_v9 = vsel %vm2760_vm6, %v11570_v29, %v11571_v59  ;;  %v2838_v26 = vpack.c.bf16 %v2812_v1, %v2810_v10  ;;  %v6708_v29 = vld [vmem:[%s11141_s3 + $0x58] ss:$36 sps:$4 sm:$0xff]   ;;  %v2809_v59 = vmul.f32 %v9282_v31, %v2765_v14  ;;  %v9419_v1 = vld [vmem:[%s11143_s5 + $0x20] sm:$0xff]  ;;  %v2824_v4 = vmul.f32 %v9255_v2, %v2788_v61 }
 0x2fb   : > { %4116 = vmatpush1.bf16.msra.mxu1 %v2678_v16  ;;  %v2805_v35 = vmul.f32 %v9282_v31, %v2763_v9  ;;  %v11578_v16 = vld [vmem:[#allocation48_spill] sm:$0xff]  ;;  %v2785_v9 = vsel %vm2760_vm6, %v9041_v45, %v9009_v43  ;;  %v11579_v14 = vmov 1  }
 0x2fc   : > { %3062 = vrot.lane.b32.xlu0 %v11523_v48, %s6906_s11  ;;  %v9329_v50 = vpop.permute.xlu1 %2899  ;;  %4198 = vmatprep.subr.bf16.mxu1 %v2834_v57  ;;  %v2836_v48 = vpack.c.bf16 %v2808_v17, %v2806_v36  ;;  %v2767_v17 = vsel %vm2760_vm6, %v11576_v19, %v11577_v6  ;;  %v2814_v57 = vmul.f32 %v9255_v2, %v2783_v55  ;;  %v9459_v6 = vld [vmem:[%s11143_s5 + $0x30] sm:$0xff] }
 0x2fd   : > { %v2835_v7 = vpack.c.bf16 %v2807_v42, %v2805_v35  ;;  %v2837_v58 = vpack.c.bf16 %v2811_v20, %v2809_v59  ;;  %v2770_v36 = vsel %vm2760_vm6, %v9029_v8, %v9063_v54  ;;  %v2813_v38 = vmul.f32 %v9282_v31, %v2767_v17  ;;  %v9487_v17 = vld [vmem:[%s11143_s5 + $0x10] sm:$0xff] }
 0x2fe   : > { %v9341_v60 = vpop.permute.xlu0 %2869  ;;  %3064 = vrot.lane.b32.xlu1 %v11527_v56, %s6906_s11  ;;  %4118 = vmatmul.mubr.bf16.vlgmr.msra.gmra.mrb[64].mxu1 %v6703_v15  ;;  %v11575_v56 = vld [vmem:[#allocation46_spill] sm:$0xff]  ;;  %v6811_v15 = vld [vmem:[%s11143_s5 + $0x8] sm:$0xff]  ;;  %v2840_v52 = vpack.c.bf16 %v2816_v24, %v2814_v57  ;;  %v2769_v8 = vsel %vm2760_vm6, %v9009_v43, %v9041_v45  ;;  %v2818_v54 = vmul.f32 %v9255_v2, %v2785_v9  ;;  %v2964_v57 = vsub.s32 7, %v7337_v13 }
 0x2ff   : > { %4199 = vmatpush1.bf16.msra.mxu1 %v2833_v37  ;;  %4127 = vmatprep.mubr.bf16.mxu1 %v6706_v62  ;;  %v2815_v62 = vmul.f32 %v9282_v31, %v2768_v49  ;;  %v2820_v37 = vmul.f32 %v9255_v2, %v2786_v47  ;;  %v2819_v63 = vmul.f32 %v9282_v31, %v2770_v36 }
 0x300   : > { %3094 = vrot.lane.b32.xlu0 %v11575_v56, %s6906_s11  ;;  %v9357_v30 = vpop.permute.xlu1 %2871  ;;  %4200 = vmatprep.subr.bf16.mxu1 %v2836_v48  ;;  %v2787_v43 = vsel %vm2760_vm6, %v9103_v22, %v9075_v0  ;;  %v2772_v45 = vsel %vm2760_vm6, %v9091_v41, %v9125_v40  ;;  %v6711_v56 = vld [vmem:[%s11141_s3 + $0xa0] ss:$36 sps:$4 sm:$0xff]   ;;  %v2790_v20 = vsel %vm2760_vm6, %v9187_v27, %v9153_v25 }
 0x301   : > { %v2839_v35 = vpack.c.bf16 %v2815_v62, %v2813_v38  ;;  %v2842_v10 = vpack.c.bf16 %v2820_v37, %v2818_v54  ;;  %v9448_v41 = vld [vmem:[%s11143_s5] sm:$0xff]  ;;  %v2771_v40 = vsel %vm2760_vm6, %v9075_v0, %v9103_v22  ;;  %v2822_v19 = vmul.f32 %v9255_v2, %v2787_v43  ;;  %v6712_v22 = vld [vmem:[%s11141_s3 + $0xec] ss:$36 sps:$4 sm:$0xff]  }
 0x302   : > { %v9369_v34 = vpop.permute.xlu0 %2901  ;;  %3096 = vrot.lane.b32.xlu1 %v11578_v16, %s6906_s11  ;;  %v2823_v24 = vmul.f32 %v9282_v31, %v2772_v45  ;;  %v2789_v0 = vsel %vm2760_vm6, %v9165_v18, %v9137_v44  ;;  %v2774_v16 = vsel %vm2760_vm6, %v9153_v25, %v9187_v27  ;;  %v2821_v47 = vmul.f32 %v9282_v31, %v2771_v40 }
 0x303   : > { %4201 = vmatpush1.bf16.msra.mxu1 %v2835_v7  ;;  %v2817_v7 = vmul.f32 %v9282_v31, %v2769_v8  ;;  %v2844_v59 = vpack.c.bf16 %v2824_v4, %v2822_v19  ;;  %v2773_v25 = vsel %vm2760_vm6, %v9137_v44, %v9165_v18  ;;  %v2826_v27 = vmul.f32 %v9255_v2, %v2789_v0 }
 0x304   : > { %3432 = vperm.xlu0 %6614, %v6811_v15   ;;  %v9392_v32 = vpop.permute.xlu1 %2903  ;;  %4202 = vmatprep.subr.bf16.mxu1 %v2838_v26  ;;  %v2828_v26 = vmul.f32 %v9255_v2, %v2790_v20  ;;  %v2843_v62 = vpack.c.bf16 %v2823_v24, %v2821_v47  ;;  %v2827_v9 = vmul.f32 %v9282_v31, %v2774_v16  ;;  %v9623_v47 = vld [vmem:[%s11143_s5 + $0x70] sm:$0xff] }
 0x305   : > { %v2841_v49 = vpack.c.bf16 %v2819_v63, %v2817_v7  ;;  %v2791_v44 = vsel %vm2760_vm6, %v9229_v39, %v9199_v23  ;;  %v2776_v13 = vsel %vm2760_vm6, %v9216_v5, %v9259_v51  ;;  %v2825_v38 = vmul.f32 %v9282_v31, %v2773_v25 }
 0x306   : > { %v9404_v42 = vpop.permute.xlu0 %2873  ;;  %1346 = vperm.xlu1 %6612, %v6811_v15   ;;  %4128 = vmatmul.mubr.bf16.gmra.mrb[68].mxu1 %v6708_v29  ;;  %v9499_v15 = vld [vmem:[%s11143_s5 + $0x40] sm:$0xff]  ;;  %v2846_v37 = vpack.c.bf16 %v2828_v26, %v2826_v27  ;;  %v2947_v61 = vsel %vm2929_vm7, %v9329_v50, %v9295_v33  ;;  %v2830_v8 = vmul.f32 %v9255_v2, %v2791_v44 }
 0x307   : > { %4203 = vmatpush1.bf16.msra.mxu1 %v2837_v58  ;;  %4137 = vmatprep.mubr.bf16.mxu1 %v6709_v53  ;;  %v2792_v53 = vsel %vm2760_vm6, %v9259_v51, %v9216_v5  ;;  %v9528_v5 = vld [vmem:[%s11143_s5 + $0x18] sm:$0xff]  ;;  %v2775_v51 = vsel %vm2760_vm6, %v9199_v23, %v9229_v39  ;;  %v9537_v54 = vrot.slane %v9252_v28, %v2964_v57 }
 0x308   : > { %3444 = vperm.xlu0 %6614, %v9419_v1   ;;  %v9422_v48 = vpop.permute.xlu1 %2875  ;;  %4204 = vmatprep.subr.bf16.mxu1 %v2840_v52  ;;  %v2832_v18 = vmul.f32 %v9255_v2, %v2792_v53  ;;  %v6714_v52 = vld [vmem:[%s11141_s3 + $0xe8] ss:$36 sps:$4 sm:$0xff]   ;;  %v2845_v43 = vpack.c.bf16 %v2827_v9, %v2825_v38  ;;  %v2831_v45 = vmul.f32 %v9282_v31, %v2776_v13  ;;  %v6715_v39 = vld [vmem:[%s11141_s3 + $0x134] ss:$36 sps:$4 sm:$0xff]  }
 0x309   : > { %v2946_v23 = vsel %vm2929_vm7, %v9307_v46, %v9271_v3  ;;  %v2931_v28 = vsel %vm2929_vm7, %v9295_v33, %v9329_v50  ;;  %v2973_v2 = vmul.f32 %v9537_v54, %v2947_v61  ;;  %v2949_v7 = vsel %vm2929_vm7, %v9392_v32, %v9357_v30  ;;  %v9573_v33 = vld [vmem:[%s11143_s5 + $0x28] sm:$0xff]  ;;  %v9584_v50 = vld [vmem:[%s11143_s5 + $0x60] sm:$0xff] }
 0x30a   : > { %v9434_v12 = vpop.permute.xlu0 %2905  ;;  %6613 = vset.pattern.permute.xlu1 %v11579_v14  ;;  %v2848_v14 = vpack.c.bf16 %v2832_v18, %v2830_v8 }
 0x30b   : > { %3428 = vperm.xlu1 %6613, %v9448_v41   ;;  %4205 = vmatpush1.bf16.msra.mxu1 %v2839_v35  ;;  %v9542_v35 = vld [vmem:[%s11143_s5 + $0x50] sm:$0xff] }
 0x30c   : > { %3452 = vperm.xlu0 %6614, %v9459_v6   ;;  %v9462_v55 = vpop.permute.xlu1 %2907  ;;  %4206 = vmatprep.subr.bf16.mxu1 %v2842_v10  ;;  %v2829_v10 = vmul.f32 %v9282_v31, %v2775_v51  ;;  %v2930_v31 = vsel %vm2929_vm7, %v9271_v3, %v9307_v46  ;;  %v2948_v3 = vsel %vm2929_vm7, %v9369_v34, %v9341_v60 }
 0x30d   : > { %v2933_v46 = vsel %vm2929_vm7, %v9357_v30, %v9392_v32  ;;  %v2951_v26 = vsel %vm2929_vm7, %v9462_v55, %v9422_v48  ;;  %v9612_v30 = vld [vmem:[%s11143_s5 + $0x38] sm:$0xff]  ;;  %v2932_v32 = vsel %vm2929_vm7, %v9341_v60, %v9369_v34  ;;  %v2935_v34 = vsel %vm2929_vm7, %v9422_v48, %v9462_v55 }
 0x30e   : > { %v9477_v29 = vpop.permute.xlu0 %2877  ;;  %4138 = vmatmul.mubr.bf16.gmra.mrb[72].mxu1 %v6711_v56  ;;  %v9564_v56 = vrot.slane %v9279_v21, %v2964_v57  ;;  %v2971_v21 = vmul.f32 %v9537_v54, %v2946_v23  ;;  %v2847_v40 = vpack.c.bf16 %v2831_v45, %v2829_v10  ;;  %v2950_v57 = vsel %vm2929_vm7, %v9434_v12, %v9404_v42  ;;  %v6718_v60 = vld [vmem:[%s11141_s3 + $0x17c] ss:$36 sps:$4 sm:$0xff]  }
 0x30f   : > { %3436 = vperm.xlu1 %6613, %v9487_v17   ;;  %4207 = vmatpush1.bf16.msra.mxu1 %v2841_v49  ;;  %v2977_v49 = vmul.f32 %v9537_v54, %v2949_v7  ;;  %v2934_v48 = vsel %vm2929_vm7, %v9404_v42, %v9434_v12  ;;  %v2979_v55 = vmul.f32 %v9537_v54, %v2950_v57  ;;  %v6720_v23 = vld [vmem:[%s11141_s3 + $0x178] ss:$36 sps:$4 sm:$0xff]  }
 0x310   : > { %3460 = vperm.xlu0 %6614, %v9499_v15   ;;  %v9502_v58 = vpop.permute.xlu1 %2879  ;;  %4208 = vmatprep.subr.bf16.mxu1 %v2844_v59  ;;  %v2972_v19 = vmul.f32 %v9564_v56, %v2931_v28  ;;  %v3003_v0 = vpack.c.bf16 %v2973_v2, %v2971_v21  ;;  %v2970_v16 = vmul.f32 %v9564_v56, %v2930_v31  ;;  %v9679_v28 = vld [vmem:[%s11143_s5 + $0x58] sm:$0xff] }
 0x311   : > { %4147 = vmatprep.mubr.bf16.mxu1 %v6712_v22  ;;  %v6717_v22 = vld [vmem:[%s11141_s3 + $0x130] ss:$36 sps:$4 sm:$0xff]   ;;  %v2975_v59 = vmul.f32 %v9537_v54, %v2948_v3  ;;  %v2976_v27 = vmul.f32 %v9564_v56, %v2933_v46  ;;  %v2974_v13 = vmul.f32 %v9564_v56, %v2932_v32  ;;  %v2980_v51 = vmul.f32 %v9564_v56, %v2935_v34  ;;  %v9706_v46 = vld [vmem:[%s11143_s5 + $0x68] sm:$0xff] }
 0x312   : > { %v9515_v36 = vpop.permute.xlu0 %2909  ;;  %v3002_v25 = vpack.c.bf16 %v2972_v19, %v2970_v16 }
 0x313   : > { %3440 = vperm.xlu1 %6613, %v9528_v5   ;;  %4209 = vmatpush1.bf16.msra.mxu1 %v2843_v62  ;;  %v2981_v62 = vmul.f32 %v9537_v54, %v2951_v26  ;;  %v3005_v44 = vpack.c.bf16 %v2977_v49, %v2975_v59  ;;  %v3004_v61 = vpack.c.bf16 %v2976_v27, %v2974_v13  ;;  %v6723_v59 = vld [vmem:[%s11141_s3 + $0x1c0] ss:$36 sps:$4 sm:$0xff]  }
 0x314   : > { %3468 = vperm.xlu0 %6614, %v9542_v35   ;;  %v9545_v63 = vpop.permute.xlu1 %2911  ;;  %4210 = vmatprep.subr.bf16.mxu1 %v2846_v37  ;;  %v9649_v37 = vld [vmem:[%s11143_s5 + $0x48] sm:$0xff]  ;;  %v2952_v8 = vsel %vm2929_vm7, %v9515_v36, %v9477_v29 }
 0x315   : > { %v2953_v18 = vsel %vm2929_vm7, %v9545_v63, %v9502_v58  ;;  %v2937_v42 = vsel %vm2929_vm7, %v9502_v58, %v9545_v63  ;;  %v3007_v45 = vpack.c.bf16 %v2981_v62, %v2979_v55  ;;  %v2936_v58 = vsel %vm2929_vm7, %v9477_v29, %v9515_v36 }
 0x316   : > { %v9560_v4 = vpop.permute.xlu0 %2881  ;;  %4148 = vmatmul.mubr.bf16.gmra.mrb[76].mxu1 %v6714_v52  ;;  %v11580_v52 = vmov 3   ;;  %v2985_v12 = vmul.f32 %v9537_v54, %v2953_v18  ;;  %v2983_v63 = vmul.f32 %v9537_v54, %v2952_v8  ;;  %v2984_v7 = vmul.f32 %v9564_v56, %v2937_v42  ;;  %v6724_v18 = vld [vmem:[%s11141_s3 + $0x20c] ss:$36 sps:$4 sm:$0xff]  }
 0x317   : > { %3448 = vperm.xlu1 %6613, %v9573_v33   ;;  %4211 = vmatpush1.bf16.msra.mxu1 %v2845_v43  ;;  %v2982_v19 = vmul.f32 %v9564_v56, %v2936_v58 }
 0x318   : > { %3476 = vperm.xlu0 %6614, %v9584_v50   ;;  %v9587_v20 = vpop.permute.xlu1 %2883  ;;  %4212 = vmatprep.subr.bf16.mxu1 %v2848_v14  ;;  %v6721_v14 = vld [vmem:[%s11141_s3 + $0x1c4] ss:$36 sps:$4 sm:$0xff]  }
 0x319   : > { %4157 = vmatprep.mubr.bf16.mxu1 %v6715_v39  ;;  %v2978_v39 = vmul.f32 %v9564_v56, %v2934_v48 }
 0x31a   : > { %v9599_v24 = vpop.permute.xlu0 %2913 }
 0x31b   : > { %3456 = vperm.xlu1 %6613, %v9612_v30   ;;  %4213 = vmatpush1.bf16.msra.mxu1 %v2847_v40  ;;  %v3006_v10 = vpack.c.bf16 %v2980_v51, %v2978_v39  ;;  %v2954_v31 = vsel %vm2929_vm7, %v9599_v24, %v9560_v4  ;;  %v3009_v40 = vpack.c.bf16 %v2985_v12, %v2983_v63  ;;  %v6729_v63 = vld [vmem:[%s11141_s3 + $0x1c] ss:$36 sps:$4 sm:$0xff]  }
 0x31c   : > { %3484 = vperm.xlu0 %6614, %v9623_v47   ;;  %v2916_v53 = vpop.permute.xlu1 %2915  ;;  %4214 = vmatprep.subr.bf16.mxu1 %v3003_v0  ;;  %v3008_v0 = vpack.c.bf16 %v2984_v7, %v2982_v19 }
 0x31d   : > { %v2939_v29 = vsel %vm2929_vm7, %v9587_v20, %v2916_v53 }
 0x31e   : > { %v9639_v9 = vpop.permute.xlu0 %2885  ;;  %4158 = vmatmul.mubr.bf16.gmra.mrb[80].mxu1 %v6717_v22  ;;  %v2988_v22 = vmul.f32 %v9564_v56, %v2939_v29 }
 0x31f   : > { %3464 = vperm.xlu1 %6613, %v9649_v37   ;;  %4215 = vmatpush1.bf16.msra.mxu1 %v3002_v25  ;;  %v9729_v25 = vld [vmem:[%s11143_s5 + $0x78] sm:$0xff] }
 0x320   : > { %6615 = vset.pattern.permute.xlu0 %v11580_v52  ;;  %v2888_v38 = vpop.permute.xlu1 %2887  ;;  %4216 = vmatprep.subr.bf16.mxu1 %v3005_v44 }
 0x321   : > { %1342 = vperm.xlu0 %6615, %v9448_v41   ;;  %4167 = vmatprep.mubr.bf16.mxu1 %v6718_v60  ;;  %v2955_v41 = vsel %vm2929_vm7, %v2916_v53, %v9587_v20  ;;  %v2987_v20 = vmul.f32 %v9537_v54, %v2954_v31 }
 0x322   : > { %v2918_v43 = vpop.permute.xlu0 %2917  ;;  %v2989_v36 = vmul.f32 %v9537_v54, %v2955_v41 }
 0x323   : > { %3472 = vperm.xlu1 %6613, %v9679_v28   ;;  %4217 = vmatpush1.bf16.msra.mxu1 %v3004_v61  ;;  %v2956_v16 = vsel %vm2929_vm7, %v2918_v43, %v9639_v9  ;;  %v2940_v27 = vsel %vm2929_vm7, %v9639_v9, %v2918_v43 }
 0x324   : > { %v2920_v2 = vpop.permute.xlu1 %2919  ;;  %4218 = vmatprep.subr.bf16.mxu1 %v3007_v45  ;;  %v2991_v57 = vmul.f32 %v9537_v54, %v2956_v16  ;;  %v2990_v61 = vmul.f32 %v9564_v56, %v2940_v27  ;;  %v9813_v27 = vld [vmem:[%s11143_s5 + $0x88] sm:$0xff] }
 0x325   : > { %1350 = vperm.xlu0 %6615, %v9487_v17   ;;  %v2957_v3 = vsel %vm2929_vm7, %v2920_v2, %v2888_v38  ;;  %v2938_v17 = vsel %vm2929_vm7, %v9560_v4, %v9599_v24  ;;  %v2941_v26 = vsel %vm2929_vm7, %v2888_v38, %v2920_v2  ;;  %v3011_v24 = vpack.c.bf16 %v2989_v36, %v2987_v20  ;;  %v9791_v20 = vld [vmem:[%s11139_s1 + $0x18] ss:$0 sm:$0xff] }
 0x326   : > { %v2890_v21 = vpop.permute.xlu0 %2889  ;;  %4168 = vmatmul.mubr.bf16.gmra.mrb[84].mxu1 %v6720_v23  ;;  %v2993_v32 = vmul.f32 %v9537_v54, %v2957_v3  ;;  %v2986_v53 = vmul.f32 %v9564_v56, %v2938_v17  ;;  %v2992_v62 = vmul.f32 %v9564_v56, %v2941_v26 }
 0x327   : > { %3480 = vperm.xlu1 %6613, %v9706_v46   ;;  %4219 = vmatpush1.bf16.msra.mxu1 %v3006_v10 }
 0x328   : > { %v2892_v49 = vpop.permute.xlu1 %2891  ;;  %4220 = vmatprep.subr.bf16.mxu1 %v3009_v40  ;;  %4177 = vmatprep.mubr.bf16.mxu1 %v6721_v14  ;;  %v3010_v34 = vpack.c.bf16 %v2988_v22, %v2986_v53  ;;  %v3013_v38 = vpack.c.bf16 %v2993_v32, %v2991_v57  ;;  %v3012_v12 = vpack.c.bf16 %v2992_v62, %v2990_v61 }
 0x329   : > { %1362 = vperm.xlu0 %6615, %v9573_v33  }
 0x32a   : > { %v2922_v4 = vpop.permute.xlu0 %2921 }
 0x32b   : > { %3488 = vperm.xlu1 %6613, %v9729_v25   ;;  %4221 = vmatpush1.bf16.msra.mxu1 %v3008_v0  ;;  %v2958_v44 = vsel %vm2929_vm7, %v2922_v4, %v2890_v21  ;;  %v2942_v51 = vsel %vm2929_vm7, %v2890_v21, %v2922_v4  ;;  %v6730_v0 = vld [vmem:[%s11141_s3 + $0x64] ss:$36 sps:$4 sm:$0xff]  }
 0x32c   : > { %v2924_v60 = vpop.permute.xlu1 %2923  ;;  %4222 = vmatprep.subr.bf16.mxu1 %v3011_v24  ;;  %v2995_v8 = vmul.f32 %v9537_v54, %v2958_v44  ;;  %v2994_v39 = vmul.f32 %v9564_v56, %v2942_v51  ;;  %v9820_v44 = vld [vmem:[%s11143_s5 + $0x98] sm:$0xff] }
 0x32d   : > { %v2959_v13 = vsel %vm2929_vm7, %v2924_v60, %v2892_v49  ;;  %1370 = vperm.xlu0 %6615, %v9612_v30   ;;  %v2943_v9 = vsel %vm2929_vm7, %v2892_v49, %v2924_v60 }
 0x32e   : > { %v2997_v48 = vmul.f32 %v9537_v54, %v2959_v13  ;;  %v2894_v55 = vpop.permute.xlu0 %2893  ;;  %4178 = vmatmul.mubr.bf16.gmra.mrb[88].mxu1 %v6723_v59  ;;  %v2996_v43 = vmul.f32 %v9564_v56, %v2943_v9  ;;  %v6732_v13 = vld [vmem:[%s11141_s3 + $0x60] ss:$36 sps:$4 sm:$0xff]  }
 0x32f   : > { %6616 = vset.pattern.permute.xlu1 %v11580_v52  ;;  %4223 = vmatpush1.bf16.msra.mxu1 %v3010_v34  ;;  %v6726_v52 = vld [vmem:[%s11141_s3 + $0x208] ss:$36 sps:$4 sm:$0xff]  }
 0x330   : > { %1354 = vperm.xlu1 %6616, %v9528_v5   ;;  %v2896_v42 = vpop.permute.xlu1 %2895  ;;  %4224 = vmatprep.subr.bf16.mxu1 %v3013_v38  ;;  %v3015_v23 = vpack.c.bf16 %v2997_v48, %v2995_v8  ;;  %v3014_v14 = vpack.c.bf16 %v2996_v43, %v2994_v39  ;;  %v6733_v48 = vld [vmem:[%s11141_s3 + $0xac] ss:$36 sps:$4 sm:$0xff]  }
 0x331   : > { %1378 = vperm.xlu0 %6615, %v9649_v37   ;;  %4187 = vmatprep.mubr.bf16.mxu1 %v6724_v18 }
 0x332   : > { %v2926_v45 = vpop.permute.xlu0 %2925 }
 0x333   : > { %v2944_v41 = vsel %vm2929_vm7, %v2894_v55, %v2926_v45  ;;  %v2960_v58 = vsel %vm2929_vm7, %v2926_v45, %v2894_v55  ;;  %4225 = vmatpush1.bf16.msra.mxu1 %v3012_v12  ;;  %v9845_v45 = vld [vmem:[%s11143_s5 + $0xa8] sm:$0xff] }
 0x334   : > { %1358 = vperm.xlu1 %6616, %v9419_v1   ;;  %v2928_v2 = vpop.permute.xlu1 %2927  ;;  %4226 = vmatprep.subr.bf16.mxu1 %v3015_v23  ;;  %v2998_v31 = vmul.f32 %v9564_v56, %v2944_v41  ;;  %v2999_v29 = vmul.f32 %v9537_v54, %v2960_v58  ;;  %v9852_v41 = vld [vmem:[%s11143_s5 + $0x80] sm:$0xff] }
 0x335   : > { %v2945_v10 = vsel %vm2929_vm7, %v2896_v42, %v2928_v2  ;;  %v2961_v7 = vsel %vm2929_vm7, %v2928_v2, %v2896_v42  ;;  %1386 = vperm.xlu0 %6615, %v9679_v28   ;;  %v6735_v2 = vld [vmem:[%s11141_s3 + $0xa8] ss:$36 sps:$4 sm:$0xff]  }
 0x336   : > { %v3000_v36 = vmul.f32 %v9564_v56, %v2945_v10  ;;  %v3001_v21 = vmul.f32 %v9537_v54, %v2961_v7  ;;  %v3035_v1 = vpop.permute.xlu0 %3034  ;;  %4188 = vmatmul.mubr.bf16.gmra.mrb[92].mxu1 %v6726_v52  ;;  %v6727_v56 = vld [vmem:[%s11141_s3 + $0x18] ss:$36 sps:$4 sm:$0xff]   ;;  %v9786_v54 = vld [vmem:[%s11139_s1 + $0x10] ss:$0 sm:$0xff] }
 0x337   : > { %4227 = vmatpush1.bf16.msra.mxu1 %v3014_v14  ;;  %4230 = vmatprep.mubr.bf16.mxu1 %v6729_v63  ;;  %v9857_v63 = vld [vmem:[%s11143_s5 + $0xb8] sm:$0xff] }
 0x338   : > { %v3016_v40 = vpack.c.bf16 %v3000_v36, %v2998_v31  ;;  %1366 = vperm.xlu1 %6616, %v9459_v6   ;;  %v3037_v19 = vpop.permute.xlu1 %3036  ;;  %v3017_v3 = vpack.c.bf16 %v3001_v21, %v2999_v29  ;;  %v6736_v7 = vld [vmem:[%s11141_s3 + $0xf4] ss:$36 sps:$4 sm:$0xff]  }
 0x339   : > { %1394 = vperm.xlu0 %6615, %v9706_v46   ;;  %v9878_v21 = vld [vmem:[%s11143_s5 + $0x90] sm:$0xff] }
 0x33a   : > { %v3067_v17 = vpop.permute.xlu0 %3066  ;;  %4228 = vmatprep.subr.bf16.mxu1 %v3017_v3 }
 0x33b   : > { %v3099_v6 = vsel %vm3098_vm8, %v3035_v1, %v3067_v17  ;;  %v3115_v49 = vsel %vm3098_vm8, %v3067_v17, %v3035_v1  ;;  %4229 = vmatpush1.bf16.msra.mxu1 %v3016_v40 }
 0x33c   : > { %1374 = vperm.xlu1 %6616, %v9499_v15   ;;  %v3069_v22 = vpop.permute.xlu1 %3068  ;;  %v3139_v32 = vmul.f32 %v9786_v54, %v3099_v6  ;;  %v3140_v4 = vmul.f32 %v9791_v20, %v3115_v49 }
 0x33d   : > { %v3100_v16 = vsel %vm3098_vm8, %v3037_v19, %v3069_v22  ;;  %v3116_v26 = vsel %vm3098_vm8, %v3069_v22, %v3037_v19  ;;  %1402 = vperm.xlu0 %6615, %v9729_v25   ;;  %v9894_v22 = vld [vmem:[%s11143_s5 + $0xa0] sm:$0xff] }
 0x33e   : > { %v3141_v24 = vmul.f32 %v9786_v54, %v3100_v16  ;;  %v3142_v59 = vmul.f32 %v9791_v20, %v3116_v26  ;;  %v3039_v53 = vpop.permute.xlu0 %3038  ;;  %4231 = vmatmul.mubr.bf16.vlgmr.msra.gmra.mrb[64].mxu1 %v6727_v56  ;;  %v9887_v56 = vld [vmem:[%s11143_s5 + $0xc8] sm:$0xff]  ;;  %v9899_v26 = vld [vmem:[%s11143_s5 + $0xd8] sm:$0xff] }
 0x33f   : > { %4240 = vmatprep.mubr.bf16.mxu1 %v6730_v0 }
 0x340   : > { %v3171_v57 = vpack.c.bf16 %v3141_v24, %v3139_v32  ;;  %1382 = vperm.xlu1 %6616, %v9542_v35   ;;  %v3041_v60 = vpop.permute.xlu1 %3040  ;;  %v3172_v34 = vpack.c.bf16 %v3142_v59, %v3140_v4  ;;  %v6738_v32 = vld [vmem:[%s11141_s3 + $0xf0] ss:$36 sps:$4 sm:$0xff]   ;;  %v6739_v59 = vld [vmem:[%s11141_s3 + $0x13c] ss:$36 sps:$4 sm:$0xff]  }
 0x341   : > { %1412 = vperm.xlu0 %6615, %v9813_v27  }
 0x342   : > { %v3071_v62 = vpop.permute.xlu0 %3070  ;;  %4311 = vmatprep.subr.bf16.mxu1 %v3172_v34  ;;  %v9920_v34 = vld [vmem:[%s11143_s5 + $0xb0] sm:$0xff] }
 0x343   : > { %v3101_v18 = vsel %vm3098_vm8, %v3039_v53, %v3071_v62  ;;  %v3117_v9 = vsel %vm3098_vm8, %v3071_v62, %v3039_v53  ;;  %4312 = vmatpush1.bf16.msra.mxu1 %v3171_v57 }
 0x344   : > { %1390 = vperm.xlu1 %6616, %v9584_v50   ;;  %v3073_v55 = vpop.permute.xlu1 %3072  ;;  %v3143_v51 = vmul.f32 %v9786_v54, %v3101_v18  ;;  %v3144_v8 = vmul.f32 %v9791_v20, %v3117_v9 }
 0x345   : > { %v3102_v38 = vsel %vm3098_vm8, %v3041_v60, %v3073_v55  ;;  %v3118_v61 = vsel %vm3098_vm8, %v3073_v55, %v3041_v60  ;;  %1422 = vperm.xlu0 %6615, %v9820_v44   ;;  %v9929_v55 = vld [vmem:[%s11143_s5 + $0xe8] sm:$0xff] }
 0x346   : > { %v3145_v42 = vmul.f32 %v9786_v54, %v3102_v38  ;;  %v3146_v12 = vmul.f32 %v9791_v20, %v3118_v61  ;;  %v3043_v43 = vpop.permute.xlu0 %3042  ;;  %4241 = vmatmul.mubr.bf16.gmra.mrb[68].mxu1 %v6732_v13 }
 0x347   : > { %4250 = vmatprep.mubr.bf16.mxu1 %v6733_v48 }
 0x348   : > { %v3173_v23 = vpack.c.bf16 %v3145_v42, %v3143_v51  ;;  %1398 = vperm.xlu1 %6616, %v9623_v47   ;;  %v3045_v52 = vpop.permute.xlu1 %3044  ;;  %v3174_v39 = vpack.c.bf16 %v3146_v12, %v3144_v8  ;;  %v9936_v8 = vld [vmem:[%s11143_s5 + $0xc0] sm:$0xff]  ;;  %v9941_v12 = vld [vmem:[%s11143_s5 + $0xf8] sm:$0xff] }
 0x349   : > { %1432 = vperm.xlu0 %6615, %v9845_v45  }
 0x34a   : > { %v3075_v58 = vpop.permute.xlu0 %3074  ;;  %4313 = vmatprep.subr.bf16.mxu1 %v3174_v39  ;;  %v6742_v39 = vld [vmem:[%s11141_s3 + $0x184] ss:$36 sps:$4 sm:$0xff]  }
 0x34b   : > { %v3103_v14 = vsel %vm3098_vm8, %v3043_v43, %v3075_v58  ;;  %v3119_v10 = vsel %vm3098_vm8, %v3075_v58, %v3043_v43  ;;  %4314 = vmatpush1.bf16.msra.mxu1 %v3173_v23  ;;  %v6741_v43 = vld [vmem:[%s11141_s3 + $0x138] ss:$36 sps:$4 sm:$0xff]  }
 0x34c   : > { %1407 = vperm.xlu1 %6616, %v9852_v41   ;;  %v3077_v31 = vpop.permute.xlu1 %3076  ;;  %v3147_v1 = vmul.f32 %v9786_v54, %v3103_v14  ;;  %v3148_v40 = vmul.f32 %v9791_v20, %v3119_v10  ;;  %v9962_v10 = vld [vmem:[%s11143_s5 + $0xd0] sm:$0xff] }
 0x34d   : > { %v3104_v29 = vsel %vm3098_vm8, %v3045_v52, %v3077_v31  ;;  %v3120_v36 = vsel %vm3098_vm8, %v3077_v31, %v3045_v52  ;;  %1442 = vperm.xlu0 %6615, %v9857_v63  }
 0x34e   : > { %v3149_v19 = vmul.f32 %v9786_v54, %v3104_v29  ;;  %v3150_v3 = vmul.f32 %v9791_v20, %v3120_v36  ;;  %v3047_v17 = vpop.permute.xlu0 %3046  ;;  %4251 = vmatmul.mubr.bf16.gmra.mrb[72].mxu1 %v6735_v2 }
 0x34f   : > { %4260 = vmatprep.mubr.bf16.mxu1 %v6736_v7 }
 0x350   : > { %v3175_v6 = vpack.c.bf16 %v3149_v19, %v3147_v1  ;;  %1417 = vperm.xlu1 %6616, %v9878_v21   ;;  %v3049_v49 = vpop.permute.xlu1 %3048  ;;  %v3176_v0 = vpack.c.bf16 %v3150_v3, %v3148_v40  ;;  %v9971_v40 = vld [vmem:[%s11143_s5 + $0x108] sm:$0xff] }
 0x351   : > { %1452 = vperm.xlu0 %6615, %v9887_v56  }
 0x352   : > { %v3079_v16 = vpop.permute.xlu0 %3078  ;;  %4315 = vmatprep.subr.bf16.mxu1 %v3176_v0  ;;  %v9983_v0 = vld [vmem:[%s11143_s5 + $0x118] sm:$0xff] }
 0x353   : > { %v3105_v4 = vsel %vm3098_vm8, %v3047_v17, %v3079_v16  ;;  %v3121_v24 = vsel %vm3098_vm8, %v3079_v16, %v3047_v17  ;;  %4316 = vmatpush1.bf16.msra.mxu1 %v3175_v6  ;;  %v9978_v6 = vld [vmem:[%s11143_s5 + $0xe0] sm:$0xff] }
 0x354   : > { %1427 = vperm.xlu1 %6616, %v9894_v22   ;;  %v3081_v53 = vpop.permute.xlu1 %3080  ;;  %v3151_v62 = vmul.f32 %v9786_v54, %v3105_v4  ;;  %v3152_v13 = vmul.f32 %v9791_v20, %v3121_v24  ;;  %v6744_v16 = vld [vmem:[%s11141_s3 + $0x180] ss:$36 sps:$4 sm:$0xff]   ;;  %v6745_v24 = vld [vmem:[%s11141_s3 + $0x1cc] ss:$36 sps:$4 sm:$0xff]  }
 0x355   : > { %v3106_v57 = vsel %vm3098_vm8, %v3049_v49, %v3081_v53  ;;  %v3122_v60 = vsel %vm3098_vm8, %v3081_v53, %v3049_v49  ;;  %1462 = vperm.xlu0 %6615, %v9899_v26  }
 0x356   : > { %v3153_v18 = vmul.f32 %v9786_v54, %v3106_v57  ;;  %v3154_v9 = vmul.f32 %v9791_v20, %v3122_v60  ;;  %v3051_v48 = vpop.permute.xlu0 %3050  ;;  %4261 = vmatmul.mubr.bf16.gmra.mrb[76].mxu1 %v6738_v32  ;;  %v10004_v60 = vld [vmem:[%s11143_s5 + $0xf0] sm:$0xff] }
 0x357   : > { %4270 = vmatprep.mubr.bf16.mxu1 %v6739_v59 }
 0x358   : > { %v3177_v38 = vpack.c.bf16 %v3153_v18, %v3151_v62  ;;  %1437 = vperm.xlu1 %6616, %v9920_v34   ;;  %v3053_v61 = vpop.permute.xlu1 %3052  ;;  %v3178_v51 = vpack.c.bf16 %v3154_v9, %v3152_v13 }
 0x359   : > { %1472 = vperm.xlu0 %6615, %v9929_v55  }
 0x35a   : > { %v3083_v42 = vpop.permute.xlu0 %3082  ;;  %4317 = vmatprep.subr.bf16.mxu1 %v3178_v51 }
 0x35b   : > { %v3107_v23 = vsel %vm3098_vm8, %v3051_v48, %v3083_v42  ;;  %v3123_v52 = vsel %vm3098_vm8, %v3083_v42, %v3051_v48  ;;  %4318 = vmatpush1.bf16.msra.mxu1 %v3177_v38  ;;  %v10013_v38 = vld [vmem:[%s11143_s5 + $0x128] sm:$0xff] }
 0x35c   : > { %1447 = vperm.xlu1 %6616, %v9936_v8   ;;  %v3085_v58 = vpop.permute.xlu1 %3084  ;;  %v3155_v7 = vmul.f32 %v9786_v54, %v3107_v23  ;;  %v3156_v31 = vmul.f32 %v9791_v20, %v3123_v52  ;;  %v10025_v52 = vld [vmem:[%s11143_s5 + $0x138] sm:$0xff] }
 0x35d   : > { %v3108_v2 = vsel %vm3098_vm8, %v3053_v61, %v3085_v58  ;;  %v3124_v14 = vsel %vm3098_vm8, %v3085_v58, %v3053_v61  ;;  %1482 = vperm.xlu0 %6615, %v9941_v12  }
 0x35e   : > { %v3157_v29 = vmul.f32 %v9786_v54, %v3108_v2  ;;  %v3158_v36 = vmul.f32 %v9791_v20, %v3124_v14  ;;  %v3055_v1 = vpop.permute.xlu0 %3054  ;;  %4271 = vmatmul.mubr.bf16.gmra.mrb[80].mxu1 %v6741_v43  ;;  %v10020_v43 = vld [vmem:[%s11143_s5 + $0x100] sm:$0xff]  ;;  %v6748_v14 = vld [vmem:[%s11141_s3 + $0x214] ss:$36 sps:$4 sm:$0xff]  }
 0x35f   : > { %4280 = vmatprep.mubr.bf16.mxu1 %v6742_v39  ;;  %v6747_v39 = vld [vmem:[%s11141_s3 + $0x1c8] ss:$36 sps:$4 sm:$0xff]  }
 0x360   : > { %v3179_v19 = vpack.c.bf16 %v3157_v29, %v3155_v7  ;;  %1457 = vperm.xlu1 %6616, %v9962_v10   ;;  %v3057_v3 = vpop.permute.xlu1 %3056  ;;  %v3180_v17 = vpack.c.bf16 %v3158_v36, %v3156_v31  ;;  %v10046_v36 = vld [vmem:[%s11143_s5 + $0x110] sm:$0xff] }
 0x361   : > { %1492 = vperm.xlu0 %6615, %v9971_v40  }
 0x362   : > { %v3087_v49 = vpop.permute.xlu0 %3086  ;;  %4319 = vmatprep.subr.bf16.mxu1 %v3180_v17 }
 0x363   : > { %v3109_v32 = vsel %vm3098_vm8, %v3055_v1, %v3087_v49  ;;  %v3125_v4 = vsel %vm3098_vm8, %v3087_v49, %v3055_v1  ;;  %4320 = vmatpush1.bf16.msra.mxu1 %v3179_v19 }
 0x364   : > { %1467 = vperm.xlu1 %6616, %v9978_v6   ;;  %v3089_v59 = vpop.permute.xlu1 %3088  ;;  %v3159_v62 = vmul.f32 %v9786_v54, %v3109_v32  ;;  %v3160_v13 = vmul.f32 %v9791_v20, %v3125_v4 }
 0x365   : > { %v3110_v53 = vsel %vm3098_vm8, %v3057_v3, %v3089_v59  ;;  %v3126_v57 = vsel %vm3098_vm8, %v3089_v59, %v3057_v3  ;;  %1502 = vperm.xlu0 %6615, %v9983_v0   ;;  %v10062_v59 = vld [vmem:[%s11143_s5 + $0x120] sm:$0xff] }
 0x366   : > { %v3161_v18 = vmul.f32 %v9786_v54, %v3110_v53  ;;  %v3162_v9 = vmul.f32 %v9791_v20, %v3126_v57  ;;  %v3059_v48 = vpop.permute.xlu0 %3058  ;;  %4281 = vmatmul.mubr.bf16.gmra.mrb[84].mxu1 %v6744_v16  ;;  %v10055_v16 = vld [vmem:[%s11143_s5 + $0x148] sm:$0xff]  ;;  %v10067_v57 = vld [vmem:[%s11143_s5 + $0x158] sm:$0xff] }
 0x367   : > { %4290 = vmatprep.mubr.bf16.mxu1 %v6745_v24 }
 0x368   : > { %v3181_v61 = vpack.c.bf16 %v3161_v18, %v3159_v62  ;;  %1477 = vperm.xlu1 %6616, %v10004_v60   ;;  %v3061_v51 = vpop.permute.xlu1 %3060  ;;  %v3182_v42 = vpack.c.bf16 %v3162_v9, %v3160_v13  ;;  %v6750_v62 = vld [vmem:[%s11141_s3 + $0x210] ss:$36 sps:$4 sm:$0xff]  }
 0x369   : > { %1512 = vperm.xlu0 %6615, %v10013_v38  }
 0x36a   : > { %v3091_v23 = vpop.permute.xlu0 %3090  ;;  %4321 = vmatprep.subr.bf16.mxu1 %v3182_v42 }
 0x36b   : > { %v3111_v58 = vsel %vm3098_vm8, %v3059_v48, %v3091_v23  ;;  %v3127_v2 = vsel %vm3098_vm8, %v3091_v23, %v3059_v48  ;;  %4322 = vmatpush1.bf16.msra.mxu1 %v3181_v61 }
 0x36c   : > { %1487 = vperm.xlu1 %6616, %v10020_v43   ;;  %v3093_v7 = vpop.permute.xlu1 %3092  ;;  %v3163_v1 = vmul.f32 %v9786_v54, %v3111_v58  ;;  %v3164_v19 = vmul.f32 %v9791_v20, %v3127_v2  ;;  %v11581_v2 = vmov 0  }
 0x36d   : > { %v3112_v31 = vsel %vm3098_vm8, %v3061_v51, %v3093_v7  ;;  %v3128_v29 = vsel %vm3098_vm8, %v3093_v7, %v3061_v51  ;;  %1522 = vperm.xlu0 %6615, %v10025_v52   ;;  %v10085_v51 = vld [vmem:[%s11143_s5 + $0x130] sm:$0xff] }
 0x36e   : > { %v3165_v3 = vmul.f32 %v9786_v54, %v3112_v31  ;;  %v3166_v17 = vmul.f32 %v9791_v20, %v3128_v29  ;;  %v3063_v49 = vpop.permute.xlu0 %3062  ;;  %4291 = vmatmul.mubr.bf16.gmra.mrb[88].mxu1 %v6747_v39  ;;  %v6751_v31 = vld [vmem:[%s11141_s3 + $0x20] ss:$36 sps:$4 sm:$0xff]   ;;  %v10117_v29 = vld [vmem:[%s11143_s5 + $0x150] sm:$0xff] }
 0x36f   : > { %4300 = vmatprep.mubr.bf16.mxu1 %v6748_v14 }
 0x370   : > { %v3183_v32 = vpack.c.bf16 %v3165_v3, %v3163_v1  ;;  %1497 = vperm.xlu1 %6616, %v10046_v36   ;;  %v3065_v4 = vpop.permute.xlu1 %3064  ;;  %v3184_v24 = vpack.c.bf16 %v3166_v17, %v3164_v19  ;;  %v10122_v1 = vld [vmem:[%s11143_s5 + $0x188] sm:$0xff]  ;;  %v10130_v19 = vld [vmem:[%s11143_s5 + $0x160] sm:$0xff]  ;;  %v10135_v3 = vld [vmem:[%s11143_s5 + $0x198] sm:$0xff] }
 0x371   : > { %1532 = vperm.xlu0 %6615, %v10055_v16   ;;  %v6752_v17 = vld [vmem:[%s11141_s3 + $0x68] ss:$36 sps:$4 sm:$0xff]  }
 0x372   : > { %v3095_v53 = vpop.permute.xlu0 %3094  ;;  %4323 = vmatprep.subr.bf16.mxu1 %v3184_v24  ;;  %v10154_v24 = vld [vmem:[%s11143_s5 + $0x1a8] sm:$0xff] }
 0x373   : > { %v3113_v13 = vsel %vm3098_vm8, %v3063_v49, %v3095_v53  ;;  %v3129_v18 = vsel %vm3098_vm8, %v3095_v53, %v3063_v49  ;;  %4324 = vmatpush1.bf16.msra.mxu1 %v3183_v32 }
 0x374   : > { %1507 = vperm.xlu1 %6616, %v10062_v59   ;;  %v3097_v9 = vpop.permute.xlu1 %3096  ;;  %v3167_v42 = vmul.f32 %v9786_v54, %v3113_v13  ;;  %v3168_v23 = vmul.f32 %v9791_v20, %v3129_v18  ;;  %v10171_v18 = vld [vmem:[%s11143_s5 + $0x1b8] sm:$0xff] }
 0x375   : > { %v3114_v48 = vsel %vm3098_vm8, %v3065_v4, %v3097_v9  ;;  %v3130_v61 = vsel %vm3098_vm8, %v3097_v9, %v3065_v4  ;;  %1542 = vperm.xlu0 %6615, %v10067_v57   ;;  %v10149_v4 = vld [vmem:[%s11143_s5 + $0x170] sm:$0xff] }
 0x376   : > { %v3169_v39 = vmul.f32 %v9786_v54, %v3114_v48  ;;  %v3170_v58 = vmul.f32 %v9791_v20, %v3130_v61  ;;  %4301 = vmatmul.mubr.bf16.gmra.mrb[92].mxu1 %v6750_v62  ;;  %v10102_v54 = vld [vmem:[%s11143_s5 + $0x140] sm:$0xff]  ;;  %v10107_v20 = vld [vmem:[%s11143_s5 + $0x178] sm:$0xff]  ;;  %v6753_v9 = vld [vmem:[%s11141_s3 + $0xb0] ss:$36 sps:$4 sm:$0xff]  }
 0x377   : > { %4343 = vmatprep.mubr.bf16.mxu1 %v11581_v2  ;;  %v10164_v62 = vld [vmem:[%s11143_s5 + $0x180] sm:$0xff]  ;;  %v10183_v61 = vld [vmem:[%s11143_s5 + $0x190] sm:$0xff] }
 0x378   : > { %v3185_v14 = vpack.c.bf16 %v3169_v39, %v3167_v42  ;;  %1517 = vperm.xlu1 %6616, %v10085_v51   ;;  %v3186_v7 = vpack.c.bf16 %v3170_v58, %v3168_v23  ;;  %v10190_v23 = vld [vmem:[%s11143_s5 + $0x1c8] sm:$0xff]  ;;  %v10200_v58 = vld [vmem:[%s11143_s5 + $0x1a0] sm:$0xff] }
 0x379   : > { %1552 = vperm.xlu0 %6615, %v10094_v11  }
 0x37a   : > { %4325 = vmatprep.subr.bf16.mxu1 %v3186_v7  ;;  %v10207_v7 = vld [vmem:[%s11143_s5 + $0x1d8] sm:$0xff] }
 0x37b   : > { %4326 = vmatpush1.bf16.msra.mxu1 %v3185_v14  ;;  %11590 = vst [vmem:[#allocation59_spill] sm:$0xff] %v10207_v7 }
 0x37c   : > { %1527 = vperm.xlu1 %6616, %v10102_v54  }
 0x37d   : > { %1562 = vperm.xlu0 %6615, %v10107_v20  }
 0x37e   : > { %4344 = vmatmul.mubr.bf16.vlgmr.msra.gmra.mrb[64].mxu1 %v6751_v31  ;;  %v6754_v31 = vld [vmem:[%s11141_s3 + $0xf8] ss:$36 sps:$4 sm:$0xff]  }
 0x37f   : > { %4353 = vmatprep.mubr.bf16.mxu1 %v11581_v2 }
 0x380   : > { %1537 = vperm.xlu1 %6616, %v10117_v29  }
 0x381   : > { %1572 = vperm.xlu0 %6615, %v10122_v1  }
 0x383   : > { %v10140_v49 = vpop.permute.xlu0 %3432 }
 0x384   : > { %11582 = vst [vmem:[#allocation23_spill] sm:$0xff] %v10140_v49  ;;  %1547 = vperm.xlu1 %6616, %v10130_v19  }
 0x385   : > { %1582 = vperm.xlu0 %6615, %v10135_v3   ;;  %v10144_v32 = vpop.permute.xlu1 %1346 }
 0x386   : > { %11583 = vst [vmem:[#allocation70_spill] sm:$0xff] %v10144_v32  ;;  %4354 = vmatmul.mubr.bf16.gmra.mrb[68].mxu1 %v6752_v17 }
 0x387   : > { %v10156_v53 = vpop.permute.xlu0 %3444  ;;  %4363 = vmatprep.mubr.bf16.mxu1 %v11581_v2 }
 0x388   : > { %11584 = vst [vmem:[#allocation90_spill] sm:$0xff] %v10156_v53  ;;  %1557 = vperm.xlu1 %6616, %v10149_v4  }
 0x389   : > { %1592 = vperm.xlu0 %6615, %v10154_v24  }
 0x38a   : > { %v10166_v13 = vpop.permute.xlu1 %3428 }
 0x38b   : > { %11585 = vst [vmem:[#allocation22_spill] sm:$0xff] %v10166_v13  ;;  %v10176_v48 = vpop.permute.xlu0 %3452  ;;  %v10275_v13 = vld [vmem:[%s11143_s5 + $0x1e0] sm:$0xff] }
 0x38c   : > { %11586 = vst [vmem:[#allocation38_spill] sm:$0xff] %v10176_v48  ;;  %1567 = vperm.xlu1 %6616, %v10164_v62  }
 0x38d   : > { %1602 = vperm.xlu0 %6615, %v10171_v18  }
 0x38e   : > { %4364 = vmatmul.mubr.bf16.gmra.mrb[72].mxu1 %v6753_v9  ;;  %v10185_v42 = vpop.permute.xlu1 %3436  ;;  %v10219_v9 = vld [vmem:[%s11143_s5 + $0x1b0] sm:$0xff] }
 0x38f   : > { %11587 = vst [vmem:[#allocation14_spill] sm:$0xff] %v10185_v42  ;;  %v10192_v39 = vpop.permute.xlu0 %3460  ;;  %4373 = vmatprep.mubr.bf16.mxu1 %v11581_v2 }
 0x390   : > { %11588 = vst [vmem:[#allocation26_spill] sm:$0xff] %v10192_v39  ;;  %1577 = vperm.xlu1 %6616, %v10183_v61   ;;  %v10226_v39 = vld [vmem:[%s11143_s5 + $0x1e8] sm:$0xff] }
 0x391   : > { %1612 = vperm.xlu0 %6615, %v10190_v23   ;;  %11593 = vst [vmem:[#allocation7_spill] sm:$0xff] %v10226_v39 }
 0x392   : > { %v10202_v14 = vpop.permute.xlu1 %3440 }
 0x393   : > { %11589 = vst [vmem:[#allocation53_spill] sm:$0xff] %v10202_v14  ;;  %v10212_v17 = vpop.permute.xlu0 %3468  ;;  %v10260_v14 = vld [vmem:[%s11143_s5 + $0x1d0] sm:$0xff] }
 0x394   : > { %11591 = vst [vmem:[#allocation54_spill] sm:$0xff] %v10212_v17  ;;  %1587 = vperm.xlu1 %6616, %v10200_v58   ;;  %v6759_v17 = vld [vmem:[%s11140_s2 + $0x40] sm:$0xff]  }
 0x395   : > { %1622 = vperm.xlu0 %6615, %v10207_v7   ;;  %5860 = vmatmul.mubr.msk.bf16.gmra.mrb[32].mxu0 %vm643_vm0, %v6759_v17  ;;  %v6755_v17 = vld [vmem:[%s11141_s3 + $0x140] ss:$36 sps:$4 sm:$0xff]  }
 0x396   : > { %4374 = vmatmul.mubr.bf16.gmra.mrb[76].mxu1 %v6754_v31  ;;  %v10221_v32 = vpop.permute.xlu1 %3448  ;;  %v10240_v31 = vld [vmem:[%s11143_s5 + $0x1c0] sm:$0xff]  ;;  %886 = vmatprep.mubr.bf16.mxu0 %v11581_v2 }
 0x397   : > { %11592 = vst [vmem:[#allocation60_spill] sm:$0xff] %v10221_v32  ;;  %v10231_v48 = vpop.permute.xlu0 %3476  ;;  %4383 = vmatprep.mubr.bf16.mxu1 %v11581_v2 }
 0x398   : > { %11594 = vst [vmem:[#allocation76_spill] sm:$0xff] %v10231_v48  ;;  %1597 = vperm.xlu1 %6616, %v10219_v9   ;;  %v10248_v48 = vld [vmem:[%s11143_s5 + $0x1f8] sm:$0xff] }
 0x399   : > { %1632 = vperm.xlu0 %6615, %v10226_v39   ;;  %11596 = vst [vmem:[#allocation8_spill] sm:$0xff] %v10248_v48  ;;  %v6828_v39 = vld [vmem:[%s11143_s5 + $0x20] sm:$0xff] }
 0x39a   : > { %v10243_v32 = vpop.permute.xlu1 %3456 }
 0x39b   : > { %11595 = vst [vmem:[#allocation74_spill] sm:$0xff] %v10243_v32  ;;  %v10253_v53 = vpop.permute.xlu0 %3484  ;;  %v6760_v32 = vld [vmem:[%s11140_s2 + $0x48] sm:$0xff]  }
 0x39c   : > { %11597 = vst [vmem:[#allocation17_spill] sm:$0xff] %v10253_v53  ;;  %1607 = vperm.xlu1 %6616, %v10240_v31   ;;  %v6907_v53 = vmov 2  }
 0x39d   : > { %1642 = vperm.xlu0 %6615, %v10248_v48   ;;  %5861 = vmatmul.mubr.msk.bf16.gmra.mrb[36].mxu0 %vm643_vm0, %v6760_v32  ;;  %v6756_v32 = vld [vmem:[%s11141_s3 + $0x188] ss:$36 sps:$4 sm:$0xff]   ;;  %v10292_v48 = vld [vmem:[%s11143_s5 + $0x1f0] sm:$0xff] }
 0x39e   : > { %4384 = vmatmul.mubr.bf16.gmra.mrb[80].mxu1 %v6755_v17  ;;  %v10265_v42 = vpop.permute.xlu1 %3464  ;;  %896 = vmatprep.mubr.bf16.mxu0 %v11581_v2  ;;  %v6827_v17 = vld [vmem:[%s11143_s5 + $0x8] sm:$0xff] }
 0x39f   : > { %11598 = vst [vmem:[#allocation77_spill] sm:$0xff] %v10265_v42  ;;  %4393 = vmatprep.mubr.bf16.mxu1 %v11581_v2 }
 0x3a0   : > { %v10268_v49 = vpop.permute.xlu0 %1342  ;;  %1617 = vperm.xlu1 %6616, %v10260_v14  }
 0x3a1   : > { %11599 = vst [vmem:[#allocation79_spill] sm:$0xff] %v10268_v49  ;;  %6618 = vset.pattern.permute.xlu0 %v6907_v53 }
 0x3a2   : > { %4541 = vperm.xlu0 %6618, %v6827_v17   ;;  %v10281_v42 = vpop.permute.xlu1 %3472 }
 0x3a3   : > { %11600 = vst [vmem:[#allocation13_spill] sm:$0xff] %v10281_v42  ;;  %v6761_v42 = vld [vmem:[%s11140_s2 + $0x50] sm:$0xff]  }
 0x3a4   : > { %v10286_v49 = vpop.permute.xlu0 %1350  ;;  %1627 = vperm.xlu1 %6616, %v10275_v13  }
 0x3a5   : > { %11601 = vst [vmem:[#allocation25_spill] sm:$0xff] %v10286_v49  ;;  %5862 = vmatmul.mubr.msk.bf16.gmra.mrb[40].mxu0 %vm643_vm0, %v6761_v42  ;;  %v6830_v42 = vld [vmem:[%s11143_s5] sm:$0xff] }
 0x3a6   : > { %4553 = vperm.xlu0 %6618, %v6828_v39   ;;  %4394 = vmatmul.mubr.bf16.gmra.mrb[84].mxu1 %v6756_v32  ;;  %v10297_v17 = vpop.permute.xlu1 %3480  ;;  %v6829_v39 = vld [vmem:[%s11143_s5 + $0x30] sm:$0xff] }
 0x3a7   : > { %11602 = vst [vmem:[#allocation67_spill] sm:$0xff] %v10297_v17  ;;  %4403 = vmatprep.mubr.bf16.mxu1 %v11581_v2  ;;  %906 = vmatprep.mubr.bf16.mxu0 %v11581_v2  ;;  %v6757_v17 = vld [vmem:[%s11141_s3 + $0x1d0] ss:$36 sps:$4 sm:$0xff]  }
 0x3a8   : > { %v10303_v49 = vpop.permute.xlu0 %1362  ;;  %1637 = vperm.xlu1 %6616, %v10292_v48  }
 0x3a9   : > { %11603 = vst [vmem:[#allocation6_spill] sm:$0xff] %v10303_v49 }
 0x3aa   : > { %4561 = vperm.xlu0 %6618, %v6829_v39   ;;  %v10311_v32 = vpop.permute.xlu1 %3488  ;;  %v6762_v39 = vld [vmem:[%s11140_s2 + $0x58] sm:$0xff]  }
 0x3ab   : > { %11604 = vst [vmem:[#allocation93_spill] sm:$0xff] %v10311_v32 }
 0x3ac   : > { %v10316_v7 = vpop.permute.xlu0 %1370  ;;  %6617 = vset.pattern.permute.xlu1 %v6907_v53  ;;  %v6831_v53 = vld [vmem:[%s11143_s5 + $0x10] sm:$0xff] }
 0x3ad   : > { %4537 = vperm.xlu1 %6617, %v6830_v42   ;;  %5863 = vmatmul.mubr.msk.bf16.gmra.mrb[44].mxu0 %vm643_vm0, %v6762_v39  ;;  %v6763_v39 = vld [vmem:[%s11140_s2 + $0x60] sm:$0xff]  }
 0x3ae   : > { %4569 = vperm.xlu0 %6618, %v9499_v15   ;;  %4404 = vmatmul.mubr.bf16.gmra.mrb[88].mxu1 %v6757_v17  ;;  %v6758_v15 = vld [vmem:[%s11141_s3 + $0x218] ss:$36 sps:$4 sm:$0xff]  }
 0x3af   : > { %v10325_v49 = vpop.permute.xlu1 %1354  ;;  %4413 = vmatprep.mubr.bf16.mxu1 %v11581_v2  ;;  %916 = vmatprep.mubr.bf16.mxu0 %v11581_v2 }
 0x3b0   : > { %v10328_v32 = vpop.permute.xlu0 %1378 }
 0x3b1   : > { %4545 = vperm.xlu1 %6617, %v6831_v53  }
 0x3b2   : > { %4577 = vperm.xlu0 %6618, %v9542_v35  }
 0x3b3   : > { %v10339_v17 = vpop.permute.xlu1 %1358 }
 0x3b4   : > { %v10341_v42 = vpop.permute.xlu0 %1386 }
 0x3b5   : > { %4549 = vperm.xlu1 %6617, %v9528_v5   ;;  %5864 = vmatmul.mubr.msk.bf16.gmra.mrb[48].mxu0 %vm643_vm0, %v6763_v39 }
 0x3b6   : > { %4585 = vperm.xlu0 %6618, %v9584_v50   ;;  %4414 = vmatmul.mubr.bf16.gmra.mrb[92].mxu1 %v6758_v15  ;;  %v6764_v15 = vld [vmem:[%s11140_s2 + $0x68] sm:$0xff]  }
 0x3b7   : > { %v10348_v53 = vpop.permute.xlu1 %1366  ;;  %926 = vmatprep.mubr.bf16.mxu0 %v11581_v2 }
 0x3b8   : > { %v10350_v35 = vpop.permute.xlu0 %1394 }
 0x3b9   : > { %11605 = vst [vmem:[#allocation31_spill] sm:$0xff] %v10350_v35  ;;  %4557 = vperm.xlu1 %6617, %v9573_v33  }
 0x3ba   : > { %4593 = vperm.xlu0 %6618, %v9623_v47   ;;  %v6765_v47 = vld [vmem:[%s11140_s2 + $0x70] sm:$0xff]  }
 0x3bb   : > { %v10356_v5 = vpop.permute.xlu1 %1374 }
 0x3bc   : > { %v10358_v50 = vpop.permute.xlu0 %1402 }
 0x3bd   : > { %4565 = vperm.xlu1 %6617, %v9612_v30   ;;  %5865 = vmatmul.mubr.msk.bf16.gmra.mrb[52].mxu0 %vm643_vm0, %v6764_v15 }
 0x3be   : > { %4601 = vperm.xlu0 %6618, %v9852_v41   ;;  %936 = vmatprep.mubr.bf16.mxu0 %v11581_v2 }
 0x3bf   : > { %v10365_v35 = vpop.permute.xlu1 %1382 }
 0x3c0   : > { %v10367_v39 = vpop.permute.xlu0 %1412 }
 0x3c1   : > { %4573 = vperm.xlu1 %6617, %v9649_v37  }
 0x3c2   : > { %4609 = vperm.xlu0 %6618, %v9878_v21   ;;  %v6766_v21 = vld [vmem:[%s11140_s2 + $0x78] sm:$0xff]  }
 0x3c3   : > { %v10373_v33 = vpop.permute.xlu1 %1390 }
 0x3c4   : > { %v10375_v30 = vpop.permute.xlu0 %1422 }
 0x3c5   : > { %4581 = vperm.xlu1 %6617, %v9679_v28   ;;  %5866 = vmatmul.mubr.msk.bf16.gmra.mrb[56].mxu0 %vm643_vm0, %v6765_v47 }
 0x3c6   : > { %4617 = vperm.xlu0 %6618, %v9894_v22   ;;  %946 = vmatprep.mubr.bf16.mxu0 %v11581_v2 }
 0x3c7   : > { %v10382_v41 = vpop.permute.xlu1 %1398 }
 0x3c8   : > { %v10384_v15 = vpop.permute.xlu0 %1432 }
 0x3c9   : > { %4589 = vperm.xlu1 %6617, %v9706_v46  }
 0x3ca   : > { %4625 = vperm.xlu0 %6618, %v9920_v34   ;;  %v6767_v34 = vld [vmem:[%s11140_s2 + $0x80] sm:$0xff]  }
 0x3cb   : > { %v10390_v37 = vpop.permute.xlu1 %1407 }
 0x3cc   : > { %v10392_v28 = vpop.permute.xlu0 %1442 }
 0x3cd   : > { %4597 = vperm.xlu1 %6617, %v9729_v25   ;;  %5867 = vmatmul.mubr.msk.bf16.gmra.mrb[60].mxu0 %vm643_vm0, %v6766_v21 }
 0x3ce   : > { %4633 = vperm.xlu0 %6618, %v9936_v8   ;;  %956 = vmatprep.mubr.bf16.mxu0 %v11581_v2 }
 0x3cf   : > { %v10399_v22 = vpop.permute.xlu1 %1417 }
 0x3d0   : > { %v10401_v47 = vpop.permute.xlu0 %1452 }
 0x3d1   : > { %11606 = vst [vmem:[#allocation10_spill] sm:$0xff] %v10401_v47  ;;  %4605 = vperm.xlu1 %6617, %v9813_v27   ;;  %v11616_v47 = vld [vmem:[#allocation88_spill] sm:$0xff] }
 0x3d2   : > { %4641 = vperm.xlu0 %6618, %v9962_v10   ;;  %v6768_v10 = vld [vmem:[%s11140_s2 + $0x88] sm:$0xff]  }
 0x3d3   : > { %v10407_v46 = vpop.permute.xlu1 %1427 }
 0x3d4   : > { %v10409_v25 = vpop.permute.xlu0 %1462 }
 0x3d5   : > { %11607 = vst [vmem:[#allocation97_spill] sm:$0xff] %v10409_v25  ;;  %4613 = vperm.xlu1 %6617, %v9820_v44   ;;  %5868 = vmatmul.mubr.msk.bf16.gmra.mrb[64].mxu0 %vm643_vm0, %v6767_v34 }
 0x3d6   : > { %4649 = vperm.xlu0 %6618, %v9978_v6   ;;  %966 = vmatprep.mubr.bf16.mxu0 %v11581_v2 }
 0x3d7   : > { %v10416_v8 = vpop.permute.xlu1 %1437 }
 0x3d8   : > { %v10418_v21 = vpop.permute.xlu0 %1472 }
 0x3d9   : > { %11608 = vst [vmem:[#allocation100_spill] sm:$0xff] %v10418_v21  ;;  %4621 = vperm.xlu1 %6617, %v9845_v45   ;;  %v11611_v45 = vld [vmem:[#allocation83_spill] sm:$0xff] }
 0x3da   : > { %4657 = vperm.xlu0 %6618, %v10004_v60   ;;  %v11612_v60 = vld [vmem:[#allocation84_spill] sm:$0xff] }
 0x3db   : > { %v10424_v27 = vpop.permute.xlu1 %1447 }
 0x3dc   : > { %v10426_v44 = vpop.permute.xlu0 %1482 }
 0x3dd   : > { %11609 = vst [vmem:[#allocation15_spill] sm:$0xff] %v10426_v44  ;;  %4629 = vperm.xlu1 %6617, %v9857_v63   ;;  %5869 = vmatmul.mubr.msk.bf16.gmra.mrb[68].mxu0 %vm643_vm0, %v6768_v10  ;;  %v11614_v44 = vld [vmem:[#allocation87_spill] sm:$0xff] }
 0x3de   : > { %4665 = vperm.xlu0 %6618, %v10020_v43   ;;  %976 = vmatprep.mubr.bf16.mxu0 %v11581_v2 }
 0x3df   : > { %v10433_v6 = vpop.permute.xlu1 %1457 }
 0x3e0   : > { %11610 = vst [vmem:[#allocation46_spill] sm:$0xff] %v10433_v6  ;;  %v1493_v34 = vpop.permute.xlu0 %1492 }
 0x3e1   : > { %v10437_v21 = vadd.f32 %v1493_v34, %v11611_v45  ;;  %v10440_v25 = vadd.f32 %v1493_v34, %v11612_v60  ;;  %4637 = vperm.xlu1 %6617, %v9887_v56   ;;  %v6769_v56 = vld [vmem:[%s11140_s2 + $0x90] sm:$0xff]  }
 0x3e2   : > { %4673 = vperm.xlu0 %6618, %v10046_v36   ;;  %v11618_v45 = vld [vmem:[#allocation52_spill] sm:$0xff] }
 0x3e3   : > { %11613 = vst [vmem:[#allocation99_spill] sm:$0xff] %v10440_v25  ;;  %v10445_v63 = vpop.permute.xlu1 %1467  ;;  %v11624_v25 = vld [vmem:[#allocation63_spill] sm:$0xff] }
 0x3e4   : > { %v1503_v43 = vpop.permute.xlu0 %1502 }
 0x3e5   : > { %v10448_v6 = vadd.f32 %v1503_v43, %v11614_v44  ;;  %v10451_v10 = vadd.f32 %v1503_v43, %v11616_v47  ;;  %4645 = vperm.xlu1 %6617, %v9899_v26   ;;  %5870 = vmatmul.mubr.msk.bf16.gmra.mrb[72].mxu0 %vm643_vm0, %v6769_v56  ;;  %v11620_v44 = vld [vmem:[#allocation44_spill] sm:$0xff]  ;;  %v11623_v43 = vld [vmem:[#allocation82_spill] sm:$0xff] }
 0x3e6   : > { %4681 = vperm.xlu0 %6618, %v10062_v59   ;;  %986 = vmatprep.mubr.bf16.mxu0 %v11581_v2  ;;  %v11622_v59 = vld [vmem:[#allocation80_spill] sm:$0xff] }
 0x3e7   : > { %11615 = vst [vmem:[#allocation101_spill] sm:$0xff] %v10448_v6  ;;  %11617 = vst [vmem:[#allocation48_spill] sm:$0xff] %v10451_v10  ;;  %v10458_v34 = vpop.permute.xlu1 %1477 }
 0x3e8   : > { %v1513_v36 = vpop.permute.xlu0 %1512 }
 0x3e9   : > { %v10462_v60 = vadd.f32 %v1513_v36, %v11618_v45  ;;  %v10465_v6 = vadd.f32 %v1513_v36, %v11620_v44  ;;  %4653 = vperm.xlu1 %6617, %v9929_v55   ;;  %v6770_v55 = vld [vmem:[%s11140_s2 + $0x98] sm:$0xff]  }
 0x3ea   : > { %4689 = vperm.xlu0 %6618, %v10085_v51   ;;  %v11628_v44 = vld [vmem:[#allocation85_spill] sm:$0xff] }
 0x3eb   : > { %11619 = vst [vmem:[#allocation83_spill] sm:$0xff] %v10462_v60  ;;  %11621 = vst [vmem:[#allocation84_spill] sm:$0xff] %v10465_v6  ;;  %v1488_v26 = vpop.permute.xlu1 %1487  ;;  %v11626_v60 = vld [vmem:[#allocation57_spill] sm:$0xff]  ;;  %v11636_v6 = vld [vmem:[#allocation27_spill] sm:$0xff] }
 0x3ec   : > { %v10471_v47 = vadd.f32 %v1488_v26, %v11622_v59  ;;  %v10474_v10 = vadd.f32 %v1488_v26, %v11623_v43  ;;  %v1523_v56 = vpop.permute.xlu0 %1522  ;;  %v11629_v26 = vld [vmem:[#allocation86_spill] sm:$0xff] }
 0x3ed   : > { %v10477_v45 = vadd.f32 %v1523_v56, %v11624_v25  ;;  %v10480_v36 = vadd.f32 %v1523_v56, %v11626_v60  ;;  %4661 = vperm.xlu1 %6617, %v9941_v12   ;;  %5871 = vmatmul.mubr.msk.bf16.gmra.mrb[76].mxu0 %vm643_vm0, %v6770_v55  ;;  %v11630_v60 = vld [vmem:[#allocation92_spill] sm:$0xff]  ;;  %v11632_v12 = vld [vmem:[#allocation19_spill] sm:$0xff] }
 0x3ee   : > { %4697 = vperm.xlu0 %6618, %v10102_v54   ;;  %996 = vmatprep.mubr.bf16.mxu0 %v11581_v2 }
 0x3ef   : > { %11625 = vst [vmem:[#allocation87_spill] sm:$0xff] %v10477_v45  ;;  %11627 = vst [vmem:[#allocation88_spill] sm:$0xff] %v10480_v36  ;;  %v1498_v51 = vpop.permute.xlu1 %1497 }
 0x3f0   : > { %v10488_v59 = vadd.f32 %v1498_v51, %v11628_v44  ;;  %v10491_v43 = vadd.f32 %v1498_v51, %v11629_v26  ;;  %v1533_v25 = vpop.permute.xlu0 %1532  ;;  %v11634_v44 = vld [vmem:[#allocation45_spill] sm:$0xff] }
 0x3f1   : > { %v10495_v56 = vadd.f32 %v1533_v25, %v11630_v60  ;;  %v10498_v36 = vadd.f32 %v1533_v25, %v11632_v12  ;;  %4669 = vperm.xlu1 %6617, %v9971_v40   ;;  %v11635_v51 = vld [vmem:[#allocation89_spill] sm:$0xff]  ;;  %v6771_v40 = vld [vmem:[%s11140_s2 + $0xa0] sm:$0xff]   ;;  %v11640_v12 = vld [vmem:[#allocation64_spill] sm:$0xff] }
 0x3f2   : > { %4705 = vperm.xlu0 %6618, %v10117_v29  }
 0x3f3   : > { %11631 = vst [vmem:[#allocation52_spill] sm:$0xff] %v10495_v56  ;;  %11633 = vst [vmem:[#allocation44_spill] sm:$0xff] %v10498_v36  ;;  %v1508_v54 = vpop.permute.xlu1 %1507  ;;  %v11638_v56 = vld [vmem:[#allocation36_spill] sm:$0xff]  ;;  %v11648_v36 = vld [vmem:[#allocation66_spill] sm:$0xff] }
 0x3f4   : > { %v10504_v45 = vadd.f32 %v1508_v54, %v11634_v44  ;;  %v10507_v26 = vadd.f32 %v1508_v54, %v11635_v51  ;;  %v1543_v55 = vpop.permute.xlu0 %1542  ;;  %v11641_v54 = vld [vmem:[#allocation58_spill] sm:$0xff] }
 0x3f5   : > { %v10510_v60 = vadd.f32 %v1543_v55, %v11636_v6  ;;  %v10513_v25 = vadd.f32 %v1543_v55, %v11638_v56  ;;  %4677 = vperm.xlu1 %6617, %v9983_v0   ;;  %5872 = vmatmul.mubr.msk.bf16.gmra.mrb[80].mxu0 %vm643_vm0, %v6771_v40  ;;  %v11642_v56 = vld [vmem:[#allocation33_spill] sm:$0xff]  ;;  %v11644_v0 = vld [vmem:[#allocation32_spill] sm:$0xff] }
 0x3f6   : > { %4713 = vperm.xlu0 %6618, %v10130_v19   ;;  %1006 = vmatprep.mubr.bf16.mxu0 %v11581_v2 }
 0x3f7   : > { %11637 = vst [vmem:[#allocation80_spill] sm:$0xff] %v10510_v60  ;;  %11639 = vst [vmem:[#allocation82_spill] sm:$0xff] %v10513_v25  ;;  %v1518_v29 = vpop.permute.xlu1 %1517 }
 0x3f8   : > { %v10521_v44 = vadd.f32 %v1518_v29, %v11640_v12  ;;  %v10524_v51 = vadd.f32 %v1518_v29, %v11641_v54  ;;  %v1553_v6 = vpop.permute.xlu0 %1552  ;;  %v11646_v12 = vld [vmem:[#allocation69_spill] sm:$0xff]  ;;  %v11647_v29 = vld [vmem:[#allocation91_spill] sm:$0xff] }
 0x3f9   : > { %v10528_v55 = vadd.f32 %v1553_v6, %v11642_v56  ;;  %v10531_v25 = vadd.f32 %v1553_v6, %v11644_v0  ;;  %4685 = vperm.xlu1 %6617, %v10013_v38   ;;  %v6772_v38 = vld [vmem:[%s11140_s2 + $0xa8] sm:$0xff]   ;;  %v11652_v0 = vld [vmem:[#allocation18_spill] sm:$0xff] }
 0x3fa   : > { %4721 = vperm.xlu0 %6618, %v10149_v4  }
 0x3fb   : > { %11643 = vst [vmem:[#allocation63_spill] sm:$0xff] %v10528_v55  ;;  %11645 = vst [vmem:[#allocation57_spill] sm:$0xff] %v10531_v25  ;;  %v1528_v19 = vpop.permute.xlu1 %1527  ;;  %v11650_v55 = vld [vmem:[#allocation65_spill] sm:$0xff]  ;;  %v11660_v25 = vld [vmem:[#allocation11_spill] sm:$0xff] }
 0x3fc   : > { %v10537_v60 = vadd.f32 %v1528_v19, %v11646_v12  ;;  %v10540_v54 = vadd.f32 %v1528_v19, %v11647_v29  ;;  %v1563_v40 = vpop.permute.xlu0 %1562  ;;  %v11653_v19 = vld [vmem:[#allocation30_spill] sm:$0xff] }
 0x3fd   : > { %v10543_v56 = vadd.f32 %v1563_v40, %v11648_v36  ;;  %v10546_v6 = vadd.f32 %v1563_v40, %v11650_v55  ;;  %4693 = vperm.xlu1 %6617, %v10025_v52   ;;  %5873 = vmatmul.mubr.msk.bf16.gmra.mrb[84].mxu0 %vm643_vm0, %v6772_v38  ;;  %v11654_v55 = vld [vmem:[#allocation71_spill] sm:$0xff]  ;;  %v11656_v52 = vld [vmem:[#allocation78_spill] sm:$0xff] }
 0x3fe   : > { %4729 = vperm.xlu0 %6618, %v10164_v62   ;;  %1016 = vmatprep.mubr.bf16.mxu0 %v11581_v2 }
 0x3ff   : > { %11649 = vst [vmem:[#allocation85_spill] sm:$0xff] %v10543_v56  ;;  %11651 = vst [vmem:[#allocation86_spill] sm:$0xff] %v10546_v6  ;;  %v1538_v4 = vpop.permute.xlu1 %1537 }
 0x400   : > { %v10554_v12 = vadd.f32 %v1538_v4, %v11652_v0  ;;  %v10557_v29 = vadd.f32 %v1538_v4, %v11653_v19  ;;  %v1573_v36 = vpop.permute.xlu0 %1572  ;;  %v11658_v0 = vld [vmem:[#allocation37_spill] sm:$0xff]  ;;  %v11659_v4 = vld [vmem:[#allocation39_spill] sm:$0xff] }
 0x401   : > { %v10561_v40 = vadd.f32 %v1573_v36, %v11654_v55  ;;  %v10564_v6 = vadd.f32 %v1573_v36, %v11656_v52  ;;  %4701 = vperm.xlu1 %6617, %v10055_v16   ;;  %v6773_v16 = vld [vmem:[%s11140_s2 + $0xb0] sm:$0xff]   ;;  %v11664_v52 = vld [vmem:[#allocation49_spill] sm:$0xff] }
 0x402   : > { %4737 = vperm.xlu0 %6618, %v10183_v61  }
 0x403   : > { %11655 = vst [vmem:[#allocation92_spill] sm:$0xff] %v10561_v40  ;;  %11657 = vst [vmem:[#allocation19_spill] sm:$0xff] %v10564_v6  ;;  %v1548_v62 = vpop.permute.xlu1 %1547  ;;  %v11662_v40 = vld [vmem:[#allocation21_spill] sm:$0xff]  ;;  %v11672_v6 = vld [vmem:[#allocation35_spill] sm:$0xff] }
 0x404   : > { %v10570_v56 = vadd.f32 %v1548_v62, %v11658_v0  ;;  %v10573_v19 = vadd.f32 %v1548_v62, %v11659_v4  ;;  %v1583_v38 = vpop.permute.xlu0 %1582  ;;  %v11665_v62 = vld [vmem:[#allocation47_spill] sm:$0xff] }
 0x405   : > { %v10576_v55 = vadd.f32 %v1583_v38, %v11660_v25  ;;  %v10579_v36 = vadd.f32 %v1583_v38, %v11662_v40  ;;  %4709 = vperm.xlu1 %6617, %v10067_v57   ;;  %5874 = vmatmul.mubr.msk.bf16.gmra.mrb[88].mxu0 %vm643_vm0, %v6773_v16  ;;  %v11666_v40 = vld [vmem:[#allocation29_spill] sm:$0xff]  ;;  %v11668_v57 = vld [vmem:[#allocation28_spill] sm:$0xff] }
 0x406   : > { %4745 = vperm.xlu0 %6618, %v10200_v58   ;;  %1026 = vmatprep.mubr.bf16.mxu0 %v11581_v2 }
 0x407   : > { %11661 = vst [vmem:[#allocation45_spill] sm:$0xff] %v10576_v55  ;;  %11663 = vst [vmem:[#allocation89_spill] sm:$0xff] %v10579_v36  ;;  %v1558_v61 = vpop.permute.xlu1 %1557 }
 0x408   : > { %v10587_v0 = vadd.f32 %v1558_v61, %v11664_v52  ;;  %v10590_v4 = vadd.f32 %v1558_v61, %v11665_v62  ;;  %v1593_v25 = vpop.permute.xlu0 %1592  ;;  %v11670_v52 = vld [vmem:[#allocation72_spill] sm:$0xff]  ;;  %v11671_v61 = vld [vmem:[#allocation73_spill] sm:$0xff] }
 0x409   : > { %v10594_v38 = vadd.f32 %v1593_v25, %v11666_v40  ;;  %v10597_v36 = vadd.f32 %v1593_v25, %v11668_v57  ;;  %4717 = vperm.xlu1 %6617, %v10094_v11   ;;  %v6774_v11 = vld [vmem:[%s11140_s2 + $0xb8] sm:$0xff]   ;;  %v11676_v57 = vld [vmem:[#allocation75_spill] sm:$0xff] }
 0x40a   : > { %4753 = vperm.xlu0 %6618, %v10219_v9  }
 0x40b   : > { %11667 = vst [vmem:[#allocation27_spill] sm:$0xff] %v10594_v38  ;;  %11669 = vst [vmem:[#allocation36_spill] sm:$0xff] %v10597_v36  ;;  %v1568_v58 = vpop.permute.xlu1 %1567  ;;  %v11674_v38 = vld [vmem:[#allocation41_spill] sm:$0xff]  ;;  %v11688_v36 = vld [vmem:[#allocation62_spill] sm:$0xff] }
 0x40c   : > { %v10603_v55 = vadd.f32 %v1568_v58, %v11670_v52  ;;  %v10606_v62 = vadd.f32 %v1568_v58, %v11671_v61  ;;  %v1603_v16 = vpop.permute.xlu0 %1602  ;;  %v11678_v58 = vld [vmem:[#allocation81_spill] sm:$0xff] }
 0x40d   : > { %v10609_v40 = vadd.f32 %v1603_v16, %v11672_v6  ;;  %v10612_v25 = vadd.f32 %v1603_v16, %v11674_v38  ;;  %4725 = vperm.xlu1 %6617, %v10107_v20   ;;  %5875 = vmatmul.mubr.msk.bf16.gmra.mrb[92].mxu0 %vm643_vm0, %v6774_v11  ;;  %v11680_v38 = vld [vmem:[#allocation51_spill] sm:$0xff] }
 0x40e   : > { %4761 = vperm.xlu0 %6618, %v10240_v31   ;;  %v11682_v20 = vld [vmem:[#allocation55_spill] sm:$0xff]  ;;  %5016 = vmatprep.mubr.bf16.mxu0 %v11581_v2 }
 0x40f   : > { %11673 = vst [vmem:[#allocation64_spill] sm:$0xff] %v10609_v40  ;;  %11675 = vst [vmem:[#allocation58_spill] sm:$0xff] %v10612_v25  ;;  %v1578_v9 = vpop.permute.xlu1 %1577 }
 0x410   : > { %v10620_v52 = vadd.f32 %v1578_v9, %v11676_v57  ;;  %v10623_v61 = vadd.f32 %v1578_v9, %v11678_v58  ;;  %v1613_v6 = vpop.permute.xlu0 %1612  ;;  %v11684_v57 = vld [vmem:[#allocation20_spill] sm:$0xff] }
 0x411   : > { %v10627_v16 = vadd.f32 %v1613_v6, %v11680_v38  ;;  %v10630_v25 = vadd.f32 %v1613_v6, %v11682_v20  ;;  %4733 = vperm.xlu1 %6617, %v10122_v1   ;;  %v11686_v9 = vld [vmem:[#allocation16_spill] sm:$0xff] }
 0x412   : > { %11677 = vst [vmem:[#allocation33_spill] sm:$0xff] %v10620_v52  ;;  %11679 = vst [vmem:[#allocation32_spill] sm:$0xff] %v10623_v61  ;;  %4769 = vperm.xlu0 %6618, %v10260_v14   ;;  %v11692_v14 = vld [vmem:[#allocation24_spill] sm:$0xff] }
 0x413   : > { %11681 = vst [vmem:[#allocation69_spill] sm:$0xff] %v10627_v16  ;;  %11683 = vst [vmem:[#allocation91_spill] sm:$0xff] %v10630_v25  ;;  %v1588_v31 = vpop.permute.xlu1 %1587  ;;  %v11690_v16 = vld [vmem:[#allocation61_spill] sm:$0xff] }
 0x414   : > { %v10636_v40 = vadd.f32 %v1588_v31, %v11684_v57  ;;  %v10639_v58 = vadd.f32 %v1588_v31, %v11686_v9  ;;  %v1623_v11 = vpop.permute.xlu0 %1622  ;;  %v11694_v57 = vld [vmem:[#allocation43_spill] sm:$0xff]  ;;  %v11696_v9 = vld [vmem:[#allocation9_spill] sm:$0xff] }
 0x415   : > { %v10642_v38 = vadd.f32 %v1623_v11, %v11688_v36  ;;  %v10645_v6 = vadd.f32 %v1623_v11, %v11690_v16  ;;  %4741 = vperm.xlu1 %6617, %v10135_v3   ;;  %v11698_v36 = vld [vmem:[#allocation42_spill] sm:$0xff]  ;;  %v11702_v11 = vld [vmem:[#allocation56_spill] sm:$0xff] }
 0x416   : > { %11685 = vst [vmem:[#allocation66_spill] sm:$0xff] %v10636_v40  ;;  %11687 = vst [vmem:[#allocation65_spill] sm:$0xff] %v10639_v58  ;;  %4777 = vperm.xlu0 %6618, %v10275_v13   ;;  %v11700_v13 = vld [vmem:[#allocation34_spill] sm:$0xff] }
 0x417   : > { %11689 = vst [vmem:[#allocation18_spill] sm:$0xff] %v10642_v38  ;;  %11691 = vst [vmem:[#allocation30_spill] sm:$0xff] %v10645_v6  ;;  %v1598_v1 = vpop.permute.xlu1 %1597 }
 0x418   : > { %v10650_v20 = vadd.f32 %v1598_v1, %v11692_v14  ;;  %v10653_v25 = vadd.f32 %v1598_v1, %v11694_v57  ;;  %v1633_v31 = vpop.permute.xlu0 %1632  ;;  %v11704_v57 = vld [vmem:[#allocation96_spill] sm:$0xff] }
 0x419   : > { %v10656_v58 = vadd.f32 %v1633_v31, %v11696_v9  ;;  %v10659_v38 = vadd.f32 %v1633_v31, %v11698_v36  ;;  %4749 = vperm.xlu1 %6617, %v10154_v24   ;;  %v11706_v9 = vld [vmem:[#allocation98_spill] sm:$0xff] }
 0x41a   : > { %11693 = vst [vmem:[#allocation71_spill] sm:$0xff] %v10650_v20  ;;  %11695 = vst [vmem:[#allocation78_spill] sm:$0xff] %v10653_v25  ;;  %4785 = vperm.xlu0 %6618, %v10292_v48   ;;  %v11708_v24 = vld [vmem:[#allocation50_spill] sm:$0xff]  ;;  %v11710_v48 = vld [vmem:[#allocation68_spill] sm:$0xff] }
 0x41b   : > { %11697 = vst [vmem:[#allocation37_spill] sm:$0xff] %v10656_v58  ;;  %11699 = vst [vmem:[#allocation39_spill] sm:$0xff] %v10659_v38  ;;  %v1608_v3 = vpop.permute.xlu1 %1607 }
 0x41c   : > { %v10664_v16 = vadd.f32 %v1608_v3, %v11700_v13  ;;  %v10667_v14 = vadd.f32 %v1608_v3, %v11702_v11  ;;  %v1643_v1 = vpop.permute.xlu0 %1642  ;;  %v11712_v13 = vld [vmem:[#allocation12_spill] sm:$0xff] }
 0x41d   : > { %v10670_v6 = vadd.f32 %v1643_v1, %v11704_v57  ;;  %v10673_v58 = vadd.f32 %v1643_v1, %v11706_v9  ;;  %4757 = vperm.xlu1 %6617, %v10171_v18   ;;  %v11714_v57 = vld [vmem:[#allocation40_spill] sm:$0xff]  ;;  %v11716_v1 = vld [vmem:[#allocation59_spill] sm:$0xff]  ;;  %v11717_v18 = vld [vmem:[#allocation94_spill] sm:$0xff] }
 0x41e   : > { %11701 = vst [vmem:[#allocation11_spill] sm:$0xff] %v10664_v16  ;;  %11703 = vst [vmem:[#allocation21_spill] sm:$0xff] %v10667_v14 }
 0x41f   : > { %11705 = vst [vmem:[#allocation49_spill] sm:$0xff] %v10670_v6  ;;  %11707 = vst [vmem:[#allocation47_spill] sm:$0xff] %v10673_v58  ;;  %v1618_v31 = vpop.permute.xlu1 %1617 }
 0x420   : > { %v10677_v36 = vadd.f32 %v1618_v31, %v11708_v24  ;;  %v10680_v38 = vadd.f32 %v1618_v31, %v11710_v48  ;;  %v11719_v24 = vld [vmem:[#allocation95_spill] sm:$0xff]  ;;  %v11722_v48 = vld [vmem:[#allocation8_spill] sm:$0xff] }
 0x421   : > { %4765 = vperm.xlu1 %6617, %v10190_v23   ;;  %v11721_v31 = vld [vmem:[#allocation7_spill] sm:$0xff] }
 0x422   : > { %11709 = vst [vmem:[#allocation29_spill] sm:$0xff] %v10677_v36  ;;  %11711 = vst [vmem:[#allocation28_spill] sm:$0xff] %v10680_v38  ;;  %v11723_v38 = vld [vmem:[#allocation22_spill] sm:$0xff] }
 0x423   : > { %v1628_v3 = vpop.permute.xlu1 %1627 }
 0x424   : > { %v10684_v11 = vadd.f32 %v1628_v3, %v11712_v13  ;;  %v10687_v6 = vadd.f32 %v1628_v3, %v11714_v57 }
 0x425   : > { %4773 = vperm.xlu1 %6617, %v11716_v1  }
 0x426   : > { %11713 = vst [vmem:[#allocation72_spill] sm:$0xff] %v10684_v11  ;;  %11715 = vst [vmem:[#allocation73_spill] sm:$0xff] %v10687_v6  ;;  %v11724_v6 = vld [vmem:[#allocation23_spill] sm:$0xff] }
 0x427   : > { %v1638_v9 = vpop.permute.xlu1 %1637 }
 0x428   : > { %v10691_v58 = vadd.f32 %v1638_v9, %v11717_v18  ;;  %v10694_v36 = vadd.f32 %v1638_v9, %v11719_v24 }
 0x429   : > { %4781 = vperm.xlu1 %6617, %v11721_v31  }
 0x42a   : > { %11718 = vst [vmem:[#allocation35_spill] sm:$0xff] %v10691_v58  ;;  %11720 = vst [vmem:[#allocation41_spill] sm:$0xff] %v10694_v36 }
 0x42d   : > { %4789 = vperm.xlu1 %6617, %v11722_v48   ;;  %v11725_v48 = vld [vmem:[#allocation14_spill] sm:$0xff] }
 0x451   : > { %v4345_v23 = vpop.f32.mrb[64].mxu1 }
 0x452   : > { %v6333_v13 = vadd.f32 %v4345_v23, %v11723_v38  ;;  %v4347_v11 = vpop.f32.mrb[65].mxu1 }
 0x453   : > { %v6334_v3 = vadd.f32 %v4347_v11, %v11723_v38  ;;  %v4349_v57 = vpop.f32.mrb[66].mxu1  ;;  %v11726_v38 = vld [vmem:[#allocation53_spill] sm:$0xff] }
 0x454   : > { %v6335_v1 = vadd.f32 %v4349_v57, %v11724_v6  ;;  %v4351_v14 = vpop.f32.mrb[67].mxu1  ;;  %v4424_v58 = vmax.f32 %v6333_v13, 0.0 }
 0x455   : > { %v6336_v18 = vadd.f32 %v4351_v14, %v11724_v6  ;;  %v4425_v9 = vmax.f32 %v6334_v3, 0.0 }
 0x456   : > { %v4426_v16 = vmax.f32 %v6335_v1, 0.0 }
 0x457   : > { %v4427_v24 = vmax.f32 %v6336_v18, 0.0 }
 0x458   : > { %v4520_v36 = vpack.c.bf16 %v4426_v16, %v4424_v58 }
 0x459   : > { %v4521_v31 = vpack.c.bf16 %v4427_v24, %v4425_v9  ;;  %v4355_v25 = vpop.f32.mrb[68].mxu1  ;;  %v11727_v9 = vld [vmem:[#allocation90_spill] sm:$0xff] }
 0x45a   : > { %v6337_v20 = vadd.f32 %v4355_v25, %v11725_v48  ;;  %v4357_v40 = vpop.f32.mrb[69].mxu1 }
 0x45b   : > { %v6338_v23 = vadd.f32 %v4357_v40, %v11725_v48  ;;  %v4359_v61 = vpop.f32.mrb[70].mxu1  ;;  %4984 = vmatprep.subr.bf16.mxu0 %v4521_v31  ;;  %v11728_v31 = vld [vmem:[#allocation60_spill] sm:$0xff] }
 0x45c   : > { %v6339_v11 = vadd.f32 %v4359_v61, %v11726_v38  ;;  %v4361_v57 = vpop.f32.mrb[71].mxu1  ;;  %4985 = vmatpush1.bf16.msra.mxu0 %v4520_v36  ;;  %v4428_v14 = vmax.f32 %v6337_v20, 0.0 }
 0x45d   : > { %v6340_v6 = vadd.f32 %v4361_v57, %v11726_v38  ;;  %v4429_v3 = vmax.f32 %v6338_v23, 0.0 }
 0x45e   : > { %v4430_v13 = vmax.f32 %v6339_v11, 0.0 }
 0x45f   : > { %v4431_v1 = vmax.f32 %v6340_v6, 0.0 }
 0x460   : > { %v4522_v58 = vpack.c.bf16 %v4430_v13, %v4428_v14  ;;  %v11729_v13 = vld [vmem:[#allocation38_spill] sm:$0xff] }
 0x461   : > { %v4523_v16 = vpack.c.bf16 %v4431_v1, %v4429_v3  ;;  %v4365_v18 = vpop.f32.mrb[72].mxu1 }
 0x462   : > { %v6341_v25 = vadd.f32 %v4365_v18, %v11727_v9  ;;  %v4367_v24 = vpop.f32.mrb[73].mxu1 }
 0x463   : > { %v6342_v40 = vadd.f32 %v4367_v24, %v11727_v9  ;;  %v4369_v48 = vpop.f32.mrb[74].mxu1  ;;  %4986 = vmatprep.subr.bf16.mxu0 %v4523_v16  ;;  %v11730_v16 = vld [vmem:[#allocation74_spill] sm:$0xff] }
 0x464   : > { %v6343_v61 = vadd.f32 %v4369_v48, %v11728_v31  ;;  %v4371_v52 = vpop.f32.mrb[75].mxu1  ;;  %4987 = vmatpush1.bf16.msra.mxu0 %v4522_v58  ;;  %v4432_v20 = vmax.f32 %v6341_v25, 0.0 }
 0x465   : > { %v6344_v36 = vadd.f32 %v4371_v52, %v11728_v31  ;;  %v4433_v23 = vmax.f32 %v6342_v40, 0.0 }
 0x466   : > { %v4434_v38 = vmax.f32 %v6343_v61, 0.0 }
 0x467   : > { %v4435_v11 = vmax.f32 %v6344_v36, 0.0 }
 0x468   : > { %v4524_v57 = vpack.c.bf16 %v4434_v38, %v4432_v20  ;;  %v11731_v38 = vld [vmem:[#allocation26_spill] sm:$0xff] }
 0x469   : > { %v4525_v6 = vpack.c.bf16 %v4435_v11, %v4433_v23  ;;  %v4375_v14 = vpop.f32.mrb[76].mxu1 }
 0x46a   : > { %v6345_v3 = vadd.f32 %v4375_v14, %v11729_v13  ;;  %v4377_v1 = vpop.f32.mrb[77].mxu1 }
 0x46b   : > { %v6346_v18 = vadd.f32 %v4377_v1, %v11729_v13  ;;  %v4379_v9 = vpop.f32.mrb[78].mxu1  ;;  %4988 = vmatprep.subr.bf16.mxu0 %v4525_v6  ;;  %v11732_v6 = vld [vmem:[#allocation77_spill] sm:$0xff] }
 0x46c   : > { %v6347_v24 = vadd.f32 %v4379_v9, %v11730_v16  ;;  %v4381_v48 = vpop.f32.mrb[79].mxu1  ;;  %4989 = vmatpush1.bf16.msra.mxu0 %v4524_v57  ;;  %v4436_v58 = vmax.f32 %v6345_v3, 0.0 }
 0x46d   : > { %v6348_v52 = vadd.f32 %v4381_v48, %v11730_v16  ;;  %v4437_v40 = vmax.f32 %v6346_v18, 0.0 }
 0x46e   : > { %v4438_v25 = vmax.f32 %v6347_v24, 0.0 }
 0x46f   : > { %v4439_v31 = vmax.f32 %v6348_v52, 0.0 }
 0x470   : > { %v4526_v61 = vpack.c.bf16 %v4438_v25, %v4436_v58  ;;  %v11733_v25 = vld [vmem:[#allocation54_spill] sm:$0xff] }
 0x471   : > { %v4527_v36 = vpack.c.bf16 %v4439_v31, %v4437_v40  ;;  %v4385_v20 = vpop.f32.mrb[80].mxu1 }
 0x472   : > { %v6349_v23 = vadd.f32 %v4385_v20, %v11731_v38  ;;  %v4387_v11 = vpop.f32.mrb[81].mxu1 }
 0x473   : > { %v6350_v14 = vadd.f32 %v4387_v11, %v11731_v38  ;;  %v4389_v13 = vpop.f32.mrb[82].mxu1  ;;  %4990 = vmatprep.subr.bf16.mxu0 %v4527_v36  ;;  %v11734_v36 = vld [vmem:[#allocation13_spill] sm:$0xff] }
 0x474   : > { %v6351_v1 = vadd.f32 %v4389_v13, %v11732_v6  ;;  %v4391_v9 = vpop.f32.mrb[83].mxu1  ;;  %4991 = vmatpush1.bf16.msra.mxu0 %v4526_v61  ;;  %v4440_v3 = vmax.f32 %v6349_v23, 0.0 }
 0x475   : > { %v6352_v57 = vadd.f32 %v4391_v9, %v11732_v6  ;;  %v4441_v18 = vmax.f32 %v6350_v14, 0.0 }
 0x476   : > { %v4442_v16 = vmax.f32 %v6351_v1, 0.0 }
 0x477   : > { %v4443_v24 = vmax.f32 %v6352_v57, 0.0 }
 0x478   : > { %v4528_v48 = vpack.c.bf16 %v4442_v16, %v4440_v3  ;;  %v11735_v16 = vld [vmem:[#allocation76_spill] sm:$0xff] }
 0x479   : > { %v4529_v52 = vpack.c.bf16 %v4443_v24, %v4441_v18  ;;  %v4395_v58 = vpop.f32.mrb[84].mxu1 }
 0x47a   : > { %v6353_v40 = vadd.f32 %v4395_v58, %v11733_v25  ;;  %v4397_v31 = vpop.f32.mrb[85].mxu1 }
 0x47b   : > { %v6354_v20 = vadd.f32 %v4397_v31, %v11733_v25  ;;  %v4399_v38 = vpop.f32.mrb[86].mxu1  ;;  %4992 = vmatprep.subr.bf16.mxu0 %v4529_v52  ;;  %v11736_v52 = vld [vmem:[#allocation67_spill] sm:$0xff] }
 0x47c   : > { %v6355_v11 = vadd.f32 %v4399_v38, %v11734_v36  ;;  %v4401_v13 = vpop.f32.mrb[87].mxu1  ;;  %4993 = vmatpush1.bf16.msra.mxu0 %v4528_v48  ;;  %v4444_v23 = vmax.f32 %v6353_v40, 0.0 }
 0x47d   : > { %v6356_v61 = vadd.f32 %v4401_v13, %v11734_v36  ;;  %v4445_v14 = vmax.f32 %v6354_v20, 0.0 }
 0x47e   : > { %v4446_v6 = vmax.f32 %v6355_v11, 0.0 }
 0x47f   : > { %v4447_v1 = vmax.f32 %v6356_v61, 0.0 }
 0x480   : > { %v4530_v9 = vpack.c.bf16 %v4446_v6, %v4444_v23  ;;  %v11737_v6 = vld [vmem:[#allocation17_spill] sm:$0xff] }
 0x481   : > { %v4531_v57 = vpack.c.bf16 %v4447_v1, %v4445_v14  ;;  %v4405_v3 = vpop.f32.mrb[88].mxu1 }
 0x482   : > { %v6357_v18 = vadd.f32 %v4405_v3, %v11735_v16  ;;  %v4407_v24 = vpop.f32.mrb[89].mxu1 }
 0x483   : > { %v6358_v58 = vadd.f32 %v4407_v24, %v11735_v16  ;;  %v4409_v25 = vpop.f32.mrb[90].mxu1  ;;  %4994 = vmatprep.subr.bf16.mxu0 %v4531_v57  ;;  %v11738_v57 = vld [vmem:[#allocation93_spill] sm:$0xff] }
 0x484   : > { %v6359_v31 = vadd.f32 %v4409_v25, %v11736_v52  ;;  %v4411_v38 = vpop.f32.mrb[91].mxu1  ;;  %4995 = vmatpush1.bf16.msra.mxu0 %v4530_v9  ;;  %v4448_v40 = vmax.f32 %v6357_v18, 0.0 }
 0x485   : > { %v6360_v48 = vadd.f32 %v4411_v38, %v11736_v52  ;;  %v4449_v20 = vmax.f32 %v6358_v58, 0.0 }
 0x486   : > { %v4450_v36 = vmax.f32 %v6359_v31, 0.0 }
 0x487   : > { %v4451_v11 = vmax.f32 %v6360_v48, 0.0 }
 0x488   : > { %v4532_v13 = vpack.c.bf16 %v4450_v36, %v4448_v40  ;;  %v6775_v40 = vld [vmem:[%s11142_s4] sm:$0xff]   ;;  %v6776_v36 = vld [vmem:[%s11142_s4 + $0x8] sm:$0xff]  }
 0x489   : > { %v4533_v61 = vpack.c.bf16 %v4451_v11, %v4449_v20  ;;  %v4415_v23 = vpop.f32.mrb[92].mxu1  ;;  %v6777_v20 = vld [vmem:[%s11142_s4 + $0x10] sm:$0xff]   ;;  %v6778_v11 = vld [vmem:[%s11142_s4 + $0x18] sm:$0xff]  }
 0x48a   : > { %v6361_v14 = vadd.f32 %v4415_v23, %v11737_v6  ;;  %v4417_v1 = vpop.f32.mrb[93].mxu1  ;;  %v6781_v23 = vld [vmem:[%s11142_s4 + $0x30] sm:$0xff]  }
 0x48b   : > { %v6362_v3 = vadd.f32 %v4417_v1, %v11737_v6  ;;  %v4419_v16 = vpop.f32.mrb[94].mxu1  ;;  %4996 = vmatprep.subr.bf16.mxu0 %v4533_v61  ;;  %v6780_v61 = vld [vmem:[%s11142_s4 + $0x28] sm:$0xff]   ;;  %v6782_v6 = vld [vmem:[%s11142_s4 + $0x38] sm:$0xff]  }
 0x48c   : > { %v6363_v24 = vadd.f32 %v4419_v16, %v11738_v57  ;;  %v4421_v25 = vpop.f32.mrb[95].mxu1  ;;  %4997 = vmatpush1.bf16.msra.mxu0 %v4532_v13  ;;  %v4452_v18 = vmax.f32 %v6361_v14, 0.0  ;;  %v6779_v13 = vld [vmem:[%s11142_s4 + $0x20] sm:$0xff]   ;;  %v6784_v1 = vld [vmem:[%s11142_s4 + $0x48] sm:$0xff]   ;;  %v6786_v16 = vld [vmem:[%s11142_s4 + $0x58] sm:$0xff]  }
 0x48d   : > { %v6364_v9 = vadd.f32 %v4421_v25, %v11738_v57  ;;  %v4453_v58 = vmax.f32 %v6362_v3, 0.0  ;;  %v6783_v14 = vld [vmem:[%s11142_s4 + $0x40] sm:$0xff]   ;;  %v6785_v3 = vld [vmem:[%s11142_s4 + $0x50] sm:$0xff]  }
 0x48e   : > { %v4454_v52 = vmax.f32 %v6363_v24, 0.0  ;;  %v6787_v57 = vld [vmem:[%s11142_s4 + $0x60] sm:$0xff]   ;;  %v6788_v24 = vld [vmem:[%s11142_s4 + $0x68] sm:$0xff]   ;;  %v6789_v25 = vld [vmem:[%s11142_s4 + $0x70] sm:$0xff]  }
 0x48f   : > { %v4455_v31 = vmax.f32 %v6364_v9, 0.0  ;;  %v6790_v9 = vld [vmem:[%s11142_s4 + $0x78] sm:$0xff]  }
 0x490   : > { %v4534_v38 = vpack.c.bf16 %v4454_v52, %v4452_v18  ;;  %v6791_v18 = vld [vmem:[%s11142_s4 + $0x80] sm:$0xff]   ;;  %v6792_v52 = vld [vmem:[%s11142_s4 + $0x88] sm:$0xff]  }
 0x491   : > { %v4535_v48 = vpack.c.bf16 %v4455_v31, %v4453_v58  ;;  %v6793_v58 = vld [vmem:[%s11142_s4 + $0x90] sm:$0xff]   ;;  %v6794_v31 = vld [vmem:[%s11142_s4 + $0x98] sm:$0xff]  }
 0x493   : > { %4998 = vmatprep.subr.bf16.mxu0 %v4535_v48  ;;  %v6796_v48 = vld [vmem:[%s11142_s4 + $0xa8] sm:$0xff]  }
 0x494   : > { %4999 = vmatpush1.bf16.msra.mxu0 %v4534_v38  ;;  %v6795_v38 = vld [vmem:[%s11142_s4 + $0xa0] sm:$0xff]  }
 0x497   : > { %5017 = vmatmul.mubr.bf16.vlgmr.msra.gmra.mrb[32].mxu0 %v6775_v40  ;;  %v6797_v40 = vld [vmem:[%s11142_s4 + $0xb0] sm:$0xff]  }
 0x498   : > { %5026 = vmatprep.mubr.bf16.mxu0 %v11581_v2 }
 0x49f   : > { %5027 = vmatmul.mubr.bf16.gmra.mrb[36].mxu0 %v6776_v36  ;;  %v6798_v36 = vld [vmem:[%s11142_s4 + $0xb8] sm:$0xff]  }
 0x4a0   : > { %5036 = vmatprep.mubr.bf16.mxu0 %v11581_v2 }
 0x4a7   : > { %5037 = vmatmul.mubr.bf16.gmra.mrb[40].mxu0 %v6777_v20  ;;  %v6799_v20 = vld [vmem:[%s11142_s4 + $0xc0] sm:$0xff]  }
 0x4a8   : > { %5046 = vmatprep.mubr.bf16.mxu0 %v11581_v2 }
 0x4af   : > { %5047 = vmatmul.mubr.bf16.gmra.mrb[44].mxu0 %v6778_v11  ;;  %v6800_v11 = vld [vmem:[%s11142_s4 + $0xc8] sm:$0xff]  }
 0x4b0   : > { %5056 = vmatprep.mubr.bf16.mxu0 %v11581_v2 }
 0x4b7   : > { %5057 = vmatmul.mubr.bf16.gmra.mrb[48].mxu0 %v6779_v13  ;;  %v6801_v13 = vld [vmem:[%s11142_s4 + $0xd0] sm:$0xff]  }
 0x4b8   : > { %5066 = vmatprep.mubr.bf16.mxu0 %v11581_v2 }
 0x4bf   : > { %5067 = vmatmul.mubr.bf16.gmra.mrb[52].mxu0 %v6780_v61  ;;  %v4538_v61 = vpop.permute.xlu1 %4537 }
 0x4c0   : > { %5076 = vmatprep.mubr.bf16.mxu0 %v11581_v2 }
 0x4c7   : > { %5077 = vmatmul.mubr.bf16.gmra.mrb[56].mxu0 %v6781_v23  ;;  %v11739_v23 = vld [vmem:[#allocation79_spill] sm:$0xff] }
 0x4c8   : > { %5086 = vmatprep.mubr.bf16.mxu0 %v11581_v2 }
 0x4cf   : > { %5087 = vmatmul.mubr.bf16.gmra.mrb[60].mxu0 %v6782_v6  ;;  %v6013_v6 = vadd.f32 %v4538_v61, %v11739_v23 }
 0x4d0   : > { %5096 = vmatprep.mubr.bf16.mxu0 %v11581_v2 }
 0x4d7   : > { %5097 = vmatmul.mubr.bf16.gmra.mrb[64].mxu0 %v6783_v14  ;;  %v4542_v14 = vpop.permute.xlu0 %4541 }
 0x4d8   : > { %5106 = vmatprep.mubr.bf16.mxu0 %v11581_v2 }
 0x4df   : > { %5107 = vmatmul.mubr.bf16.gmra.mrb[68].mxu0 %v6784_v1 }
 0x4e0   : > { %5116 = vmatprep.mubr.bf16.mxu0 %v11581_v2 }
 0x4e7   : > { %5117 = vmatmul.mubr.bf16.gmra.mrb[72].mxu0 %v6785_v3  ;;  %v11740_v3 = vld [vmem:[#allocation70_spill] sm:$0xff] }
 0x4e8   : > { %5126 = vmatprep.mubr.bf16.mxu0 %v11581_v2 }
 0x4ef   : > { %5127 = vmatmul.mubr.bf16.gmra.mrb[76].mxu0 %v6786_v16  ;;  %v6017_v16 = vadd.f32 %v4542_v14, %v11740_v3  ;;  %v6803_v3 = vld [vmem:[%s11142_s4 + $0xe0] sm:$0xff]  }
 0x4f0   : > { %5136 = vmatprep.mubr.bf16.mxu0 %v11581_v2 }
 0x4f7   : > { %5137 = vmatmul.mubr.bf16.gmra.mrb[80].mxu0 %v6787_v57 }
 0x4f8   : > { %5146 = vmatprep.mubr.bf16.mxu0 %v11581_v2 }
 0x4ff   : > { %5147 = vmatmul.mubr.bf16.gmra.mrb[84].mxu0 %v6788_v24 }
 0x500   : > { %5156 = vmatprep.mubr.bf16.mxu0 %v11581_v2 }
 0x507   : > { %5157 = vmatmul.mubr.bf16.gmra.mrb[88].mxu0 %v6789_v25  ;;  %v6802_v25 = vld [vmem:[%s11142_s4 + $0xd8] sm:$0xff]  }
 0x508   : > { %5166 = vmatprep.mubr.bf16.mxu0 %v11581_v2 }
 0x50f   : > { %5167 = vmatmul.mubr.bf16.gmra.mrb[92].mxu0 %v6790_v9  ;;  %v4546_v9 = vpop.permute.xlu1 %4545 }
 0x510   : > { %5176 = vmatprep.mubr.bf16.mxu0 %v11581_v2 }
 0x513   : > { %v4550_v61 = vpop.permute.xlu1 %4549 }
 0x517   : > { %5177 = vmatmul.mubr.bf16.gmra.mrb[96].mxu0 %v6791_v18 }
 0x518   : > { %5186 = vmatprep.mubr.bf16.mxu0 %v11581_v2 }
 0x51f   : > { %5187 = vmatmul.mubr.bf16.gmra.mrb[100].mxu0 %v6792_v52 }
 0x520   : > { %5196 = vmatprep.mubr.bf16.mxu0 %v11581_v2 }
 0x527   : > { %5197 = vmatmul.mubr.bf16.gmra.mrb[104].mxu0 %v6793_v58 }
 0x528   : > { %5206 = vmatprep.mubr.bf16.mxu0 %v11581_v2 }
 0x52f   : > { %5207 = vmatmul.mubr.bf16.gmra.mrb[108].mxu0 %v6794_v31 }
 0x530   : > { %5216 = vmatprep.mubr.bf16.mxu0 %v11581_v2 }
 0x537   : > { %5217 = vmatmul.mubr.bf16.gmra.mrb[112].mxu0 %v6795_v38 }
 0x538   : > { %5226 = vmatprep.mubr.bf16.mxu0 %v11581_v2 }
 0x53f   : > { %5227 = vmatmul.mubr.bf16.gmra.mrb[116].mxu0 %v6796_v48 }
 0x540   : > { %5236 = vmatprep.mubr.bf16.mxu0 %v11581_v2 }
 0x547   : > { %5237 = vmatmul.mubr.bf16.gmra.mrb[120].mxu0 %v6797_v40 }
 0x548   : > { %5246 = vmatprep.mubr.bf16.mxu0 %v11581_v2 }
 0x54f   : > { %5247 = vmatmul.mubr.bf16.gmra.mrb[124].mxu0 %v6798_v36 }
 0x550   : > { %5256 = vmatprep.mubr.bf16.mxu0 %v11581_v2 }
 0x557   : > { %5257 = vmatmul.mubr.bf16.gmra.mrb[128].mxu0 %v6799_v20 }
 0x558   : > { %5266 = vmatprep.mubr.bf16.mxu0 %v11581_v2 }
 0x55f   : > { %5267 = vmatmul.mubr.bf16.gmra.mrb[132].mxu0 %v6800_v11  ;;  %v11741_v11 = vld [vmem:[#allocation25_spill] sm:$0xff] }
 0x560   : > { %5276 = vmatprep.mubr.bf16.mxu0 %v11581_v2 }
 0x567   : > { %5277 = vmatmul.mubr.bf16.gmra.mrb[136].mxu0 %v6801_v13  ;;  %v6021_v13 = vadd.f32 %v4546_v9, %v11741_v11 }
 0x568   : > { %5286 = vmatprep.mubr.bf16.mxu0 %v11581_v2 }
 0x56a   : > { %v5018_v1 = vpop.f32.mrb[32].mxu0 }
 0x56b   : > { %v6014_v57 = vadd.f32 %v6013_v6, %v5018_v1  ;;  %v5020_v24 = vpop.f32.mrb[33].mxu0 }
 0x56c   : > { %v6016_v18 = vadd.f32 %v6013_v6, %v5020_v24  ;;  %v5022_v52 = vpop.f32.mrb[34].mxu0  ;;  %v6025_v6 = vadd.f32 %v4550_v61, %v10325_v49  ;;  %v6804_v61 = vld [vmem:[%s11142_s4 + $0xe8] sm:$0xff]  }
 0x56d   : > { %v5465_v58 = vmax.f32 %v6014_v57, 0.0  ;;  %v6018_v31 = vadd.f32 %v6017_v16, %v5022_v52  ;;  %v5024_v38 = vpop.f32.mrb[35].mxu0 }
 0x56e   : > { %v5466_v48 = vmax.f32 %v6016_v18, 0.0  ;;  %v6020_v40 = vadd.f32 %v6017_v16, %v5024_v38 }
 0x56f   : > { %5593 = vst [vmem:[%s10846_s29] sm:$0xff] %v5465_v58  ;;  %v5467_v36 = vmax.f32 %v6018_v31, 0.0  ;;  %5287 = vmatmul.mubr.bf16.gmra.mrb[140].mxu0 %v6802_v25  ;;  %v4554_v31 = vpop.permute.xlu0 %4553 }
 0x570   : > { %5594 = vst [vmem:[%s10846_s29 + $0x8] sm:$0xff] %v5466_v48  ;;  %v5468_v20 = vmax.f32 %v6020_v40, 0.0  ;;  %5296 = vmatprep.mubr.bf16.mxu0 %v11581_v2  ;;  %v6029_v38 = vadd.f32 %v4554_v31, %v10339_v17  ;;  %v4558_v48 = vpop.permute.xlu1 %4557 }
 0x571   : > { %5595 = vst [vmem:[%s10846_s29 + $0x10] sm:$0xff] %v5467_v36  ;;  %v11742_v36 = vld [vmem:[#allocation6_spill] sm:$0xff] }
 0x572   : > { %5596 = vst [vmem:[%s10846_s29 + $0x18] sm:$0xff] %v5468_v20  ;;  %v5028_v23 = vpop.f32.mrb[36].mxu0  ;;  %v6033_v20 = vadd.f32 %v4558_v48, %v11742_v36 }
 0x573   : > { %v6022_v14 = vadd.f32 %v6021_v13, %v5028_v23  ;;  %v5030_v1 = vpop.f32.mrb[37].mxu0 }
 0x574   : > { %v6024_v16 = vadd.f32 %v6021_v13, %v5030_v1  ;;  %v5032_v57 = vpop.f32.mrb[38].mxu0 }
 0x575   : > { %v5469_v24 = vmax.f32 %v6022_v14, 0.0  ;;  %v6026_v25 = vadd.f32 %v6025_v6, %v5032_v57  ;;  %v5034_v9 = vpop.f32.mrb[39].mxu0 }
 0x576   : > { %v5470_v18 = vmax.f32 %v6024_v16, 0.0  ;;  %v6028_v52 = vadd.f32 %v6025_v6, %v5034_v9 }
 0x577   : > { %5597 = vst [vmem:[%s10846_s29 + $0x20] sm:$0xff] %v5469_v24  ;;  %v5471_v58 = vmax.f32 %v6026_v25, 0.0  ;;  %5297 = vmatmul.mubr.bf16.gmra.mrb[144].mxu0 %v6803_v3  ;;  %v4562_v24 = vpop.permute.xlu0 %4561 }
 0x578   : > { %5598 = vst [vmem:[%s10846_s29 + $0x28] sm:$0xff] %v5470_v18  ;;  %v5472_v49 = vmax.f32 %v6028_v52, 0.0  ;;  %5306 = vmatprep.mubr.bf16.mxu0 %v11581_v2  ;;  %v6037_v9 = vadd.f32 %v4562_v24, %v10348_v53  ;;  %v4566_v18 = vpop.permute.xlu1 %4565 }
 0x579   : > { %5599 = vst [vmem:[%s10846_s29 + $0x30] sm:$0xff] %v5471_v58  ;;  %v6041_v58 = vadd.f32 %v4566_v18, %v10316_v7 }
 0x57a   : > { %5600 = vst [vmem:[%s10846_s29 + $0x38] sm:$0xff] %v5472_v49  ;;  %v5038_v40 = vpop.f32.mrb[40].mxu0 }
 0x57b   : > { %v6030_v11 = vadd.f32 %v6029_v38, %v5038_v40  ;;  %v5040_v13 = vpop.f32.mrb[41].mxu0 }
 0x57c   : > { %v6032_v23 = vadd.f32 %v6029_v38, %v5040_v13  ;;  %v5042_v6 = vpop.f32.mrb[42].mxu0  ;;  %v6805_v38 = vld [vmem:[%s11142_s4 + $0xf0] sm:$0xff]  }
 0x57d   : > { %v5473_v14 = vmax.f32 %v6030_v11, 0.0  ;;  %v6034_v17 = vadd.f32 %v6033_v20, %v5042_v6  ;;  %v5044_v1 = vpop.f32.mrb[43].mxu0 }
 0x57e   : > { %v5474_v3 = vmax.f32 %v6032_v23, 0.0  ;;  %v6036_v16 = vadd.f32 %v6033_v20, %v5044_v1  ;;  %v4570_v23 = vpop.permute.xlu0 %4569 }
 0x57f   : > { %5601 = vst [vmem:[%s10846_s29 + $0x40] sm:$0xff] %v5473_v14  ;;  %v5475_v57 = vmax.f32 %v6034_v17, 0.0  ;;  %5307 = vmatmul.mubr.bf16.gmra.mrb[148].mxu0 %v6804_v61  ;;  %v6045_v6 = vadd.f32 %v4570_v23, %v10356_v5  ;;  %v4574_v14 = vpop.permute.xlu1 %4573 }
 0x580   : > { %5602 = vst [vmem:[%s10846_s29 + $0x48] sm:$0xff] %v5474_v3  ;;  %v5476_v25 = vmax.f32 %v6036_v16, 0.0  ;;  %5316 = vmatprep.mubr.bf16.mxu0 %v11581_v2  ;;  %v6049_v1 = vadd.f32 %v4574_v14, %v10328_v32 }
 0x581   : > { %5603 = vst [vmem:[%s10846_s29 + $0x50] sm:$0xff] %v5475_v57  ;;  %v6806_v57 = vld [vmem:[%s11142_s4 + $0xf8] sm:$0xff]  }
 0x582   : > { %5604 = vst [vmem:[%s10846_s29 + $0x58] sm:$0xff] %v5476_v25  ;;  %v5048_v52 = vpop.f32.mrb[44].mxu0 }
 0x583   : > { %v6038_v31 = vadd.f32 %v6037_v9, %v5048_v52  ;;  %v5050_v49 = vpop.f32.mrb[45].mxu0 }
 0x584   : > { %v6040_v48 = vadd.f32 %v6037_v9, %v5050_v49  ;;  %v5052_v40 = vpop.f32.mrb[46].mxu0 }
 0x585   : > { %v5477_v36 = vmax.f32 %v6038_v31, 0.0  ;;  %v6042_v53 = vadd.f32 %v6041_v58, %v5052_v40  ;;  %v5054_v20 = vpop.f32.mrb[47].mxu0  ;;  %v4578_v31 = vpop.permute.xlu0 %4577 }
 0x586   : > { %v5478_v11 = vmax.f32 %v6040_v48, 0.0  ;;  %v6044_v13 = vadd.f32 %v6041_v58, %v5054_v20  ;;  %v6053_v49 = vadd.f32 %v4578_v31, %v10365_v35 }
 0x587   : > { %5605 = vst [vmem:[%s10846_s29 + $0x60] sm:$0xff] %v5477_v36  ;;  %v5479_v61 = vmax.f32 %v6042_v53, 0.0  ;;  %5317 = vmatmul.mubr.bf16.gmra.mrb[152].mxu0 %v6805_v38  ;;  %v4582_v38 = vpop.permute.xlu1 %4581 }
 0x588   : > { %5606 = vst [vmem:[%s10846_s29 + $0x68] sm:$0xff] %v5478_v11  ;;  %v5480_v7 = vmax.f32 %v6044_v13, 0.0  ;;  %5326 = vmatprep.mubr.bf16.mxu0 %v11581_v2  ;;  %v6057_v40 = vadd.f32 %v4582_v38, %v10341_v42 }
 0x589   : > { %5607 = vst [vmem:[%s10846_s29 + $0x70] sm:$0xff] %v5479_v61  ;;  %v4586_v14 = vpop.permute.xlu0 %4585 }
 0x58a   : > { %5608 = vst [vmem:[%s10846_s29 + $0x78] sm:$0xff] %v5480_v7  ;;  %v5058_v17 = vpop.f32.mrb[48].mxu0 }
 0x58b   : > { %v6046_v3 = vadd.f32 %v6045_v6, %v5058_v17  ;;  %v5060_v16 = vpop.f32.mrb[49].mxu0  ;;  %v4590_v42 = vpop.permute.xlu1 %4589 }
 0x58c   : > { %v6048_v24 = vadd.f32 %v6045_v6, %v5060_v16  ;;  %v5062_v2 = vpop.f32.mrb[50].mxu0  ;;  %v11743_v16 = vld [vmem:[#allocation31_spill] sm:$0xff] }
 0x58d   : > { %v5481_v25 = vmax.f32 %v6046_v3, 0.0  ;;  %v6050_v5 = vadd.f32 %v6049_v1, %v5062_v2  ;;  %v5064_v9 = vpop.f32.mrb[51].mxu0 }
 0x58e   : > { %v5482_v18 = vmax.f32 %v6048_v24, 0.0  ;;  %v6052_v52 = vadd.f32 %v6049_v1, %v5064_v9  ;;  %v6061_v1 = vadd.f32 %v4586_v14, %v10373_v33 }
 0x58f   : > { %5609 = vst [vmem:[%s10846_s29 + $0x80] sm:$0xff] %v5481_v25  ;;  %v5483_v58 = vmax.f32 %v6050_v5, 0.0  ;;  %5327 = vmatmul.mubr.bf16.gmra.mrb[156].mxu0 %v6806_v57  ;;  %v6065_v57 = vadd.f32 %v4590_v42, %v11743_v16 }
 0x590   : > { %5610 = vst [vmem:[%s10846_s29 + $0x88] sm:$0xff] %v5482_v18  ;;  %v5484_v32 = vmax.f32 %v6052_v52, 0.0 }
 0x591   : > { %5611 = vst [vmem:[%s10846_s29 + $0x90] sm:$0xff] %v5483_v58 }
 0x592   : > { %5612 = vst [vmem:[%s10846_s29 + $0x98] sm:$0xff] %v5484_v32  ;;  %v5068_v48 = vpop.f32.mrb[52].mxu0  ;;  %v4594_v32 = vpop.permute.xlu0 %4593 }
 0x593   : > { %v6054_v36 = vadd.f32 %v6053_v49, %v5068_v48  ;;  %v5070_v53 = vpop.f32.mrb[53].mxu0  ;;  %v6069_v38 = vadd.f32 %v4594_v32, %v10382_v41  ;;  %v4598_v48 = vpop.permute.xlu1 %4597 }
 0x594   : > { %v6056_v20 = vadd.f32 %v6053_v49, %v5070_v53  ;;  %v5072_v11 = vpop.f32.mrb[54].mxu0 }
 0x595   : > { %v5485_v13 = vmax.f32 %v6054_v36, 0.0  ;;  %v6058_v61 = vadd.f32 %v6057_v40, %v5072_v11  ;;  %v5074_v23 = vpop.f32.mrb[55].mxu0  ;;  %v6073_v36 = vadd.f32 %v4598_v48, %v10358_v50 }
 0x596   : > { %v5486_v7 = vmax.f32 %v6056_v20, 0.0  ;;  %v6060_v6 = vadd.f32 %v6057_v40, %v5074_v23  ;;  %v4602_v14 = vpop.permute.xlu0 %4601 }
 0x597   : > { %5613 = vst [vmem:[%s10846_s29 + $0xa0] sm:$0xff] %v5485_v13  ;;  %v5487_v35 = vmax.f32 %v6058_v61, 0.0  ;;  %v4606_v50 = vpop.permute.xlu1 %4605 }
 0x598   : > { %5614 = vst [vmem:[%s10846_s29 + $0xa8] sm:$0xff] %v5486_v7  ;;  %v5488_v17 = vmax.f32 %v6060_v6, 0.0 }
 0x599   : > { %5615 = vst [vmem:[%s10846_s29 + $0xb0] sm:$0xff] %v5487_v35 }
 0x59a   : > { %5616 = vst [vmem:[%s10846_s29 + $0xb8] sm:$0xff] %v5488_v17  ;;  %v5078_v3 = vpop.f32.mrb[56].mxu0 }
 0x59b   : > { %v6062_v24 = vadd.f32 %v6061_v1, %v5078_v3  ;;  %v5080_v2 = vpop.f32.mrb[57].mxu0  ;;  %v6081_v3 = vadd.f32 %v4606_v50, %v10367_v39  ;;  %v4614_v39 = vpop.permute.xlu1 %4613 }
 0x59c   : > { %v6064_v25 = vadd.f32 %v6061_v1, %v5080_v2  ;;  %v5082_v5 = vpop.f32.mrb[58].mxu0  ;;  %v6077_v1 = vadd.f32 %v4602_v14, %v10390_v37 }
 0x59d   : > { %v5489_v9 = vmax.f32 %v6062_v24, 0.0  ;;  %v6066_v18 = vadd.f32 %v6065_v57, %v5082_v5  ;;  %v5084_v52 = vpop.f32.mrb[59].mxu0 }
 0x59e   : > { %v5490_v58 = vmax.f32 %v6064_v25, 0.0  ;;  %v6068_v31 = vadd.f32 %v6065_v57, %v5084_v52 }
 0x59f   : > { %5617 = vst [vmem:[%s10846_s29 + $0xc0] sm:$0xff] %v5489_v9  ;;  %v5491_v33 = vmax.f32 %v6066_v18, 0.0 }
 0x5a0   : > { %5618 = vst [vmem:[%s10846_s29 + $0xc8] sm:$0xff] %v5490_v58  ;;  %v5492_v49 = vmax.f32 %v6068_v31, 0.0  ;;  %v4610_v58 = vpop.permute.xlu0 %4609 }
 0x5a1   : > { %5619 = vst [vmem:[%s10846_s29 + $0xd0] sm:$0xff] %v5491_v33  ;;  %v6085_v33 = vadd.f32 %v4610_v58, %v10399_v22 }
 0x5a2   : > { %5620 = vst [vmem:[%s10846_s29 + $0xd8] sm:$0xff] %v5492_v49  ;;  %v5088_v40 = vpop.f32.mrb[60].mxu0  ;;  %v6089_v49 = vadd.f32 %v4614_v39, %v10375_v30  ;;  %v4622_v30 = vpop.permute.xlu1 %4621 }
 0x5a3   : > { %v6070_v53 = vadd.f32 %v6069_v38, %v5088_v40  ;;  %v5090_v20 = vpop.f32.mrb[61].mxu0 }
 0x5a4   : > { %v6072_v11 = vadd.f32 %v6069_v38, %v5090_v20  ;;  %v5092_v13 = vpop.f32.mrb[62].mxu0 }
 0x5a5   : > { %v5493_v61 = vmax.f32 %v6070_v53, 0.0  ;;  %v6074_v23 = vadd.f32 %v6073_v36, %v5092_v13  ;;  %v5094_v7 = vpop.f32.mrb[63].mxu0 }
 0x5a6   : > { %v5494_v6 = vmax.f32 %v6072_v11, 0.0  ;;  %v6076_v35 = vadd.f32 %v6073_v36, %v5094_v7 }
 0x5a7   : > { %5621 = vst [vmem:[%s10846_s29 + $0xe0] sm:$0xff] %v5493_v61  ;;  %v5495_v41 = vmax.f32 %v6074_v23, 0.0  ;;  %v4618_v23 = vpop.permute.xlu0 %4617 }
 0x5a8   : > { %5622 = vst [vmem:[%s10846_s29 + $0xe8] sm:$0xff] %v5494_v6  ;;  %v5496_v17 = vmax.f32 %v6076_v35, 0.0  ;;  %v6093_v6 = vadd.f32 %v4618_v23, %v10407_v46 }
 0x5a9   : > { %5623 = vst [vmem:[%s10846_s29 + $0xf0] sm:$0xff] %v5495_v41  ;;  %v6097_v41 = vadd.f32 %v4622_v30, %v10384_v15  ;;  %v4630_v15 = vpop.permute.xlu1 %4629 }
 0x5aa   : > { %5624 = vst [vmem:[%s10846_s29 + $0xf8] sm:$0xff] %v5496_v17  ;;  %v5098_v42 = vpop.f32.mrb[64].mxu0 }
 0x5ab   : > { %v6078_v16 = vadd.f32 %v6077_v1, %v5098_v42  ;;  %v5100_v57 = vpop.f32.mrb[65].mxu0 }
 0x5ac   : > { %v6080_v24 = vadd.f32 %v6077_v1, %v5100_v57  ;;  %v5102_v2 = vpop.f32.mrb[66].mxu0 }
 0x5ad   : > { %v5497_v25 = vmax.f32 %v6078_v16, 0.0  ;;  %v6082_v5 = vadd.f32 %v6081_v3, %v5102_v2  ;;  %v5104_v9 = vpop.f32.mrb[67].mxu0  ;;  %v4626_v2 = vpop.permute.xlu0 %4625 }
 0x5ae   : > { %v5498_v18 = vmax.f32 %v6080_v24, 0.0  ;;  %v6084_v52 = vadd.f32 %v6081_v3, %v5104_v9 }
 0x5af   : > { %5625 = vst [vmem:[%s10846_s29 + $0x100] sm:$0xff] %v5497_v25  ;;  %v5499_v37 = vmax.f32 %v6082_v5, 0.0  ;;  %v6101_v5 = vadd.f32 %v4626_v2, %v10416_v8 }
 0x5b0   : > { %5626 = vst [vmem:[%s10846_s29 + $0x108] sm:$0xff] %v5498_v18  ;;  %v5500_v31 = vmax.f32 %v6084_v52, 0.0  ;;  %v6105_v18 = vadd.f32 %v4630_v15, %v10392_v28  ;;  %v4638_v28 = vpop.permute.xlu1 %4637 }
 0x5b1   : > { %5627 = vst [vmem:[%s10846_s29 + $0x110] sm:$0xff] %v5499_v37 }
 0x5b2   : > { %5628 = vst [vmem:[%s10846_s29 + $0x118] sm:$0xff] %v5500_v31  ;;  %v5108_v32 = vpop.f32.mrb[68].mxu0 }
 0x5b3   : > { %v6086_v38 = vadd.f32 %v6085_v33, %v5108_v32  ;;  %v5110_v48 = vpop.f32.mrb[69].mxu0 }
 0x5b4   : > { %v6088_v40 = vadd.f32 %v6085_v33, %v5110_v48  ;;  %v5112_v36 = vpop.f32.mrb[70].mxu0  ;;  %v4634_v48 = vpop.permute.xlu0 %4633 }
 0x5b5   : > { %v5501_v53 = vmax.f32 %v6086_v38, 0.0  ;;  %v6090_v20 = vadd.f32 %v6089_v49, %v5112_v36  ;;  %v5114_v11 = vpop.f32.mrb[71].mxu0  ;;  %v6109_v36 = vadd.f32 %v4634_v48, %v10424_v27 }
 0x5b6   : > { %v5502_v13 = vmax.f32 %v6088_v40, 0.0  ;;  %v6092_v61 = vadd.f32 %v6089_v49, %v5114_v11 }
 0x5b7   : > { %5629 = vst [vmem:[%s10846_s29 + $0x120] sm:$0xff] %v5501_v53  ;;  %v5503_v22 = vmax.f32 %v6090_v20, 0.0  ;;  %v11744_v20 = vld [vmem:[#allocation10_spill] sm:$0xff] }
 0x5b8   : > { %5630 = vst [vmem:[%s10846_s29 + $0x128] sm:$0xff] %v5502_v13  ;;  %v5504_v7 = vmax.f32 %v6092_v61, 0.0  ;;  %v6113_v11 = vadd.f32 %v4638_v28, %v11744_v20 }
 0x5b9   : > { %5631 = vst [vmem:[%s10846_s29 + $0x130] sm:$0xff] %v5503_v22 }
 0x5ba   : > { %5632 = vst [vmem:[%s10846_s29 + $0x138] sm:$0xff] %v5504_v7  ;;  %v5118_v35 = vpop.f32.mrb[72].mxu0 }
 0x5bb   : > { %v6094_v14 = vadd.f32 %v6093_v6, %v5118_v35  ;;  %v5120_v17 = vpop.f32.mrb[73].mxu0 }
 0x5bc   : > { %v6096_v1 = vadd.f32 %v6093_v6, %v5120_v17  ;;  %v5122_v50 = vpop.f32.mrb[74].mxu0 }
 0x5bd   : > { %v5505_v42 = vmax.f32 %v6094_v14, 0.0  ;;  %v6098_v3 = vadd.f32 %v6097_v41, %v5122_v50  ;;  %v5124_v16 = vpop.f32.mrb[75].mxu0  ;;  %v4642_v14 = vpop.permute.xlu0 %4641 }
 0x5be   : > { %v5506_v57 = vmax.f32 %v6096_v1, 0.0  ;;  %v6100_v24 = vadd.f32 %v6097_v41, %v5124_v16  ;;  %v11745_v1 = vld [vmem:[#allocation46_spill] sm:$0xff]  ;;  %v11746_v16 = vld [vmem:[#allocation97_spill] sm:$0xff] }
 0x5bf   : > { %5633 = vst [vmem:[%s10846_s29 + $0x140] sm:$0xff] %v5505_v42  ;;  %v5507_v46 = vmax.f32 %v6098_v3, 0.0  ;;  %v6117_v50 = vadd.f32 %v4642_v14, %v11745_v1  ;;  %v4646_v42 = vpop.permute.xlu1 %4645 }
 0x5c0   : > { %5634 = vst [vmem:[%s10846_s29 + $0x148] sm:$0xff] %v5506_v57  ;;  %v5508_v25 = vmax.f32 %v6100_v24, 0.0  ;;  %v6121_v57 = vadd.f32 %v4646_v42, %v11746_v16 }
 0x5c1   : > { %5635 = vst [vmem:[%s10846_s29 + $0x150] sm:$0xff] %v5507_v46 }
 0x5c2   : > { %5636 = vst [vmem:[%s10846_s29 + $0x158] sm:$0xff] %v5508_v25  ;;  %v5128_v9 = vpop.f32.mrb[76].mxu0 }
 0x5c3   : > { %v6102_v52 = vadd.f32 %v6101_v5, %v5128_v9  ;;  %v5130_v37 = vpop.f32.mrb[77].mxu0 }
 0x5c4   : > { %v6104_v58 = vadd.f32 %v6101_v5, %v5130_v37  ;;  %v5132_v31 = vpop.f32.mrb[78].mxu0 }
 0x5c5   : > { %v5509_v33 = vmax.f32 %v6102_v52, 0.0  ;;  %v6106_v39 = vadd.f32 %v6105_v18, %v5132_v31  ;;  %v5134_v32 = vpop.f32.mrb[79].mxu0 }
 0x5c6   : > { %v5510_v49 = vmax.f32 %v6104_v58, 0.0  ;;  %v6108_v38 = vadd.f32 %v6105_v18, %v5134_v32  ;;  %v4650_v58 = vpop.permute.xlu0 %4649 }
 0x5c7   : > { %5637 = vst [vmem:[%s10846_s29 + $0x160] sm:$0xff] %v5509_v33  ;;  %v5511_v8 = vmax.f32 %v6106_v39, 0.0  ;;  %v6125_v33 = vadd.f32 %v4650_v58, %v10445_v63  ;;  %v4654_v39 = vpop.permute.xlu1 %4653 }
 0x5c8   : > { %5638 = vst [vmem:[%s10846_s29 + $0x168] sm:$0xff] %v5510_v49  ;;  %v5512_v40 = vmax.f32 %v6108_v38, 0.0  ;;  %v11747_v49 = vld [vmem:[#allocation100_spill] sm:$0xff] }
 0x5c9   : > { %5639 = vst [vmem:[%s10846_s29 + $0x170] sm:$0xff] %v5511_v8  ;;  %v6129_v38 = vadd.f32 %v4654_v39, %v11747_v49 }
 0x5ca   : > { %5640 = vst [vmem:[%s10846_s29 + $0x178] sm:$0xff] %v5512_v40  ;;  %v5138_v53 = vpop.f32.mrb[80].mxu0 }
 0x5cb   : > { %v6110_v13 = vadd.f32 %v6109_v36, %v5138_v53  ;;  %v5140_v61 = vpop.f32.mrb[81].mxu0 }
 0x5cc   : > { %v6112_v22 = vadd.f32 %v6109_v36, %v5140_v61  ;;  %v5142_v23 = vpop.f32.mrb[82].mxu0  ;;  %v4658_v61 = vpop.permute.xlu0 %4657 }
 0x5cd   : > { %v5513_v7 = vmax.f32 %v6110_v13, 0.0  ;;  %v6114_v6 = vadd.f32 %v6113_v11, %v5142_v23  ;;  %v5144_v30 = vpop.f32.mrb[83].mxu0  ;;  %v6133_v23 = vadd.f32 %v4658_v61, %v10458_v34 }
 0x5ce   : > { %v5514_v35 = vmax.f32 %v6112_v22, 0.0  ;;  %v6116_v41 = vadd.f32 %v6113_v11, %v5144_v30  ;;  %v11748_v30 = vld [vmem:[#allocation15_spill] sm:$0xff] }
 0x5cf   : > { %5641 = vst [vmem:[%s10846_s29 + $0x180] sm:$0xff] %v5513_v7  ;;  %v5515_v27 = vmax.f32 %v6114_v6, 0.0  ;;  %v4662_v7 = vpop.permute.xlu1 %4661 }
 0x5d0   : > { %5642 = vst [vmem:[%s10846_s29 + $0x188] sm:$0xff] %v5514_v35  ;;  %v5516_v17 = vmax.f32 %v6116_v41, 0.0  ;;  %v6137_v35 = vadd.f32 %v4662_v7, %v11748_v30 }
 0x5d1   : > { %5643 = vst [vmem:[%s10846_s29 + $0x190] sm:$0xff] %v5515_v27 }
 0x5d2   : > { %5644 = vst [vmem:[%s10846_s29 + $0x198] sm:$0xff] %v5516_v17  ;;  %v5148_v3 = vpop.f32.mrb[84].mxu0 }
 0x5d3   : > { %v6118_v24 = vadd.f32 %v6117_v50, %v5148_v3  ;;  %v5150_v46 = vpop.f32.mrb[85].mxu0  ;;  %v4666_v3 = vpop.permute.xlu0 %4665 }
 0x5d4   : > { %v6120_v2 = vadd.f32 %v6117_v50, %v5150_v46  ;;  %v5152_v25 = vpop.f32.mrb[86].mxu0 }
 0x5d5   : > { %v5517_v5 = vmax.f32 %v6118_v24, 0.0  ;;  %v6122_v15 = vadd.f32 %v6121_v57, %v5152_v25  ;;  %v5154_v9 = vpop.f32.mrb[87].mxu0  ;;  %v4670_v24 = vpop.permute.xlu1 %4669  ;;  %v6145_v25 = vadd.f32 %v4666_v3, %v10474_v10 }
 0x5d6   : > { %v5518_v18 = vmax.f32 %v6120_v2, 0.0  ;;  %v6124_v52 = vadd.f32 %v6121_v57, %v5154_v9  ;;  %v6142_v2 = vadd.f32 %v4666_v3, %v10471_v47 }
 0x5d7   : > { %5645 = vst [vmem:[%s10846_s29 + $0x1a0] sm:$0xff] %v5517_v5  ;;  %v5519_v37 = vmax.f32 %v6122_v15, 0.0  ;;  %v6148_v15 = vadd.f32 %v4670_v24, %v10437_v21 }
 0x5d8   : > { %5646 = vst [vmem:[%s10846_s29 + $0x1a8] sm:$0xff] %v5518_v18  ;;  %v5520_v31 = vmax.f32 %v6124_v52, 0.0  ;;  %v11749_v52 = vld [vmem:[#allocation99_spill] sm:$0xff] }
 0x5d9   : > { %5647 = vst [vmem:[%s10846_s29 + $0x1b0] sm:$0xff] %v5519_v37  ;;  %v6151_v37 = vadd.f32 %v4670_v24, %v11749_v52 }
 0x5da   : > { %5648 = vst [vmem:[%s10846_s29 + $0x1b8] sm:$0xff] %v5520_v31  ;;  %v5158_v32 = vpop.f32.mrb[88].mxu0 }
 0x5db   : > { %v6126_v8 = vadd.f32 %v6125_v33, %v5158_v32  ;;  %v5160_v48 = vpop.f32.mrb[89].mxu0  ;;  %v4674_v32 = vpop.permute.xlu0 %4673 }
 0x5dc   : > { %v6128_v40 = vadd.f32 %v6125_v33, %v5160_v48  ;;  %v5162_v36 = vpop.f32.mrb[90].mxu0  ;;  %v6154_v21 = vadd.f32 %v4674_v32, %v10488_v59 }
 0x5dd   : > { %v5521_v28 = vmax.f32 %v6126_v8, 0.0  ;;  %v6130_v53 = vadd.f32 %v6129_v38, %v5162_v36  ;;  %v5164_v20 = vpop.f32.mrb[91].mxu0  ;;  %v4678_v8 = vpop.permute.xlu1 %4677 }
 0x5de   : > { %v5522_v11 = vmax.f32 %v6128_v40, 0.0  ;;  %v6132_v13 = vadd.f32 %v6129_v38, %v5164_v20  ;;  %v6157_v40 = vadd.f32 %v4674_v32, %v10491_v43 }
 0x5df   : > { %5649 = vst [vmem:[%s10846_s29 + $0x1c0] sm:$0xff] %v5521_v28  ;;  %v5523_v63 = vmax.f32 %v6130_v53, 0.0  ;;  %v11750_v28 = vld [vmem:[#allocation101_spill] sm:$0xff] }
 0x5e0   : > { %5650 = vst [vmem:[%s10846_s29 + $0x1c8] sm:$0xff] %v5522_v11  ;;  %v5524_v22 = vmax.f32 %v6132_v13, 0.0  ;;  %v6160_v53 = vadd.f32 %v4678_v8, %v11750_v28  ;;  %v11751_v13 = vld [vmem:[#allocation48_spill] sm:$0xff] }
 0x5e1   : > { %5651 = vst [vmem:[%s10846_s29 + $0x1d0] sm:$0xff] %v5523_v63  ;;  %v6163_v63 = vadd.f32 %v4678_v8, %v11751_v13 }
 0x5e2   : > { %5652 = vst [vmem:[%s10846_s29 + $0x1d8] sm:$0xff] %v5524_v22  ;;  %v5168_v6 = vpop.f32.mrb[92].mxu0 }
 0x5e3   : > { %v6134_v41 = vadd.f32 %v6133_v23, %v5168_v6  ;;  %v5170_v27 = vpop.f32.mrb[93].mxu0  ;;  %v4682_v6 = vpop.permute.xlu0 %4681 }
 0x5e4   : > { %v6136_v14 = vadd.f32 %v6133_v23, %v5170_v27  ;;  %v5172_v17 = vpop.f32.mrb[94].mxu0 }
 0x5e5   : > { %v5525_v1 = vmax.f32 %v6134_v41, 0.0  ;;  %v6138_v50 = vadd.f32 %v6137_v35, %v5172_v17  ;;  %v5174_v42 = vpop.f32.mrb[95].mxu0  ;;  %v4686_v41 = vpop.permute.xlu1 %4685  ;;  %v6169_v17 = vadd.f32 %v4682_v6, %v10507_v26 }
 0x5e6   : > { %v5526_v16 = vmax.f32 %v6136_v14, 0.0  ;;  %v6140_v34 = vadd.f32 %v6137_v35, %v5174_v42  ;;  %v6166_v14 = vadd.f32 %v4682_v6, %v10504_v45 }
 0x5e7   : > { %5653 = vst [vmem:[%s10846_s29 + $0x1e0] sm:$0xff] %v5525_v1  ;;  %v5527_v57 = vmax.f32 %v6138_v50, 0.0  ;;  %v11752_v50 = vld [vmem:[#allocation83_spill] sm:$0xff] }
 0x5e8   : > { %5654 = vst [vmem:[%s10846_s29 + $0x1e8] sm:$0xff] %v5526_v16  ;;  %v5528_v46 = vmax.f32 %v6140_v34, 0.0  ;;  %v6172_v42 = vadd.f32 %v4686_v41, %v11752_v50  ;;  %v11753_v34 = vld [vmem:[#allocation84_spill] sm:$0xff] }
 0x5e9   : > { %5655 = vst [vmem:[%s10846_s29 + $0x1f0] sm:$0xff] %v5527_v57  ;;  %v6175_v57 = vadd.f32 %v4686_v41, %v11753_v34  ;;  %v11758_v34 = vld [vmem:[#allocation80_spill] sm:$0xff] }
 0x5ea   : > { %5656 = vst [vmem:[%s10846_s29 + $0x1f8] sm:$0xff] %v5528_v46  ;;  %v5178_v5 = vpop.f32.mrb[96].mxu0 }
 0x5eb   : > { %v6143_v9 = vadd.f32 %v6142_v2, %v5178_v5  ;;  %v5180_v18 = vpop.f32.mrb[97].mxu0  ;;  %v4690_v5 = vpop.permute.xlu0 %4689 }
 0x5ec   : > { %v6146_v58 = vadd.f32 %v6145_v25, %v5180_v18  ;;  %v5182_v31 = vpop.f32.mrb[98].mxu0  ;;  %v4694_v18 = vpop.permute.xlu1 %4693 }
 0x5ed   : > { %v5529_v33 = vmax.f32 %v6143_v9, 0.0  ;;  %v6149_v39 = vadd.f32 %v6148_v15, %v5182_v31  ;;  %v5184_v47 = vpop.f32.mrb[99].mxu0 }
 0x5ee   : > { %v5530_v49 = vmax.f32 %v6146_v58, 0.0  ;;  %v6152_v38 = vadd.f32 %v6151_v37, %v5184_v47  ;;  %v6178_v37 = vadd.f32 %v4690_v5, %v10521_v44  ;;  %v6181_v58 = vadd.f32 %v4690_v5, %v10524_v51 }
 0x5ef   : > { %5657 = vst [vmem:[%s10846_s29 + $0x200] sm:$0xff] %v5529_v33  ;;  %v5531_v10 = vmax.f32 %v6149_v39, 0.0  ;;  %v11754_v33 = vld [vmem:[#allocation87_spill] sm:$0xff] }
 0x5f0   : > { %5658 = vst [vmem:[%s10846_s29 + $0x208] sm:$0xff] %v5530_v49  ;;  %v5532_v48 = vmax.f32 %v6152_v38, 0.0  ;;  %v6184_v39 = vadd.f32 %v4694_v18, %v11754_v33  ;;  %v11755_v49 = vld [vmem:[#allocation88_spill] sm:$0xff] }
 0x5f1   : > { %5659 = vst [vmem:[%s10846_s29 + $0x210] sm:$0xff] %v5531_v10  ;;  %v6187_v38 = vadd.f32 %v4694_v18, %v11755_v49 }
 0x5f2   : > { %5660 = vst [vmem:[%s10846_s29 + $0x218] sm:$0xff] %v5532_v48  ;;  %v5188_v36 = vpop.f32.mrb[100].mxu0 }
 0x5f3   : > { %v6155_v20 = vadd.f32 %v6154_v21, %v5188_v36  ;;  %v5190_v11 = vpop.f32.mrb[101].mxu0 }
 0x5f4   : > { %v6158_v61 = vadd.f32 %v6157_v40, %v5190_v11  ;;  %v5192_v22 = vpop.f32.mrb[102].mxu0  ;;  %v4698_v40 = vpop.permute.xlu0 %4697 }
 0x5f5   : > { %v5533_v23 = vmax.f32 %v6155_v20, 0.0  ;;  %v6161_v7 = vadd.f32 %v6160_v53, %v5192_v22  ;;  %v5194_v59 = vpop.f32.mrb[103].mxu0  ;;  %v4702_v53 = vpop.permute.xlu1 %4701  ;;  %v6190_v11 = vadd.f32 %v4698_v40, %v10537_v60  ;;  %v6193_v13 = vadd.f32 %v4698_v40, %v10540_v54 }
 0x5f6   : > { %v5534_v30 = vmax.f32 %v6158_v61, 0.0  ;;  %v6164_v35 = vadd.f32 %v6163_v63, %v5194_v59  ;;  %v11756_v61 = vld [vmem:[#allocation52_spill] sm:$0xff] }
 0x5f7   : > { %5661 = vst [vmem:[%s10846_s29 + $0x220] sm:$0xff] %v5533_v23  ;;  %v5535_v43 = vmax.f32 %v6161_v7, 0.0  ;;  %v6196_v22 = vadd.f32 %v4702_v53, %v11756_v61  ;;  %v11757_v59 = vld [vmem:[#allocation44_spill] sm:$0xff]  ;;  %v11762_v61 = vld [vmem:[#allocation85_spill] sm:$0xff] }
 0x5f8   : > { %5662 = vst [vmem:[%s10846_s29 + $0x228] sm:$0xff] %v5534_v30  ;;  %v5536_v27 = vmax.f32 %v6164_v35, 0.0  ;;  %v6199_v6 = vadd.f32 %v4702_v53, %v11757_v59  ;;  %v11763_v59 = vld [vmem:[#allocation86_spill] sm:$0xff] }
 0x5f9   : > { %5663 = vst [vmem:[%s10846_s29 + $0x230] sm:$0xff] %v5535_v43 }
 0x5fa   : > { %5664 = vst [vmem:[%s10846_s29 + $0x238] sm:$0xff] %v5536_v27  ;;  %v5198_v1 = vpop.f32.mrb[104].mxu0  ;;  %v4706_v27 = vpop.permute.xlu0 %4705 }
 0x5fb   : > { %v6167_v3 = vadd.f32 %v6166_v14, %v5198_v1  ;;  %v5200_v16 = vpop.f32.mrb[105].mxu0  ;;  %v4710_v1 = vpop.permute.xlu1 %4709 }
 0x5fc   : > { %v6170_v24 = vadd.f32 %v6169_v17, %v5200_v16  ;;  %v5202_v46 = vpop.f32.mrb[106].mxu0 }
 0x5fd   : > { %v5537_v2 = vmax.f32 %v6167_v3, 0.0  ;;  %v6173_v25 = vadd.f32 %v6172_v42, %v5202_v46  ;;  %v5204_v45 = vpop.f32.mrb[107].mxu0  ;;  %v6202_v42 = vadd.f32 %v4706_v27, %v10554_v12  ;;  %v6205_v3 = vadd.f32 %v4706_v27, %v10557_v29 }
 0x5fe   : > { %v5538_v15 = vmax.f32 %v6170_v24, 0.0  ;;  %v6176_v9 = vadd.f32 %v6175_v57, %v5204_v45  ;;  %v6208_v57 = vadd.f32 %v4710_v1, %v11758_v34 }
 0x5ff   : > { %5665 = vst [vmem:[%s10846_s29 + $0x240] sm:$0xff] %v5537_v2  ;;  %v5539_v26 = vmax.f32 %v6173_v25, 0.0  ;;  %v11759_v2 = vld [vmem:[#allocation82_spill] sm:$0xff] }
 0x600   : > { %5666 = vst [vmem:[%s10846_s29 + $0x248] sm:$0xff] %v5538_v15  ;;  %v5540_v52 = vmax.f32 %v6176_v9, 0.0  ;;  %v6211_v25 = vadd.f32 %v4710_v1, %v11759_v2 }
 0x601   : > { %5667 = vst [vmem:[%s10846_s29 + $0x250] sm:$0xff] %v5539_v26  ;;  %v4714_v26 = vpop.permute.xlu0 %4713 }
 0x602   : > { %5668 = vst [vmem:[%s10846_s29 + $0x258] sm:$0xff] %v5540_v52  ;;  %v5208_v31 = vpop.f32.mrb[108].mxu0  ;;  %v6217_v33 = vadd.f32 %v4714_v26, %v10573_v19 }
 0x603   : > { %v6179_v47 = vadd.f32 %v6178_v37, %v5208_v31  ;;  %v5210_v32 = vpop.f32.mrb[109].mxu0  ;;  %v4718_v37 = vpop.permute.xlu1 %4717  ;;  %v6214_v31 = vadd.f32 %v4714_v26, %v10570_v56 }
 0x604   : > { %v6182_v10 = vadd.f32 %v6181_v58, %v5210_v32  ;;  %v5212_v8 = vpop.f32.mrb[110].mxu0 }
 0x605   : > { %v5541_v48 = vmax.f32 %v6179_v47, 0.0  ;;  %v6185_v21 = vadd.f32 %v6184_v39, %v5212_v8  ;;  %v5214_v44 = vpop.f32.mrb[111].mxu0  ;;  %v11760_v47 = vld [vmem:[#allocation63_spill] sm:$0xff] }
 0x606   : > { %v5542_v36 = vmax.f32 %v6182_v10, 0.0  ;;  %v6188_v28 = vadd.f32 %v6187_v38, %v5214_v44  ;;  %v6220_v32 = vadd.f32 %v4718_v37, %v11760_v47  ;;  %v11761_v10 = vld [vmem:[#allocation57_spill] sm:$0xff] }
 0x607   : > { %5669 = vst [vmem:[%s10846_s29 + $0x260] sm:$0xff] %v5541_v48  ;;  %v5543_v51 = vmax.f32 %v6185_v21, 0.0  ;;  %v6223_v8 = vadd.f32 %v4718_v37, %v11761_v10  ;;  %v4726_v53 = vpop.permute.xlu1 %4725  ;;  %v11767_v37 = vld [vmem:[#allocation32_spill] sm:$0xff] }
 0x608   : > { %5670 = vst [vmem:[%s10846_s29 + $0x268] sm:$0xff] %v5542_v36  ;;  %v5544_v20 = vmax.f32 %v6188_v28, 0.0  ;;  %v4722_v36 = vpop.permute.xlu0 %4721 }
 0x609   : > { %5671 = vst [vmem:[%s10846_s29 + $0x270] sm:$0xff] %v5543_v51 }
 0x60a   : > { %5672 = vst [vmem:[%s10846_s29 + $0x278] sm:$0xff] %v5544_v20  ;;  %v5218_v63 = vpop.f32.mrb[112].mxu0 }
 0x60b   : > { %v6191_v23 = vadd.f32 %v6190_v11, %v5218_v63  ;;  %v5220_v7 = vpop.f32.mrb[113].mxu0  ;;  %v6226_v11 = vadd.f32 %v4722_v36, %v10587_v0 }
 0x60c   : > { %v6194_v30 = vadd.f32 %v6193_v13, %v5220_v7  ;;  %v5222_v35 = vpop.f32.mrb[114].mxu0  ;;  %v6229_v13 = vadd.f32 %v4722_v36, %v10590_v4 }
 0x60d   : > { %v5545_v43 = vmax.f32 %v6191_v23, 0.0  ;;  %v6197_v41 = vadd.f32 %v6196_v22, %v5222_v35  ;;  %v5224_v60 = vpop.f32.mrb[115].mxu0  ;;  %v6232_v22 = vadd.f32 %v4726_v53, %v11762_v61  ;;  %v11772_v61 = vld [vmem:[#allocation27_spill] sm:$0xff] }
 0x60e   : > { %v5546_v14 = vmax.f32 %v6194_v30, 0.0  ;;  %v6200_v17 = vadd.f32 %v6199_v6, %v5224_v60  ;;  %v6235_v6 = vadd.f32 %v4726_v53, %v11763_v59  ;;  %v4730_v60 = vpop.permute.xlu0 %4729  ;;  %v11770_v53 = vld [vmem:[#allocation66_spill] sm:$0xff]  ;;  %v11773_v59 = vld [vmem:[#allocation36_spill] sm:$0xff] }
 0x60f   : > { %5673 = vst [vmem:[%s10846_s29 + $0x280] sm:$0xff] %v5545_v43  ;;  %v5547_v54 = vmax.f32 %v6197_v41, 0.0  ;;  %v6238_v1 = vadd.f32 %v4730_v60, %v10603_v55 }
 0x610   : > { %5674 = vst [vmem:[%s10846_s29 + $0x288] sm:$0xff] %v5546_v14  ;;  %v5548_v50 = vmax.f32 %v6200_v17, 0.0  ;;  %v4734_v17 = vpop.permute.xlu1 %4733 }
 0x611   : > { %5675 = vst [vmem:[%s10846_s29 + $0x290] sm:$0xff] %v5547_v54 }
 0x612   : > { %5676 = vst [vmem:[%s10846_s29 + $0x298] sm:$0xff] %v5548_v50  ;;  %v5228_v16 = vpop.f32.mrb[116].mxu0  ;;  %v6241_v50 = vadd.f32 %v4730_v60, %v10606_v62 }
 0x613   : > { %v6203_v24 = vadd.f32 %v6202_v42, %v5228_v16  ;;  %v5230_v46 = vpop.f32.mrb[117].mxu0 }
 0x614   : > { %v6206_v45 = vadd.f32 %v6205_v3, %v5230_v46  ;;  %v5232_v5 = vpop.f32.mrb[118].mxu0  ;;  %v11764_v3 = vld [vmem:[#allocation92_spill] sm:$0xff]  ;;  %v4742_v26 = vpop.permute.xlu1 %4741 }
 0x615   : > { %v5549_v15 = vmax.f32 %v6203_v24, 0.0  ;;  %v6209_v9 = vadd.f32 %v6208_v57, %v5232_v5  ;;  %v5234_v12 = vpop.f32.mrb[119].mxu0  ;;  %v6244_v16 = vadd.f32 %v4734_v17, %v11764_v3  ;;  %v11765_v24 = vld [vmem:[#allocation19_spill] sm:$0xff] }
 0x616   : > { %v5550_v18 = vmax.f32 %v6206_v45, 0.0  ;;  %v6212_v52 = vadd.f32 %v6211_v25, %v5234_v12  ;;  %v6247_v46 = vadd.f32 %v4734_v17, %v11765_v24 }
 0x617   : > { %5677 = vst [vmem:[%s10846_s29 + $0x2a0] sm:$0xff] %v5549_v15  ;;  %v5551_v29 = vmax.f32 %v6209_v9, 0.0  ;;  %v4738_v15 = vpop.permute.xlu0 %4737 }
 0x618   : > { %5678 = vst [vmem:[%s10846_s29 + $0x2a8] sm:$0xff] %v5550_v18  ;;  %v5552_v58 = vmax.f32 %v6212_v52, 0.0  ;;  %v11766_v52 = vld [vmem:[#allocation33_spill] sm:$0xff] }
 0x619   : > { %5679 = vst [vmem:[%s10846_s29 + $0x2b0] sm:$0xff] %v5551_v29  ;;  %v6250_v29 = vadd.f32 %v4738_v15, %v11766_v52 }
 0x61a   : > { %5680 = vst [vmem:[%s10846_s29 + $0x2b8] sm:$0xff] %v5552_v58  ;;  %v5238_v39 = vpop.f32.mrb[120].mxu0  ;;  %v6253_v58 = vadd.f32 %v4738_v15, %v11767_v37  ;;  %v11778_v37 = vld [vmem:[#allocation11_spill] sm:$0xff] }
 0x61b   : > { %v6215_v49 = vadd.f32 %v6214_v31, %v5238_v39  ;;  %v5240_v38 = vpop.f32.mrb[121].mxu0 }
 0x61c   : > { %v6218_v48 = vadd.f32 %v6217_v33, %v5240_v38  ;;  %v5242_v21 = vpop.f32.mrb[122].mxu0  ;;  %v11768_v33 = vld [vmem:[#allocation45_spill] sm:$0xff] }
 0x61d   : > { %v5553_v44 = vmax.f32 %v6215_v49, 0.0  ;;  %v6221_v40 = vadd.f32 %v6220_v32, %v5242_v21  ;;  %v5244_v56 = vpop.f32.mrb[123].mxu0  ;;  %v6256_v39 = vadd.f32 %v4742_v26, %v11768_v33  ;;  %v11769_v49 = vld [vmem:[#allocation89_spill] sm:$0xff] }
 0x61e   : > { %v5554_v28 = vmax.f32 %v6218_v48, 0.0  ;;  %v6224_v51 = vadd.f32 %v6223_v8, %v5244_v56  ;;  %v6259_v38 = vadd.f32 %v4742_v26, %v11769_v49 }
 0x61f   : > { %5681 = vst [vmem:[%s10846_s29 + $0x2c0] sm:$0xff] %v5553_v44  ;;  %v5555_v19 = vmax.f32 %v6221_v40, 0.0  ;;  %v4746_v40 = vpop.permute.xlu0 %4745 }
 0x620   : > { %5682 = vst [vmem:[%s10846_s29 + $0x2c8] sm:$0xff] %v5554_v28  ;;  %v5556_v20 = vmax.f32 %v6224_v51, 0.0  ;;  %v4750_v51 = vpop.permute.xlu1 %4749 }
 0x621   : > { %5683 = vst [vmem:[%s10846_s29 + $0x2d0] sm:$0xff] %v5555_v19 }
 0x622   : > { %5684 = vst [vmem:[%s10846_s29 + $0x2d8] sm:$0xff] %v5556_v20  ;;  %v5248_v63 = vpop.f32.mrb[124].mxu0  ;;  %v6262_v20 = vadd.f32 %v4746_v40, %v11770_v53 }
 0x623   : > { %v6227_v23 = vadd.f32 %v6226_v11, %v5248_v63  ;;  %v5250_v7 = vpop.f32.mrb[125].mxu0  ;;  %v11771_v11 = vld [vmem:[#allocation65_spill] sm:$0xff]  ;;  %v4754_v60 = vpop.permute.xlu0 %4753 }
 0x624   : > { %v6230_v30 = vadd.f32 %v6229_v13, %v5250_v7  ;;  %v5252_v35 = vpop.f32.mrb[126].mxu0  ;;  %v6265_v13 = vadd.f32 %v4746_v40, %v11771_v11  ;;  %v4758_v17 = vpop.permute.xlu1 %4757  ;;  %v11782_v11 = vld [vmem:[#allocation29_spill] sm:$0xff] }
 0x625   : > { %v5557_v43 = vmax.f32 %v6227_v23, 0.0  ;;  %v6233_v41 = vadd.f32 %v6232_v22, %v5252_v35  ;;  %v5254_v0 = vpop.f32.mrb[127].mxu0  ;;  %v6268_v22 = vadd.f32 %v4750_v51, %v11772_v61 }
 0x626   : > { %v5558_v27 = vmax.f32 %v6230_v30, 0.0  ;;  %v6236_v14 = vadd.f32 %v6235_v6, %v5254_v0  ;;  %v6271_v6 = vadd.f32 %v4750_v51, %v11773_v59 }
 0x627   : > { %5685 = vst [vmem:[%s10846_s29 + $0x2e0] sm:$0xff] %v5557_v43  ;;  %v5559_v4 = vmax.f32 %v6233_v41, 0.0 }
 0x628   : > { %5686 = vst [vmem:[%s10846_s29 + $0x2e8] sm:$0xff] %v5558_v27  ;;  %v5560_v54 = vmax.f32 %v6236_v14, 0.0  ;;  %v4766_v52 = vpop.permute.xlu1 %4765 }
 0x629   : > { %5687 = vst [vmem:[%s10846_s29 + $0x2f0] sm:$0xff] %v5559_v4 }
 0x62a   : > { %5688 = vst [vmem:[%s10846_s29 + $0x2f8] sm:$0xff] %v5560_v54  ;;  %v5258_v42 = vpop.f32.mrb[128].mxu0 }
 0x62b   : > { %v6239_v34 = vadd.f32 %v6238_v1, %v5258_v42  ;;  %v5260_v57 = vpop.f32.mrb[129].mxu0  ;;  %v11774_v1 = vld [vmem:[#allocation71_spill] sm:$0xff]  ;;  %v11775_v42 = vld [vmem:[#allocation78_spill] sm:$0xff] }
 0x62c   : > { %v6242_v2 = vadd.f32 %v6241_v50, %v5260_v57  ;;  %v5262_v25 = vpop.f32.mrb[130].mxu0  ;;  %v6274_v50 = vadd.f32 %v4754_v60, %v11774_v1  ;;  %v6277_v3 = vadd.f32 %v4754_v60, %v11775_v42  ;;  %v4774_v53 = vpop.permute.xlu1 %4773  ;;  %v11786_v42 = vld [vmem:[#allocation72_spill] sm:$0xff] }
 0x62d   : > { %v5561_v45 = vmax.f32 %v6239_v34, 0.0  ;;  %v6245_v5 = vadd.f32 %v6244_v16, %v5262_v25  ;;  %v5264_v55 = vpop.f32.mrb[131].mxu0  ;;  %v11776_v34 = vld [vmem:[#allocation64_spill] sm:$0xff] }
 0x62e   : > { %v5562_v9 = vmax.f32 %v6242_v2, 0.0  ;;  %v6248_v12 = vadd.f32 %v6247_v46, %v5264_v55  ;;  %v6280_v57 = vadd.f32 %v4758_v17, %v11776_v34  ;;  %v11777_v2 = vld [vmem:[#allocation58_spill] sm:$0xff] }
 0x62f   : > { %5689 = vst [vmem:[%s10846_s29 + $0x300] sm:$0xff] %v5561_v45  ;;  %v5563_v62 = vmax.f32 %v6245_v5, 0.0  ;;  %v6283_v25 = vadd.f32 %v4758_v17, %v11777_v2 }
 0x630   : > { %5690 = vst [vmem:[%s10846_s29 + $0x308] sm:$0xff] %v5562_v9  ;;  %v5564_v18 = vmax.f32 %v6248_v12, 0.0  ;;  %v4762_v12 = vpop.permute.xlu0 %4761  ;;  %v4782_v1 = vpop.permute.xlu1 %4781 }
 0x631   : > { %5691 = vst [vmem:[%s10846_s29 + $0x310] sm:$0xff] %v5563_v62 }
 0x632   : > { %5692 = vst [vmem:[%s10846_s29 + $0x318] sm:$0xff] %v5564_v18  ;;  %v5268_v31 = vpop.f32.mrb[132].mxu0 }
 0x633   : > { %v6251_v47 = vadd.f32 %v6250_v29, %v5268_v31  ;;  %v5270_v32 = vpop.f32.mrb[133].mxu0  ;;  %v11779_v31 = vld [vmem:[#allocation21_spill] sm:$0xff] }
 0x634   : > { %v6254_v10 = vadd.f32 %v6253_v58, %v5270_v32  ;;  %v5272_v8 = vpop.f32.mrb[134].mxu0  ;;  %v6286_v58 = vadd.f32 %v4762_v12, %v11778_v37  ;;  %v6289_v33 = vadd.f32 %v4762_v12, %v11779_v31  ;;  %v4790_v37 = vpop.permute.xlu1 %4789  ;;  %v11790_v31 = vld [vmem:[#allocation35_spill] sm:$0xff] }
 0x635   : > { %v5565_v48 = vmax.f32 %v6251_v47, 0.0  ;;  %v6257_v21 = vadd.f32 %v6256_v39, %v5272_v8  ;;  %v5274_v44 = vpop.f32.mrb[135].mxu0  ;;  %v11780_v47 = vld [vmem:[#allocation69_spill] sm:$0xff] }
 0x636   : > { %v5566_v56 = vmax.f32 %v6254_v10, 0.0  ;;  %v6260_v36 = vadd.f32 %v6259_v38, %v5274_v44  ;;  %v6292_v32 = vadd.f32 %v4766_v52, %v11780_v47  ;;  %v11781_v10 = vld [vmem:[#allocation91_spill] sm:$0xff] }
 0x637   : > { %5693 = vst [vmem:[%s10846_s29 + $0x320] sm:$0xff] %v5565_v48  ;;  %v5567_v28 = vmax.f32 %v6257_v21, 0.0  ;;  %v6295_v8 = vadd.f32 %v4766_v52, %v11781_v10 }
 0x638   : > { %5694 = vst [vmem:[%s10846_s29 + $0x328] sm:$0xff] %v5566_v56  ;;  %v5568_v19 = vmax.f32 %v6260_v36, 0.0  ;;  %v4770_v36 = vpop.permute.xlu0 %4769 }
 0x639   : > { %5695 = vst [vmem:[%s10846_s29 + $0x330] sm:$0xff] %v5567_v28 }
 0x63a   : > { %5696 = vst [vmem:[%s10846_s29 + $0x338] sm:$0xff] %v5568_v19  ;;  %v5278_v63 = vpop.f32.mrb[136].mxu0 }
 0x63b   : > { %v6263_v23 = vadd.f32 %v6262_v20, %v5278_v63  ;;  %v5280_v7 = vpop.f32.mrb[137].mxu0  ;;  %v11783_v63 = vld [vmem:[#allocation28_spill] sm:$0xff] }
 0x63c   : > { %v6266_v30 = vadd.f32 %v6265_v13, %v5280_v7  ;;  %v5282_v35 = vpop.f32.mrb[138].mxu0  ;;  %v6298_v13 = vadd.f32 %v4770_v36, %v11782_v11  ;;  %v6301_v61 = vadd.f32 %v4770_v36, %v11783_v63 }
 0x63d   : > { %v5569_v43 = vmax.f32 %v6263_v23, 0.0  ;;  %v6269_v41 = vadd.f32 %v6268_v22, %v5282_v35  ;;  %v5284_v0 = vpop.f32.mrb[139].mxu0  ;;  %v11784_v23 = vld [vmem:[#allocation18_spill] sm:$0xff] }
 0x63e   : > { %v5570_v27 = vmax.f32 %v6266_v30, 0.0  ;;  %v6272_v14 = vadd.f32 %v6271_v6, %v5284_v0  ;;  %v6304_v7 = vadd.f32 %v4774_v53, %v11784_v23  ;;  %v11785_v30 = vld [vmem:[#allocation30_spill] sm:$0xff] }
 0x63f   : > { %5697 = vst [vmem:[%s10846_s29 + $0x340] sm:$0xff] %v5569_v43  ;;  %v5571_v4 = vmax.f32 %v6269_v41, 0.0  ;;  %v6307_v35 = vadd.f32 %v4774_v53, %v11785_v30 }
 0x640   : > { %5698 = vst [vmem:[%s10846_s29 + $0x348] sm:$0xff] %v5570_v27  ;;  %v5572_v54 = vmax.f32 %v6272_v14, 0.0  ;;  %v4778_v14 = vpop.permute.xlu0 %4777 }
 0x641   : > { %5699 = vst [vmem:[%s10846_s29 + $0x350] sm:$0xff] %v5571_v4 }
 0x642   : > { %5700 = vst [vmem:[%s10846_s29 + $0x358] sm:$0xff] %v5572_v54  ;;  %v5288_v16 = vpop.f32.mrb[140].mxu0 }
 0x643   : > { %v6275_v24 = vadd.f32 %v6274_v50, %v5288_v16  ;;  %v5290_v46 = vpop.f32.mrb[141].mxu0  ;;  %v11787_v16 = vld [vmem:[#allocation73_spill] sm:$0xff] }
 0x644   : > { %v6278_v45 = vadd.f32 %v6277_v3, %v5290_v46  ;;  %v5292_v5 = vpop.f32.mrb[142].mxu0  ;;  %v6310_v3 = vadd.f32 %v4778_v14, %v11786_v42  ;;  %v6313_v34 = vadd.f32 %v4778_v14, %v11787_v16 }
 0x645   : > { %v5573_v55 = vmax.f32 %v6275_v24, 0.0  ;;  %v6281_v15 = vadd.f32 %v6280_v57, %v5292_v5  ;;  %v5294_v9 = vpop.f32.mrb[143].mxu0  ;;  %v11788_v24 = vld [vmem:[#allocation37_spill] sm:$0xff] }
 0x646   : > { %v5574_v62 = vmax.f32 %v6278_v45, 0.0  ;;  %v6284_v26 = vadd.f32 %v6283_v25, %v5294_v9  ;;  %v6316_v46 = vadd.f32 %v4782_v1, %v11788_v24  ;;  %v11789_v45 = vld [vmem:[#allocation39_spill] sm:$0xff] }
 0x647   : > { %5701 = vst [vmem:[%s10846_s29 + $0x360] sm:$0xff] %v5573_v55  ;;  %v5575_v18 = vmax.f32 %v6281_v15, 0.0  ;;  %v6319_v5 = vadd.f32 %v4782_v1, %v11789_v45 }
 0x648   : > { %5702 = vst [vmem:[%s10846_s29 + $0x368] sm:$0xff] %v5574_v62  ;;  %v5576_v29 = vmax.f32 %v6284_v26, 0.0  ;;  %v4786_v26 = vpop.permute.xlu0 %4785 }
 0x649   : > { %5703 = vst [vmem:[%s10846_s29 + $0x370] sm:$0xff] %v5575_v18 }
 0x64a   : > { %5704 = vst [vmem:[%s10846_s29 + $0x378] sm:$0xff] %v5576_v29  ;;  %v5298_v39 = vpop.f32.mrb[144].mxu0 }
 0x64b   : > { %v6287_v49 = vadd.f32 %v6286_v58, %v5298_v39  ;;  %v5300_v38 = vpop.f32.mrb[145].mxu0  ;;  %v11791_v39 = vld [vmem:[#allocation41_spill] sm:$0xff] }
 0x64c   : > { %v6290_v48 = vadd.f32 %v6289_v33, %v5300_v38  ;;  %v5302_v21 = vpop.f32.mrb[146].mxu0  ;;  %v6322_v33 = vadd.f32 %v4786_v26, %v11790_v31  ;;  %v6325_v47 = vadd.f32 %v4786_v26, %v11791_v39 }
 0x64d   : > { %v5577_v44 = vmax.f32 %v6287_v49, 0.0  ;;  %v6293_v40 = vadd.f32 %v6292_v32, %v5302_v21  ;;  %v5304_v56 = vpop.f32.mrb[147].mxu0  ;;  %v11792_v49 = vld [vmem:[#allocation49_spill] sm:$0xff] }
 0x64e   : > { %v5578_v28 = vmax.f32 %v6290_v48, 0.0  ;;  %v6296_v51 = vadd.f32 %v6295_v8, %v5304_v56  ;;  %v6328_v38 = vadd.f32 %v4790_v37, %v11792_v49  ;;  %v11793_v48 = vld [vmem:[#allocation47_spill] sm:$0xff] }
 0x64f   : > { %5705 = vst [vmem:[%s10846_s29 + $0x380] sm:$0xff] %v5577_v44  ;;  %v5579_v19 = vmax.f32 %v6293_v40, 0.0  ;;  %v6331_v21 = vadd.f32 %v4790_v37, %v11793_v48 }
 0x650   : > { %5706 = vst [vmem:[%s10846_s29 + $0x388] sm:$0xff] %v5578_v28  ;;  %v5580_v20 = vmax.f32 %v6296_v51, 0.0 }
 0x651   : > { %5707 = vst [vmem:[%s10846_s29 + $0x390] sm:$0xff] %v5579_v19 }
 0x652   : > { %5708 = vst [vmem:[%s10846_s29 + $0x398] sm:$0xff] %v5580_v20  ;;  %v5308_v22 = vpop.f32.mrb[148].mxu0 }
 0x653   : > { %v6299_v59 = vadd.f32 %v6298_v13, %v5308_v22  ;;  %v5310_v6 = vpop.f32.mrb[149].mxu0 }
 0x654   : > { %v6302_v43 = vadd.f32 %v6301_v61, %v5310_v6  ;;  %v5312_v41 = vpop.f32.mrb[150].mxu0 }
 0x655   : > { %v5581_v0 = vmax.f32 %v6299_v59, 0.0  ;;  %v6305_v60 = vadd.f32 %v6304_v7, %v5312_v41  ;;  %v5314_v27 = vpop.f32.mrb[151].mxu0 }
 0x656   : > { %v5582_v4 = vmax.f32 %v6302_v43, 0.0  ;;  %v6308_v17 = vadd.f32 %v6307_v35, %v5314_v27 }
 0x657   : > { %5709 = vst [vmem:[%s10846_s29 + $0x3a0] sm:$0xff] %v5581_v0  ;;  %v5583_v54 = vmax.f32 %v6305_v60, 0.0 }
 0x658   : > { %5710 = vst [vmem:[%s10846_s29 + $0x3a8] sm:$0xff] %v5582_v4  ;;  %v5584_v50 = vmax.f32 %v6308_v17, 0.0 }
 0x659   : > { %5711 = vst [vmem:[%s10846_s29 + $0x3b0] sm:$0xff] %v5583_v54 }
 0x65a   : > { %5712 = vst [vmem:[%s10846_s29 + $0x3b8] sm:$0xff] %v5584_v50  ;;  %v5318_v57 = vpop.f32.mrb[152].mxu0 }
 0x65b   : > { %v6311_v2 = vadd.f32 %v6310_v3, %v5318_v57  ;;  %v5320_v25 = vpop.f32.mrb[153].mxu0 }
 0x65c   : > { %v6314_v55 = vadd.f32 %v6313_v34, %v5320_v25  ;;  %v5322_v15 = vpop.f32.mrb[154].mxu0 }
 0x65d   : > { %v5585_v9 = vmax.f32 %v6311_v2, 0.0  ;;  %v6317_v12 = vadd.f32 %v6316_v46, %v5322_v15  ;;  %v5324_v62 = vpop.f32.mrb[155].mxu0 }
 0x65e   : > { %v5586_v18 = vmax.f32 %v6314_v55, 0.0  ;;  %v6320_v52 = vadd.f32 %v6319_v5, %v5324_v62 }
 0x65f   : > { %5713 = vst [vmem:[%s10846_s29 + $0x3c0] sm:$0xff] %v5585_v9  ;;  %v5587_v29 = vmax.f32 %v6317_v12, 0.0 }
 0x660   : > { %5714 = vst [vmem:[%s10846_s29 + $0x3c8] sm:$0xff] %v5586_v18  ;;  %v5588_v58 = vmax.f32 %v6320_v52, 0.0 }
 0x661   : > { %5715 = vst [vmem:[%s10846_s29 + $0x3d0] sm:$0xff] %v5587_v29 }
 0x662   : > { %5716 = vst [vmem:[%s10846_s29 + $0x3d8] sm:$0xff] %v5588_v58  ;;  %v5328_v32 = vpop.f32.mrb[156].mxu0 }
 0x663   : > { %v6323_v10 = vadd.f32 %v6322_v33, %v5328_v32  ;;  %v5330_v8 = vpop.f32.mrb[157].mxu0 }
 0x664   : > { %v6326_v44 = vadd.f32 %v6325_v47, %v5330_v8  ;;  %v5332_v40 = vpop.f32.mrb[158].mxu0 }
 0x665   : > { %v5589_v56 = vmax.f32 %v6323_v10, 0.0  ;;  %v6329_v36 = vadd.f32 %v6328_v38, %v5332_v40  ;;  %v5334_v28 = vpop.f32.mrb[159].mxu0 }
 0x666   : > { %v5590_v51 = vmax.f32 %v6326_v44, 0.0  ;;  %v6332_v19 = vadd.f32 %v6331_v21, %v5334_v28 }
 0x667   : > { %5717 = vst [vmem:[%s10846_s29 + $0x3e0] sm:$0xff] %v5589_v56  ;;  %v5591_v53 = vmax.f32 %v6329_v36, 0.0 }
 0x668   : > { %5718 = vst [vmem:[%s10846_s29 + $0x3e8] sm:$0xff] %v5590_v51  ;;  %v5592_v20 = vmax.f32 %v6332_v19, 0.0 }
 0x669   : > { %5719 = vst [vmem:[%s10846_s29 + $0x3f0] sm:$0xff] %v5591_v53 }
 0x66a   : > { %5720 = vst [vmem:[%s10846_s29 + $0x3f8] sm:$0xff] %v5592_v20 }
 0x66b   : > { %6845 = shalt.err (!%p6842_p3)
}
 0x66c   : > { %s6846_s16 = scalar_lea.hbm %s11088_s26, 16384  ;;  %s6850_s12 = scalar_lea.hbm %s11144_s6, 32768 }
 0x66d   : > { %p6847_p4 = scmp.ne.s32.totalorder %s11088_s26, %s6846_s16  ;;  %p6851_p9 = scmp.lt.u32.totalorder %s11088_s26, %s11144_s6 }
 0x66e   : > { %p6852_p10 = scmp.lt.u32.totalorder %s6850_s12, %s6846_s16  ;;  %p6854_p12 = scmp.lt.u32.totalorder %s6846_s16, %s11088_s26 }
 0x66f   : > { %p6848_p7 = pnand %p6847_p4, %p6984_p5 }
 0x670   : > { %p6853_p11 = por %p6852_p10, %p6851_p9 }
 0x671   : > { %p6849_p8 = pneg %p6848_p7 }
 0x672   : > { %p6855_p13 = por %p6854_p12, %p6853_p11 }
 0x674   : > { %p6856_p0 = pnand %p6855_p13, %p6849_p8 }
 0x676   : > { %6859 = shalt.err (!%p6856_p0)
}
 0x677   : > { %s6909_s15 = smov 256   ;;  %s6910_s20 = smov 16  }
 0x678   : > { %6557 = dma.vmem_to_hbm [thread:$0]  (%p6984_p5), %s11090_s17, 16384, %s11088_s26, %s11097_s25, %s6909_s15, %s6909_s15, %s6910_s20  }
 0x679 PF: > { %p6563_p1 = scmp.ge.s32.totalorder %s6894_s24, 2  ;;  %s5750_s11 = sand.u32 1, %s6882_s21  }
 0x67a   : > { %s5751_s10 = scalar_lea.sflag [#allocation4], %s5750_s11 }
 0x67b   : > { %p6560_p2 = pnand %p6563_p1, %p6988_p6 }
 0x67d   : > { %6877 = dma.done.wait (!%p6560_p2), %s5751_s10, 16384  }
 0x67e   : > { %6879 = vsyncadd (!%p6560_p2), %s5751_s10, 4294950912  ;;  %p16_p3 = scmp.ge.s32.totalorder %s6971_s27, 4   ;;  %s11794_s21 = smov %s6886_s22 }
 0x67f   : > { %s11795_s22 = smov %s6890_s23  ;;  %s11796_s23 = smov %s6982_s30 }
 0x680   : > { %s11797_s24 = smov %s6971_s27  ;;  %18 = sbr.rel (!%p16_p3) target bundleno = 3 (0x3), region = 79 }
 0x687   :  { %5756 = vsyncpa [#allocation4], 1 }
 0x688   :  { %5758 = vsyncpa [#allocation4 + $0x1], 1 }

</bundles_post_ra>
